<compile_context>
chip_gen: v6e
topology: v6e:2x2x1
jax: 0.10.0
libtpu: 0.0.40
codegen_flags: <defaults>
</compile_context>

<pallas_src>
import functools

import jax
import jax.numpy as jnp
from jax.experimental import pallas as pl
from jax.experimental.pallas import tpu as pltpu

C = 256          # fixed by the module definition
KH = KW = 3
BN_EPS = 1e-3


# ----------------------------------------------------------------------------- kernel
# Per-image: depthwise 3x3 conv (padding pre-applied) + pointwise 1x1 conv (MXU),
# row-chunked, plus per-image per-channel sum / sum-of-squares for training-mode BN.
def sepconv_kernel(xp_ref, wd_ref, wp_ref, y_ref, ssum_ref, ssq_ref, *, rh):
    # xp_ref : (1, H+2, Wp, C) bf16  zero-padded NHWC input (Wp = W+2 rounded up to 8)
    # wd_ref : (9, W, C)       bf16  depthwise weights, pre-broadcast along W
    # wp_ref : (C, C)          bf16  pointwise weights, [cin, cout]
    # y_ref  : (1, H, W, C)    bf16  pre-BN output
    # ssum_ref / ssq_ref : (1, 1, C) f32  per-image sum / sum-of-squares of y
    H = y_ref.shape[1]
    W = y_ref.shape[2]
    Cc = y_ref.shape[3]
    n_chunks = H // rh
    M = rh * W

    # Hoist the 9 (W, C) tap tiles out of the chunk loop when they are small enough to
    # stay resident in vregs.  They arrive pre-replicated along the sublane (W) axis,
    # so there is zero broadcast/splat work per use either way.
    if KH * KW * W * Cc * 2 <= 32 * 4096:
        taps = [wd_ref[k] for k in range(KH * KW)]

        def tap(k):
            return taps[k]
    else:
        def tap(k):
            return wd_ref[k]          # cheap VMEM reload, still no VALU splat work

    # Row-reduction vector for MXU-based BN partial sums (hoisted, loop constant).
    ones_m = jnp.ones((1, M), jnp.bfloat16)

    def chunk(c, carry):
        s_acc, q_acc = carry
        r = pl.multiple_of(c * rh, rh)

        # Depthwise 3x3: 9 shifted bf16 multiply-accumulates on the VPU.  Each kh row
        # group is loaded once at the aligned full padded width; the kw shifts are
        # static register slices of that slab.
        acc = jnp.zeros((rh, W, Cc), jnp.bfloat16)
        for kh in range(KH):
            slab = xp_ref[0, pl.ds(r + kh, rh), :, :]            # (rh, Wp, C) bf16
            for kw in range(KW):
                acc = acc + slab[:, kw:kw + W, :] * tap(kh * KW + kw)

        # Pointwise 1x1 conv == (rh*W, C) @ (C, C) on the MXU, f32 accumulation.
        y2 = jnp.dot(acc.reshape(M, Cc), wp_ref[...],
                     preferred_element_type=jnp.float32)
        yb = y2.astype(jnp.bfloat16)
        y_ref[0, pl.ds(r, rh), :, :] = yb.reshape(rh, W, Cc)

        # BN partial sums on the MXU (ones @ y) from the same bf16 values that were
        # stored (stats match what BN is later applied to); keeps the VALU slot free.
        s_acc = s_acc + jnp.dot(ones_m, yb, preferred_element_type=jnp.float32)
        q_acc = q_acc + jnp.dot(ones_m, yb * yb, preferred_element_type=jnp.float32)
        return s_acc, q_acc

    zero = jnp.zeros((1, Cc), jnp.float32)
    unroll = True if n_chunks <= 8 else 4
    s, q = jax.lax.fori_loop(0, n_chunks, chunk, (zero, zero), unroll=unroll)

    ssum_ref[...] = s.reshape(1, 1, Cc)
    ssq_ref[...] = q.reshape(1, 1, Cc)


# ----------------------------------------------------------------------------- wrapper
def separable_conv_block(x_nchw, wd, wp, bp, gamma, beta, eps=BN_EPS):
    # The pointwise bias is cancelled exactly by training-mode BN's batch-mean
    # subtraction, so it is not needed for the forward output.  (Only valid for
    # training-mode BN; eval-mode running-stats BN would need the bias.)
    del bp
    N, Cin, H, W = x_nchw.shape
    assert Cin == C

    # Rows per in-kernel chunk: largest divisor of H whose (rh, W, C) bf16 accumulator
    # and (rh, Wp, C) bf16 slab stay inside the 64-vreg file (target rh * W <= 128).
    rh = max([d for d in range(1, H + 1) if H % d == 0 and d * W <= 128] or [1])
    wpad = ((W + 2 + 7) // 8) * 8            # sublane-aligned padded width

    # NCHW -> NHWC, cast to bf16, zero-pad (1 top/bottom/left, align right edge).
    # Transpose + convert + pad fuse into a single XLA copy.
    x_nhwc = jnp.transpose(x_nchw, (0, 2, 3, 1)).astype(jnp.bfloat16)
    xp = jnp.pad(x_nhwc, ((0, 0), (1, 1), (1, wpad - W - 1), (0, 0)))

    # Depthwise weights (C,1,3,3) -> (9, C) (row = kh*3 + kw), bf16, pre-broadcast
    # along W so the kernel does zero splat work per tap.
    wd9 = wd.reshape(C, KH * KW).T.astype(jnp.bfloat16)
    wd9 = jnp.broadcast_to(wd9[:, None, :], (KH * KW, W, C))
    wp_mat = wp.reshape(C, C).T.astype(jnp.bfloat16)              # (Cin, Cout)

    # Whole-image blocks; raise the scoped-VMEM limit when the double-buffered blocks
    # would not fit the conservative 16 MiB default (matters on v5e / large images).
    block_bytes = (2 * ((H + 2) * wpad * C * 2 + H * W * C * 2)
                   + KH * KW * W * C * 2 + C * C * 2 + 4 * C * 4 + (1 << 20))
    cp_kwargs = dict(dimension_semantics=("parallel",))
    if block_bytes > (16 << 20):
        cp_kwargs["vmem_limit_bytes"] = int(min(block_bytes, 100 << 20))

    y, ssum, ssq = pl.pallas_call(
        functools.partial(sepconv_kernel, rh=rh),
        grid_spec=pltpu.PrefetchScalarGridSpec(
            num_scalar_prefetch=0,
            grid=(N,),
            in_specs=[
                pl.BlockSpec((1, H + 2, wpad, C), lambda n: (n, 0, 0, 0)),
                pl.BlockSpec((KH * KW, W, C), lambda n: (0, 0, 0)),
                pl.BlockSpec((C, C), lambda n: (0, 0)),
            ],
            out_specs=[
                pl.BlockSpec((1, H, W, C), lambda n: (n, 0, 0, 0)),
                pl.BlockSpec((1, 1, C), lambda n: (n, 0, 0)),
                pl.BlockSpec((1, 1, C), lambda n: (n, 0, 0)),
            ],
        ),
        out_shape=[
            jax.ShapeDtypeStruct((N, H, W, C), jnp.bfloat16),   # pre-BN activations
            jax.ShapeDtypeStruct((N, 1, C), jnp.float32),       # per-image sum
            jax.ShapeDtypeStruct((N, 1, C), jnp.float32),       # per-image sum of sq.
        ],
        compiler_params=pltpu.CompilerParams(**cp_kwargs),
    )(xp, wd9, wp_mat)

    # Finish training-mode BN statistics in f32 (batch mean, biased variance).
    # Note: E[y^2] - mean^2 can cancel in f32 for extreme N*H*W; clamped at 0.
    # TODO(synk): switch to mean-centered per-image partial sums if that regime matters.
    cnt = jnp.float32(N * H * W)
    mean = jnp.sum(ssum[:, 0, :], axis=0) / cnt
    var = jnp.maximum(jnp.sum(ssq[:, 0, :], axis=0) / cnt - mean * mean, 0.0)
    scale = gamma.astype(jnp.float32) * jax.lax.rsqrt(var + eps)
    shift = beta.astype(jnp.float32) - mean * scale

    # BN apply + ReLU, fused by XLA into the NHWC -> NCHW transpose copy.  Output is
    # f32 to match the PyTorch module; drop to bf16 here if the consumer allows it.
    out = jnp.maximum(y.astype(jnp.float32) * scale + shift, 0.0)
    return jnp.transpose(out, (0, 3, 1, 2))


# ----------------------------------------------------------------------------- reference
def ref_forward(x_nchw, wd, wp, bp, gamma, beta, eps=BN_EPS):
    dw = jax.lax.conv_general_dilated(
        x_nchw, wd, (1, 1), ((1, 1), (1, 1)),
        feature_group_count=C, dimension_numbers=('NCHW', 'OIHW', 'NCHW'))
    pw = jax.lax.conv_general_dilated(
        dw, wp, (1, 1), 'VALID', dimension_numbers=('NCHW', 'OIHW', 'NCHW'))
    pw = pw + bp.reshape(1, C, 1, 1)
    mean = pw.mean(axis=(0, 2, 3), keepdims=True)
    var = pw.var(axis=(0, 2, 3), keepdims=True)          # biased, as PyTorch BN training
    y = (pw - mean) / jnp.sqrt(var + eps)
    y = y * gamma.reshape(1, C, 1, 1) + beta.reshape(1, C, 1, 1)
    return jnp.maximum(y, 0.0)


if __name__ == "__main__":
    key = jax.random.PRNGKey(0)
    k_x, k_wd, k_wp, k_bp, k_g, k_b = jax.random.split(key, 6)

    N, H, W = 2, 16, 16
    x = jax.random.normal(k_x, (N, C, H, W), jnp.float32)          # NCHW, like PyTorch

    # deterministic synthetic parameters (shapes per nn.Conv2d / nn.BatchNorm2d)
    wd = 0.05 * jax.random.normal(k_wd, (C, 1, KH, KW), jnp.float32)   # depthwise, groups=C
    wp = 0.05 * jax.random.normal(k_wp, (C, C, 1, 1), jnp.float32)     # pointwise 1x1
    bp = 0.05 * jax.random.normal(k_bp, (C,), jnp.float32)             # pointwise bias
    gamma = 1.0 + 0.1 * jax.random.normal(k_g, (C,), jnp.float32)      # BN weight
    beta = 0.1 * jax.random.normal(k_b, (C,), jnp.float32)             # BN bias

    out = separable_conv_block(x, wd, wp, bp, gamma, beta)
    out = jax.block_until_ready(out)

    ref = jax.block_until_ready(ref_forward(x, wd, wp, bp, gamma, beta))
    assert out.shape == (N, C, H, W)
    max_err = float(jnp.abs(out - ref).max())
    # bf16 activations / bf16 depthwise MAC / MXU bf16 operands -> loosened tolerance
    assert jnp.allclose(out, ref, rtol=2e-2, atol=3e-2), max_err

    print("KERNEL_OK")
</pallas_src>

<mosaic_0001>
module attributes {stable_mosaic.version = 11 : i64} {
  func.func @sepconv_kernel(%arg0: i32, %arg1: memref<1x18x24x256xbf16, #tpu.memory_space<vmem>>, %arg2: memref<9x16x256xbf16, #tpu.memory_space<vmem>>, %arg3: memref<256x256xbf16, #tpu.memory_space<vmem>>, %arg4: memref<1x16x16x256xbf16, #tpu.memory_space<vmem>>, %arg5: memref<1x1x256xf32, #tpu.memory_space<vmem>>, %arg6: memref<1x1x256xf32, #tpu.memory_space<vmem>>) attributes {dimension_semantics = [#tpu.dimension_semantics<parallel>], iteration_bounds = array<i64: 2>, scalar_prefetch = 0 : i64, scratch_operands = 0 : i64, tpu.core_type = #tpu.core_type<tc>, window_params = [{transform_indices = @transform_0, window_bounds = array<i64: 1, 18, 24, 256>}, {pipeline_mode = #tpu.pipeline_mode<synchronous>, transform_indices = @transform_1, window_bounds = array<i64: 9, 16, 256>}, {pipeline_mode = #tpu.pipeline_mode<synchronous>, transform_indices = @transform_2, window_bounds = array<i64: 256, 256>}, {transform_indices = @transform_3, window_bounds = array<i64: 1, 16, 16, 256>}, {transform_indices = @transform_4, window_bounds = array<i64: 1, 1, 256>}, {transform_indices = @transform_5, window_bounds = array<i64: 1, 1, 256>}]} {
    %c0 = arith.constant 0 : index
    %c0_0 = arith.constant 0 : index
    %c0_1 = arith.constant 0 : index
    %0 = vector.load %arg2[%c0, %c0_0, %c0_1] : memref<9x16x256xbf16, #tpu.memory_space<vmem>>, vector<1x16x256xbf16>
    %1 = vector.shape_cast %0 : vector<1x16x256xbf16> to vector<16x256xbf16>
    %c1 = arith.constant 1 : index
    %c0_2 = arith.constant 0 : index
    %c0_3 = arith.constant 0 : index
    %2 = vector.load %arg2[%c1, %c0_2, %c0_3] : memref<9x16x256xbf16, #tpu.memory_space<vmem>>, vector<1x16x256xbf16>
    %3 = vector.shape_cast %2 : vector<1x16x256xbf16> to vector<16x256xbf16>
    %c2 = arith.constant 2 : index
    %c0_4 = arith.constant 0 : index
    %c0_5 = arith.constant 0 : index
    %4 = vector.load %arg2[%c2, %c0_4, %c0_5] : memref<9x16x256xbf16, #tpu.memory_space<vmem>>, vector<1x16x256xbf16>
    %5 = vector.shape_cast %4 : vector<1x16x256xbf16> to vector<16x256xbf16>
    %c3 = arith.constant 3 : index
    %c0_6 = arith.constant 0 : index
    %c0_7 = arith.constant 0 : index
    %6 = vector.load %arg2[%c3, %c0_6, %c0_7] : memref<9x16x256xbf16, #tpu.memory_space<vmem>>, vector<1x16x256xbf16>
    %7 = vector.shape_cast %6 : vector<1x16x256xbf16> to vector<16x256xbf16>
    %c4 = arith.constant 4 : index
    %c0_8 = arith.constant 0 : index
    %c0_9 = arith.constant 0 : index
    %8 = vector.load %arg2[%c4, %c0_8, %c0_9] : memref<9x16x256xbf16, #tpu.memory_space<vmem>>, vector<1x16x256xbf16>
    %9 = vector.shape_cast %8 : vector<1x16x256xbf16> to vector<16x256xbf16>
    %c5 = arith.constant 5 : index
    %c0_10 = arith.constant 0 : index
    %c0_11 = arith.constant 0 : index
    %10 = vector.load %arg2[%c5, %c0_10, %c0_11] : memref<9x16x256xbf16, #tpu.memory_space<vmem>>, vector<1x16x256xbf16>
    %11 = vector.shape_cast %10 : vector<1x16x256xbf16> to vector<16x256xbf16>
    %c6 = arith.constant 6 : index
    %c0_12 = arith.constant 0 : index
    %c0_13 = arith.constant 0 : index
    %12 = vector.load %arg2[%c6, %c0_12, %c0_13] : memref<9x16x256xbf16, #tpu.memory_space<vmem>>, vector<1x16x256xbf16>
    %13 = vector.shape_cast %12 : vector<1x16x256xbf16> to vector<16x256xbf16>
    %c7 = arith.constant 7 : index
    %c0_14 = arith.constant 0 : index
    %c0_15 = arith.constant 0 : index
    %14 = vector.load %arg2[%c7, %c0_14, %c0_15] : memref<9x16x256xbf16, #tpu.memory_space<vmem>>, vector<1x16x256xbf16>
    %15 = vector.shape_cast %14 : vector<1x16x256xbf16> to vector<16x256xbf16>
    %c8 = arith.constant 8 : index
    %c0_16 = arith.constant 0 : index
    %c0_17 = arith.constant 0 : index
    %16 = vector.load %arg2[%c8, %c0_16, %c0_17] : memref<9x16x256xbf16, #tpu.memory_space<vmem>>, vector<1x16x256xbf16>
    %17 = vector.shape_cast %16 : vector<1x16x256xbf16> to vector<16x256xbf16>
    %cst = arith.constant 1.000000e+00 : bf16
    %18 = vector.broadcast %cst : bf16 to vector<1x128xbf16>
    %cst_18 = arith.constant 0.000000e+00 : f32
    %19 = vector.broadcast %cst_18 : f32 to vector<1x256xf32>
    %c0_i32 = arith.constant 0 : i32
    %c8_i32 = arith.constant 8 : i32
    %20 = arith.muli %c0_i32, %c8_i32 : i32
    %21 = tpu.assume_multiple %20, 8 : i32
    %cst_19 = arith.constant 0.000000e+00 : bf16
    %22 = vector.broadcast %cst_19 : bf16 to vector<8x16x256xbf16>
    %c0_i32_20 = arith.constant 0 : i32
    %23 = arith.addi %21, %c0_i32_20 : i32
    %c0_21 = arith.constant 0 : index
    %24 = arith.index_cast %23 : i32 to index
    %c0_22 = arith.constant 0 : index
    %c0_23 = arith.constant 0 : index
    %25 = vector.load %arg1[%c0_21, %24, %c0_22, %c0_23] : memref<1x18x24x256xbf16, #tpu.memory_space<vmem>>, vector<1x8x24x256xbf16>
    %26 = vector.shape_cast %25 : vector<1x8x24x256xbf16> to vector<8x24x256xbf16>
    %27 = vector.extract_strided_slice %26 {offsets = [0, 0, 0], sizes = [8, 16, 256], strides = [1, 1, 1]} : vector<8x24x256xbf16> to vector<8x16x256xbf16>
    %28 = vector.shape_cast %1 : vector<16x256xbf16> to vector<1x16x256xbf16>
    %29 = vector.broadcast %28 : vector<1x16x256xbf16> to vector<8x16x256xbf16>
    %30 = arith.mulf %27, %29 : vector<8x16x256xbf16>
    %31 = arith.addf %22, %30 : vector<8x16x256xbf16>
    %32 = vector.extract_strided_slice %26 {offsets = [0, 1, 0], sizes = [8, 16, 256], strides = [1, 1, 1]} : vector<8x24x256xbf16> to vector<8x16x256xbf16>
    %33 = vector.shape_cast %3 : vector<16x256xbf16> to vector<1x16x256xbf16>
    %34 = vector.broadcast %33 : vector<1x16x256xbf16> to vector<8x16x256xbf16>
    %35 = arith.mulf %32, %34 : vector<8x16x256xbf16>
    %36 = arith.addf %31, %35 : vector<8x16x256xbf16>
    %37 = vector.extract_strided_slice %26 {offsets = [0, 2, 0], sizes = [8, 16, 256], strides = [1, 1, 1]} : vector<8x24x256xbf16> to vector<8x16x256xbf16>
    %38 = vector.shape_cast %5 : vector<16x256xbf16> to vector<1x16x256xbf16>
    %39 = vector.broadcast %38 : vector<1x16x256xbf16> to vector<8x16x256xbf16>
    %40 = arith.mulf %37, %39 : vector<8x16x256xbf16>
    %41 = arith.addf %36, %40 : vector<8x16x256xbf16>
    %c1_i32 = arith.constant 1 : i32
    %42 = arith.addi %21, %c1_i32 : i32
    %c0_24 = arith.constant 0 : index
    %43 = arith.index_cast %42 : i32 to index
    %c0_25 = arith.constant 0 : index
    %c0_26 = arith.constant 0 : index
    %44 = vector.load %arg1[%c0_24, %43, %c0_25, %c0_26] : memref<1x18x24x256xbf16, #tpu.memory_space<vmem>>, vector<1x8x24x256xbf16>
    %45 = vector.shape_cast %44 : vector<1x8x24x256xbf16> to vector<8x24x256xbf16>
    %46 = vector.extract_strided_slice %45 {offsets = [0, 0, 0], sizes = [8, 16, 256], strides = [1, 1, 1]} : vector<8x24x256xbf16> to vector<8x16x256xbf16>
    %47 = vector.shape_cast %7 : vector<16x256xbf16> to vector<1x16x256xbf16>
    %48 = vector.broadcast %47 : vector<1x16x256xbf16> to vector<8x16x256xbf16>
    %49 = arith.mulf %46, %48 : vector<8x16x256xbf16>
    %50 = arith.addf %41, %49 : vector<8x16x256xbf16>
    %51 = vector.extract_strided_slice %45 {offsets = [0, 1, 0], sizes = [8, 16, 256], strides = [1, 1, 1]} : vector<8x24x256xbf16> to vector<8x16x256xbf16>
    %52 = vector.shape_cast %9 : vector<16x256xbf16> to vector<1x16x256xbf16>
    %53 = vector.broadcast %52 : vector<1x16x256xbf16> to vector<8x16x256xbf16>
    %54 = arith.mulf %51, %53 : vector<8x16x256xbf16>
    %55 = arith.addf %50, %54 : vector<8x16x256xbf16>
    %56 = vector.extract_strided_slice %45 {offsets = [0, 2, 0], sizes = [8, 16, 256], strides = [1, 1, 1]} : vector<8x24x256xbf16> to vector<8x16x256xbf16>
    %57 = vector.shape_cast %11 : vector<16x256xbf16> to vector<1x16x256xbf16>
    %58 = vector.broadcast %57 : vector<1x16x256xbf16> to vector<8x16x256xbf16>
    %59 = arith.mulf %56, %58 : vector<8x16x256xbf16>
    %60 = arith.addf %55, %59 : vector<8x16x256xbf16>
    %c2_i32 = arith.constant 2 : i32
    %61 = arith.addi %21, %c2_i32 : i32
    %c0_27 = arith.constant 0 : index
    %62 = arith.index_cast %61 : i32 to index
    %c0_28 = arith.constant 0 : index
    %c0_29 = arith.constant 0 : index
    %63 = vector.load %arg1[%c0_27, %62, %c0_28, %c0_29] : memref<1x18x24x256xbf16, #tpu.memory_space<vmem>>, vector<1x8x24x256xbf16>
    %64 = vector.shape_cast %63 : vector<1x8x24x256xbf16> to vector<8x24x256xbf16>
    %65 = vector.extract_strided_slice %64 {offsets = [0, 0, 0], sizes = [8, 16, 256], strides = [1, 1, 1]} : vector<8x24x256xbf16> to vector<8x16x256xbf16>
    %66 = vector.shape_cast %13 : vector<16x256xbf16> to vector<1x16x256xbf16>
    %67 = vector.broadcast %66 : vector<1x16x256xbf16> to vector<8x16x256xbf16>
    %68 = arith.mulf %65, %67 : vector<8x16x256xbf16>
    %69 = arith.addf %60, %68 : vector<8x16x256xbf16>
    %70 = vector.extract_strided_slice %64 {offsets = [0, 1, 0], sizes = [8, 16, 256], strides = [1, 1, 1]} : vector<8x24x256xbf16> to vector<8x16x256xbf16>
    %71 = vector.shape_cast %15 : vector<16x256xbf16> to vector<1x16x256xbf16>
    %72 = vector.broadcast %71 : vector<1x16x256xbf16> to vector<8x16x256xbf16>
    %73 = arith.mulf %70, %72 : vector<8x16x256xbf16>
    %74 = arith.addf %69, %73 : vector<8x16x256xbf16>
    %75 = vector.extract_strided_slice %64 {offsets = [0, 2, 0], sizes = [8, 16, 256], strides = [1, 1, 1]} : vector<8x24x256xbf16> to vector<8x16x256xbf16>
    %76 = vector.shape_cast %17 : vector<16x256xbf16> to vector<1x16x256xbf16>
    %77 = vector.broadcast %76 : vector<1x16x256xbf16> to vector<8x16x256xbf16>
    %78 = arith.mulf %75, %77 : vector<8x16x256xbf16>
    %79 = arith.addf %74, %78 : vector<8x16x256xbf16>
    %80 = vector.shape_cast %79 : vector<8x16x256xbf16> to vector<128x256xbf16>
    %c0_30 = arith.constant 0 : index
    %c0_31 = arith.constant 0 : index
    %81 = vector.load %arg3[%c0_30, %c0_31] : memref<256x256xbf16, #tpu.memory_space<vmem>>, vector<256x256xbf16>
    %cst_32 = arith.constant dense<0.000000e+00> : vector<128x256xf32>
    %82 = tpu.matmul %80, %81, %cst_32 {dimension_numbers = #tpu.dot_dimension_numbers<[1], [0], [0], [1], [0, 0, 1, 1], [], []>} : vector<128x256xbf16>, vector<256x256xbf16>, vector<128x256xf32> -> vector<128x256xf32>
    %83 = arith.truncf %82 : vector<128x256xf32> to vector<128x256xbf16>
    %84 = vector.shape_cast %83 : vector<128x256xbf16> to vector<8x16x256xbf16>
    %c0_33 = arith.constant 0 : index
    %85 = arith.index_cast %21 : i32 to index
    %c0_34 = arith.constant 0 : index
    %c0_35 = arith.constant 0 : index
    %86 = vector.load %arg4[%c0_33, %85, %c0_34, %c0_35] : memref<1x16x16x256xbf16, #tpu.memory_space<vmem>>, vector<1x8x16x256xbf16>
    %87 = vector.shape_cast %86 : vector<1x8x16x256xbf16> to vector<8x16x256xbf16>
    %88 = vector.shape_cast %84 : vector<8x16x256xbf16> to vector<1x8x16x256xbf16>
    tpu.vector_store %arg4[%c0_33, %85, %c0_34, %c0_35], %88 {strides = array<i32>} : memref<1x16x16x256xbf16, #tpu.memory_space<vmem>>, vector<1x8x16x256xbf16>,
    %cst_36 = arith.constant dense<0.000000e+00> : vector<1x256xf32>
    %89 = tpu.matmul %18, %83, %cst_36 {dimension_numbers = #tpu.dot_dimension_numbers<[1], [0], [0], [1], [0, 0, 1, 1], [], []>} : vector<1x128xbf16>, vector<128x256xbf16>, vector<1x256xf32> -> vector<1x256xf32>
    %90 = arith.addf %19, %89 : vector<1x256xf32>
    %91 = arith.mulf %83, %83 : vector<128x256xbf16>
    %cst_37 = arith.constant dense<0.000000e+00> : vector<1x256xf32>
    %92 = tpu.matmul %18, %91, %cst_37 {dimension_numbers = #tpu.dot_dimension_numbers<[1], [0], [0], [1], [0, 0, 1, 1], [], []>} : vector<1x128xbf16>, vector<128x256xbf16>, vector<1x256xf32> -> vector<1x256xf32>
    %93 = arith.addf %19, %92 : vector<1x256xf32>
    %c1_i32_38 = arith.constant 1 : i32
    %c8_i32_39 = arith.constant 8 : i32
    %94 = arith.muli %c1_i32_38, %c8_i32_39 : i32
    %95 = tpu.assume_multiple %94, 8 : i32
    %cst_40 = arith.constant 0.000000e+00 : bf16
    %96 = vector.broadcast %cst_40 : bf16 to vector<8x16x256xbf16>
    %c0_i32_41 = arith.constant 0 : i32
    %97 = arith.addi %95, %c0_i32_41 : i32
    %c0_42 = arith.constant 0 : index
    %98 = arith.index_cast %97 : i32 to index
    %c0_43 = arith.constant 0 : index
    %c0_44 = arith.constant 0 : index
    %99 = vector.load %arg1[%c0_42, %98, %c0_43, %c0_44] : memref<1x18x24x256xbf16, #tpu.memory_space<vmem>>, vector<1x8x24x256xbf16>
    %100 = vector.shape_cast %99 : vector<1x8x24x256xbf16> to vector<8x24x256xbf16>
    %101 = vector.extract_strided_slice %100 {offsets = [0, 0, 0], sizes = [8, 16, 256], strides = [1, 1, 1]} : vector<8x24x256xbf16> to vector<8x16x256xbf16>
    %102 = vector.shape_cast %1 : vector<16x256xbf16> to vector<1x16x256xbf16>
    %103 = vector.broadcast %102 : vector<1x16x256xbf16> to vector<8x16x256xbf16>
    %104 = arith.mulf %101, %103 : vector<8x16x256xbf16>
    %105 = arith.addf %96, %104 : vector<8x16x256xbf16>
    %106 = vector.extract_strided_slice %100 {offsets = [0, 1, 0], sizes = [8, 16, 256], strides = [1, 1, 1]} : vector<8x24x256xbf16> to vector<8x16x256xbf16>
    %107 = vector.shape_cast %3 : vector<16x256xbf16> to vector<1x16x256xbf16>
    %108 = vector.broadcast %107 : vector<1x16x256xbf16> to vector<8x16x256xbf16>
    %109 = arith.mulf %106, %108 : vector<8x16x256xbf16>
    %110 = arith.addf %105, %109 : vector<8x16x256xbf16>
    %111 = vector.extract_strided_slice %100 {offsets = [0, 2, 0], sizes = [8, 16, 256], strides = [1, 1, 1]} : vector<8x24x256xbf16> to vector<8x16x256xbf16>
    %112 = vector.shape_cast %5 : vector<16x256xbf16> to vector<1x16x256xbf16>
    %113 = vector.broadcast %112 : vector<1x16x256xbf16> to vector<8x16x256xbf16>
    %114 = arith.mulf %111, %113 : vector<8x16x256xbf16>
    %115 = arith.addf %110, %114 : vector<8x16x256xbf16>
    %c1_i32_45 = arith.constant 1 : i32
    %116 = arith.addi %95, %c1_i32_45 : i32
    %c0_46 = arith.constant 0 : index
    %117 = arith.index_cast %116 : i32 to index
    %c0_47 = arith.constant 0 : index
    %c0_48 = arith.constant 0 : index
    %118 = vector.load %arg1[%c0_46, %117, %c0_47, %c0_48] : memref<1x18x24x256xbf16, #tpu.memory_space<vmem>>, vector<1x8x24x256xbf16>
    %119 = vector.shape_cast %118 : vector<1x8x24x256xbf16> to vector<8x24x256xbf16>
    %120 = vector.extract_strided_slice %119 {offsets = [0, 0, 0], sizes = [8, 16, 256], strides = [1, 1, 1]} : vector<8x24x256xbf16> to vector<8x16x256xbf16>
    %121 = vector.shape_cast %7 : vector<16x256xbf16> to vector<1x16x256xbf16>
    %122 = vector.broadcast %121 : vector<1x16x256xbf16> to vector<8x16x256xbf16>
    %123 = arith.mulf %120, %122 : vector<8x16x256xbf16>
    %124 = arith.addf %115, %123 : vector<8x16x256xbf16>
    %125 = vector.extract_strided_slice %119 {offsets = [0, 1, 0], sizes = [8, 16, 256], strides = [1, 1, 1]} : vector<8x24x256xbf16> to vector<8x16x256xbf16>
    %126 = vector.shape_cast %9 : vector<16x256xbf16> to vector<1x16x256xbf16>
    %127 = vector.broadcast %126 : vector<1x16x256xbf16> to vector<8x16x256xbf16>
    %128 = arith.mulf %125, %127 : vector<8x16x256xbf16>
    %129 = arith.addf %124, %128 : vector<8x16x256xbf16>
    %130 = vector.extract_strided_slice %119 {offsets = [0, 2, 0], sizes = [8, 16, 256], strides = [1, 1, 1]} : vector<8x24x256xbf16> to vector<8x16x256xbf16>
    %131 = vector.shape_cast %11 : vector<16x256xbf16> to vector<1x16x256xbf16>
    %132 = vector.broadcast %131 : vector<1x16x256xbf16> to vector<8x16x256xbf16>
    %133 = arith.mulf %130, %132 : vector<8x16x256xbf16>
    %134 = arith.addf %129, %133 : vector<8x16x256xbf16>
    %c2_i32_49 = arith.constant 2 : i32
    %135 = arith.addi %95, %c2_i32_49 : i32
    %c0_50 = arith.constant 0 : index
    %136 = arith.index_cast %135 : i32 to index
    %c0_51 = arith.constant 0 : index
    %c0_52 = arith.constant 0 : index
    %137 = vector.load %arg1[%c0_50, %136, %c0_51, %c0_52] : memref<1x18x24x256xbf16, #tpu.memory_space<vmem>>, vector<1x8x24x256xbf16>
    %138 = vector.shape_cast %137 : vector<1x8x24x256xbf16> to vector<8x24x256xbf16>
    %139 = vector.extract_strided_slice %138 {offsets = [0, 0, 0], sizes = [8, 16, 256], strides = [1, 1, 1]} : vector<8x24x256xbf16> to vector<8x16x256xbf16>
    %140 = vector.shape_cast %13 : vector<16x256xbf16> to vector<1x16x256xbf16>
    %141 = vector.broadcast %140 : vector<1x16x256xbf16> to vector<8x16x256xbf16>
    %142 = arith.mulf %139, %141 : vector<8x16x256xbf16>
    %143 = arith.addf %134, %142 : vector<8x16x256xbf16>
    %144 = vector.extract_strided_slice %138 {offsets = [0, 1, 0], sizes = [8, 16, 256], strides = [1, 1, 1]} : vector<8x24x256xbf16> to vector<8x16x256xbf16>
    %145 = vector.shape_cast %15 : vector<16x256xbf16> to vector<1x16x256xbf16>
    %146 = vector.broadcast %145 : vector<1x16x256xbf16> to vector<8x16x256xbf16>
    %147 = arith.mulf %144, %146 : vector<8x16x256xbf16>
    %148 = arith.addf %143, %147 : vector<8x16x256xbf16>
    %149 = vector.extract_strided_slice %138 {offsets = [0, 2, 0], sizes = [8, 16, 256], strides = [1, 1, 1]} : vector<8x24x256xbf16> to vector<8x16x256xbf16>
    %150 = vector.shape_cast %17 : vector<16x256xbf16> to vector<1x16x256xbf16>
    %151 = vector.broadcast %150 : vector<1x16x256xbf16> to vector<8x16x256xbf16>
    %152 = arith.mulf %149, %151 : vector<8x16x256xbf16>
    %153 = arith.addf %148, %152 : vector<8x16x256xbf16>
    %154 = vector.shape_cast %153 : vector<8x16x256xbf16> to vector<128x256xbf16>
    %c0_53 = arith.constant 0 : index
    %c0_54 = arith.constant 0 : index
    %155 = vector.load %arg3[%c0_53, %c0_54] : memref<256x256xbf16, #tpu.memory_space<vmem>>, vector<256x256xbf16>
    %cst_55 = arith.constant dense<0.000000e+00> : vector<128x256xf32>
    %156 = tpu.matmul %154, %155, %cst_55 {dimension_numbers = #tpu.dot_dimension_numbers<[1], [0], [0], [1], [0, 0, 1, 1], [], []>} : vector<128x256xbf16>, vector<256x256xbf16>, vector<128x256xf32> -> vector<128x256xf32>
    %157 = arith.truncf %156 : vector<128x256xf32> to vector<128x256xbf16>
    %158 = vector.shape_cast %157 : vector<128x256xbf16> to vector<8x16x256xbf16>
    %c0_56 = arith.constant 0 : index
    %159 = arith.index_cast %95 : i32 to index
    %c0_57 = arith.constant 0 : index
    %c0_58 = arith.constant 0 : index
    %160 = vector.load %arg4[%c0_56, %159, %c0_57, %c0_58] : memref<1x16x16x256xbf16, #tpu.memory_space<vmem>>, vector<1x8x16x256xbf16>
    %161 = vector.shape_cast %160 : vector<1x8x16x256xbf16> to vector<8x16x256xbf16>
    %162 = vector.shape_cast %158 : vector<8x16x256xbf16> to vector<1x8x16x256xbf16>
    tpu.vector_store %arg4[%c0_56, %159, %c0_57, %c0_58], %162 {strides = array<i32>} : memref<1x16x16x256xbf16, #tpu.memory_space<vmem>>, vector<1x8x16x256xbf16>,
    %cst_59 = arith.constant dense<0.000000e+00> : vector<1x256xf32>
    %163 = tpu.matmul %18, %157, %cst_59 {dimension_numbers = #tpu.dot_dimension_numbers<[1], [0], [0], [1], [0, 0, 1, 1], [], []>} : vector<1x128xbf16>, vector<128x256xbf16>, vector<1x256xf32> -> vector<1x256xf32>
    %164 = arith.addf %90, %163 : vector<1x256xf32>
    %165 = arith.mulf %157, %157 : vector<128x256xbf16>
    %cst_60 = arith.constant dense<0.000000e+00> : vector<1x256xf32>
    %166 = tpu.matmul %18, %165, %cst_60 {dimension_numbers = #tpu.dot_dimension_numbers<[1], [0], [0], [1], [0, 0, 1, 1], [], []>} : vector<1x128xbf16>, vector<128x256xbf16>, vector<1x256xf32> -> vector<1x256xf32>
    %167 = arith.addf %93, %166 : vector<1x256xf32>
    %c2_i32_61 = arith.constant 2 : i32
    %168 = vector.shape_cast %164 : vector<1x256xf32> to vector<1x1x256xf32>
    %c0_62 = arith.constant 0 : index
    %c0_63 = arith.constant 0 : index
    %c0_64 = arith.constant 0 : index
    %169 = vector.load %arg5[%c0_62, %c0_63, %c0_64] : memref<1x1x256xf32, #tpu.memory_space<vmem>>, vector<1x1x256xf32>
    tpu.vector_store %arg5[%c0_62, %c0_63, %c0_64], %168 {strides = array<i32>} : memref<1x1x256xf32, #tpu.memory_space<vmem>>, vector<1x1x256xf32>,
    %170 = vector.shape_cast %167 : vector<1x256xf32> to vector<1x1x256xf32>
    %c0_65 = arith.constant 0 : index
    %c0_66 = arith.constant 0 : index
    %c0_67 = arith.constant 0 : index
    %171 = vector.load %arg6[%c0_65, %c0_66, %c0_67] : memref<1x1x256xf32, #tpu.memory_space<vmem>>, vector<1x1x256xf32>
    tpu.vector_store %arg6[%c0_65, %c0_66, %c0_67], %170 {strides = array<i32>} : memref<1x1x256xf32, #tpu.memory_space<vmem>>, vector<1x1x256xf32>,
    return
  }
  func.func @transform_0(%arg0: i32) -> (i32, i32, i32, i32) {
    %c0_i32 = arith.constant 0 : i32
    %c0_i32_0 = arith.constant 0 : i32
    %c0_i32_1 = arith.constant 0 : i32
    %c0_i32_2 = arith.constant 0 : i32
    return %arg0, %c0_i32, %c0_i32_0, %c0_i32_1 : i32, i32, i32, i32
  }
  func.func @transform_1(%arg0: i32) -> (i32, i32, i32) {
    %c0_i32 = arith.constant 0 : i32
    %c0_i32_0 = arith.constant 0 : i32
    %c0_i32_1 = arith.constant 0 : i32
    %c0_i32_2 = arith.constant 0 : i32
    return %c0_i32, %c0_i32_0, %c0_i32_1 : i32, i32, i32
  }
  func.func @transform_2(%arg0: i32) -> (i32, i32) {
    %c0_i32 = arith.constant 0 : i32
    %c0_i32_0 = arith.constant 0 : i32
    %c0_i32_1 = arith.constant 0 : i32
    return %c0_i32, %c0_i32_0 : i32, i32
  }
  func.func @transform_3(%arg0: i32) -> (i32, i32, i32, i32) {
    %c0_i32 = arith.constant 0 : i32
    %c0_i32_0 = arith.constant 0 : i32
    %c0_i32_1 = arith.constant 0 : i32
    %c0_i32_2 = arith.constant 0 : i32
    return %arg0, %c0_i32, %c0_i32_0, %c0_i32_1 : i32, i32, i32, i32
  }
  func.func @transform_4(%arg0: i32) -> (i32, i32, i32) {
    %c0_i32 = arith.constant 0 : i32
    %c0_i32_0 = arith.constant 0 : i32
    %c0_i32_1 = arith.constant 0 : i32
    return %arg0, %c0_i32, %c0_i32_0 : i32, i32, i32
  }
  func.func @transform_5(%arg0: i32) -> (i32, i32, i32) {
    %c0_i32 = arith.constant 0 : i32
    %c0_i32_0 = arith.constant 0 : i32
    %c0_i32_1 = arith.constant 0 : i32
    return %arg0, %c0_i32, %c0_i32_0 : i32, i32, i32
  }
}

</mosaic_0001>

<bundles_post_ra>
// kernel: tpu_custom_call.1
= control target key start
LH: loop header
LB: loop body
LE: loop exit
PB: predicated region body
PF: predicated region fallthrough
CT: control target
= control target key end

     0   :  { %11 = vsyncpa [#allocation3], 0  ;;  %s7330_s0 = inlined_call_operand.hbm [shape: bf16[2,18,24,256], index: 0, kind: input, shape index: {}]   ;;  %s7331_s1 = inlined_call_operand.hbm [shape: bf16[9,16,256], index: 1, kind: input, shape index: {}]   ;;  %s7332_s2 = inlined_call_operand.hbm [shape: bf16[256,256], index: 2, kind: input, shape index: {}]   ;;  %s7333_s3 = inlined_call_operand.hbm [shape: bf16[2,16,16,256], index: 3, kind: output, shape index: {0}]   ;;  %s7334_s4 = inlined_call_operand.hbm [shape: f32[2,1,256], index: 4, kind: output, shape index: {1}]   ;;  %s7335_s5 = inlined_call_operand.hbm [shape: f32[2,1,256], index: 5, kind: output, shape index: {2}]  }
   0x1   :  { %13 = vsyncpa [#allocation3 + $0x1], 0 }
   0x2   :  { %14 = vsyncpa [#allocation6], 0 }
   0x3   :  { %15 = vsyncpa [#allocation4], 0 }
   0x4   :  { %17 = vsyncpa [#allocation4 + $0x1], 0 }
   0x5   :  { %18 = vsyncpa [#allocation10], 0 }
   0x6   :  { %20 = vsyncpa [#allocation10 + $0x1], 0  ;;  %s5303_s18 = smov 0   ;;  %s5305_s19 = smov 0  }
   0x7   :  { %s5307_s20 = smov 0   ;;  %s5309_s21 = smov 0  }
   0x8 LB: > { %s5324_s22 = sadd.s32 4294967295, %s5258_s21   ;;  %s7336_s23 = sadd.s32 4294967294, %s5258_s21   ;;  %s5258_s21 = sphi %s5309_s21, %s7487_s21   ;;  %s5254_s20 = sphi %s5307_s20, %s7486_s20   ;;  %s5250_s19 = sphi %s5305_s19, %s7485_s19   ;;  %s5246_s18 = sphi %s5303_s18, %s7484_s18  }
   0x9   : > { %p46_p0 = scmp.ne.s32.totalorder %s5250_s19, %s5246_s18  ;;  %p7338_p1 = scmp.eq.s32.totalorder %s5324_s22, 0 }
   0xa   : > { %p112_p2 = scmp.eq.s32.totalorder %s5324_s22, 1  ;;  %p118_p3 = scmp.eq.s32.totalorder %s7336_s23, 1 }
   0xb   : > { %p5335_p4 = por %p7338_p1, %p46_p0  ;;  %p4532_p5 = scmp.ge.s32.totalorder %s5258_s21, 1 }
   0xc   : > { %p5340_p6 = por %p118_p3, %p46_p0  ;;  %p177_p7 = scmp.lt.s32.totalorder %s5258_s21, 3 }
   0xd   : > { %s7396_s24 = scalar_select %p5335_p4, 1, 0 }
   0xe   : > { %s7397_s25 = scalar_select %p5340_p6, 1, 0 }
   0xf   : > { %p5345_p8 = pnand %p4532_p5, %p177_p7  ;;  %s5260_s27 = smov [#allocation5]  }
  0x10   : > { %s189_s28 = sshll.u32 %s5260_s27, 4  ;;  %s5261_s30 = smov [#allocation7]   ;;  %s190_s28 = int_to_ptr.vmem [resolvable:$true] %s189_s28 }
  0x11   : > { %s7398_s26 = scalar_select %p5345_p8, 1, 0 }
  0x12   : > { %p4920_p9 = pneg %p5345_p8  ;;  %s202_s6 = sshll.u32 %s5261_s30, 4  ;;  %s203_s6 = int_to_ptr.vmem [resolvable:$true] %s202_s6 }
  0x13   : > { %s5065_s7 = scalar_lea.vmem %s190_s28, 2304  ;;  %p5073_p5 = scmp.lt.s32.totalorder %s190_s28, %s190_s28 }
  0x14   : > { %p5354_p11 = pnand %p4920_p9, %p7338_p1  ;;  %p5066_p13 = scmp.ne.s32.totalorder %s190_s28, %s5065_s7 }
  0x15   : > { %p5074_p7 = scmp.lt.s32.totalorder %s5065_s7, %s5065_s7 }
  0x16   : > { %p5056_p12 = pneg %p5354_p11 }
  0x17   : > { %p5075_p10 = por %p5074_p7, %p5073_p5 }
  0x18   : > { %p5068_p0 = pnand %p5066_p13, %p5056_p12 }
  0x1a   : > { %p5069_p3 = pneg %p5068_p0 }
  0x1c   : > { %p5076_p9 = pnand %p5075_p10, %p5069_p3 }
  0x1e   : > { %5079 = shalt.err (!%p5076_p9)
}
  0x1f   : > { %s7337_s8 = smov 128   ;;  %s5263_s9 = smov 8  }
  0x20   : > { %4923 = dma.hbm_to_vmem [thread:$0]  (!%p5354_p11), %s7331_s1, 2304, %s190_s28, [#allocation6], %s7337_s8, %s7337_s8, %s5263_s9  }
  0x21   : > { %s5091_s12 = scalar_lea.vmem %s203_s6, 4096  ;;  %p5099_p10 = scmp.lt.s32.totalorder %s203_s6, %s203_s6 }
  0x22   : > { %p5092_p13 = scmp.ne.s32.totalorder %s203_s6, %s5091_s12  ;;  %p5100_p3 = scmp.lt.s32.totalorder %s5091_s12, %s5091_s12 }
  0x24   : > { %p5094_p0 = pnand %p5092_p13, %p5056_p12  ;;  %p5101_p7 = por %p5100_p3, %p5099_p10 }
  0x26   : > { %p5095_p5 = pneg %p5094_p0 }
  0x28   : > { %p5102_p9 = pnand %p5101_p7, %p5095_p5 }
  0x2a   : > { %5105 = shalt.err (!%p5102_p9)
}
  0x2b   : > { %4926 = dma.hbm_to_vmem [thread:$0]  (!%p5354_p11), %s7332_s2, 4096, %s203_s6, [#allocation6], %s7337_s8, %s7337_s8, %s5263_s9  }
  0x2c   : > { %s5383_s15 = sadd.s32 1, %s5258_s21   ;;  %s33_s16 = sadd.s32 1, %s5254_s20 }
  0x2d   : > { %s30_s17 = ssub.s32 %s5258_s21, %s5383_s15  ;;  %p40_p12 = scmp.ne.s32.totalorder %s5254_s20, %s5250_s19 }
  0x2e   : > { %p31_p13 = scmp.eq.s32.totalorder %s30_s17, 0  ;;  %p41_p0 = scmp.eq.s32.totalorder %s5258_s21, 0 }
  0x2f   : > { %p5393_p5 = por %p112_p2, %p40_p12  ;;  %p4943_p10 = scmp.lt.s32.totalorder %s5258_s21, 2 }
  0x30   : > { %s5399_s28 = scalar_select %p31_p13, %s5254_s20, %s33_s16  }
  0x31   : > { %s7400_s27 = scalar_select %p5393_p5, 1, 0 }
  0x32   : > { %p42_p3 = por %p41_p0, %p40_p12  ;;  %s216_s29 = sand.u32 1, %s5254_s20  }
  0x33   : > { %s4901_s30 = smul.u32 432, %s216_s29  ;;  %s5414_s16 = scalar_lea.sflag [#allocation3], %s216_s29 }
  0x34   : > { %s4902_s6 = smul.u32 6912, %s5258_s21  ;;  %p5403_p11 = pnand %p4943_p10, %p42_p3 }
  0x35   : > { %s220_s13 = scalar_lea.vmem [#allocation2], %s4901_s30 }
  0x36   : > { %s5410_s12 = scalar_lea.hbm %s7330_s0, %s4902_s6  ;;  %s227_s14 = sshll.u32 %s220_s13, 4  ;;  %s5412_s14 = int_to_ptr.vmem [resolvable:$true] %s227_s14 }
  0x37   : > { %s5106_s17 = scalar_lea.hbm %s5410_s12, 6912  ;;  %p5108_p7 = pneg %p5403_p11 }
  0x38   : > { %p5107_p2 = scmp.ne.s32.totalorder %s5410_s12, %s5106_s17  ;;  %s5111_s6 = scalar_lea.hbm %s7330_s0, 13824 }
  0x39   : > { %p5112_p13 = scmp.lt.s32.totalorder %s5410_s12, %s7330_s0  ;;  %p5113_p0 = scmp.lt.s32.totalorder %s5111_s6, %s5106_s17 }
  0x3a   : > { %p5109_p9 = pnand %p5108_p7, %p5107_p2 }
  0x3b   : > { %p5114_p10 = por %p5113_p0, %p5112_p13 }
  0x3c   : > { %p5110_p12 = pneg %p5109_p9 }
  0x3e   : > { %p5115_p3 = pnand %p5114_p10, %p5110_p12 }
  0x40   : > { %5118 = shalt.err (!%p5115_p3)
}
  0x41   : > { %s5119_s29 = scalar_lea.vmem %s5412_s14, 6912  ;;  %s5264_s30 = smov [#allocation2]  }
  0x42   : > { %p5120_p1 = scmp.ne.s32.totalorder %s5412_s14, %s5119_s29  ;;  %s5124_s13 = sshll.u32 %s5264_s30, 4  ;;  %s5125_s13 = int_to_ptr.vmem [resolvable:$false] %s5124_s13 }
  0x43   : > { %s5126_s23 = scalar_lea.vmem %s5125_s13, 13824  ;;  %p5127_p9 = scmp.lt.s32.totalorder %s5412_s14, %s5125_s13 }
  0x44   : > { %p5122_p6 = pnand %p5120_p1, %p5108_p7  ;;  %p5128_p5 = scmp.lt.s32.totalorder %s5126_s23, %s5119_s29 }
  0x46   : > { %p5123_p2 = pneg %p5122_p6  ;;  %p5129_p4 = por %p5128_p5, %p5127_p9 }
  0x48   : > { %p5130_p8 = pnand %p5129_p4, %p5123_p2 }
  0x4a   : > { %5133 = shalt.err (!%p5130_p8)
}
  0x4b   : > { %s7402_s8 = smov 128   ;;  %p7403_p1 = scmp.ne.s32.totalorder %s7398_s26, 0 }
  0x4c   : > { %4930 = dma.hbm_to_vmem [thread:$0]  (!%p5403_p11), %s5410_s12, 6912, %s5412_s14, %s5414_s16, %s7402_s8, %s7402_s8, %s5263_s9  }
  0x4d   : > { %239 = sbr.rel (%p7403_p1) target bundleno = 1050 (0x41a), region = 32 }
  0x52   : > { %s5441_s17 = sand.u32 1, %s5250_s19   ;;  %p7404_p4 = scmp.ne.s32.totalorder %s7396_s24, 0 }
  0x53   : > { %s4903_s10 = smul.u32 432, %s5441_s17  ;;  %s242_s6 = scalar_lea.sflag [#allocation3], %s5441_s17 }
  0x55   : > { %s5445_s11 = scalar_lea.vmem [#allocation2], %s4903_s10 }
  0x56   : > { %5229 = dma.done.wait (%p7404_p4), %s242_s6, 6912  }
  0x57   : > { %5231 = vsyncadd (%p7404_p4), %s242_s6, 4294960384  ;;  %p7405_p6 = scmp.eq.s32.totalorder %s5324_s22, 0 }
  0x59   : > { %5233 = dma.done.wait (%p7405_p6), [#allocation6], 6400   ;;  %p7406_p8 = pmov %p7405_p6 }
  0x5a   : > { %v4988_v0 = vld [vmem:[#allocation7 + $0x74] ss:$8 sps:$4 sm:$0xff]   ;;  %v4990_v1 = vld [vmem:[#allocation7 + $0x70] ss:$8 sps:$4 sm:$0xff]   ;;  %v4991_v2 = vld [vmem:[#allocation7 + $0x64] ss:$8 sps:$4 sm:$0xff]  }
  0x5b   : > { %5235 = vsyncadd (%p7406_p8), [#allocation6], 4294960896  ;;  %2023 = vmatprep.subr.bf16.mxu0 %v4988_v0  ;;  %3870 = vmatprep.subr.bf16.mxu1 %v4988_v0  ;;  %v4993_v3 = vld [vmem:[#allocation7 + $0x60] ss:$8 sps:$4 sm:$0xff]   ;;  %v4994_v4 = vld [vmem:[#allocation7 + $0x54] ss:$8 sps:$4 sm:$0xff]  }
  0x5c   : > { %2024 = vmatpush1.bf16.msra.mxu0 %v4990_v1  ;;  %3871 = vmatpush1.bf16.msra.mxu1 %v4990_v1  ;;  %v4996_v5 = vld [vmem:[#allocation7 + $0x50] ss:$8 sps:$4 sm:$0xff]   ;;  %v4997_v6 = vld [vmem:[#allocation7 + $0x44] ss:$8 sps:$4 sm:$0xff]   ;;  %v4999_v7 = vld [vmem:[#allocation7 + $0x40] ss:$8 sps:$4 sm:$0xff]  }
  0x5d   : > { %2025 = vmatprep.subr.bf16.mxu0 %v4991_v2  ;;  %3872 = vmatprep.subr.bf16.mxu1 %v4991_v2  ;;  %v5000_v8 = vld [vmem:[#allocation7 + $0x34] ss:$8 sps:$4 sm:$0xff]   ;;  %v5002_v9 = vld [vmem:[#allocation7 + $0x30] ss:$8 sps:$4 sm:$0xff]   ;;  %v5003_v10 = vld [vmem:[#allocation7 + $0x24] ss:$8 sps:$4 sm:$0xff]  }
  0x5e   : > { %v5005_v11 = vld [vmem:[#allocation7 + $0x20] ss:$8 sps:$4 sm:$0xff]   ;;  %v5006_v12 = vld [vmem:[#allocation7 + $0x14] ss:$8 sps:$4 sm:$0xff]   ;;  %vm377_vm0 = vsmask.f32 256 }
  0x5f   : > { %vm378_vm1 = vsmask.f32 4368  ;;  %v295_v13 = vld [vmem:[#allocation5 + $0x10] sm:$0xff]  ;;  %v296_v14 = vld [vmem:[#allocation5 + $0x18] sm:$0xff]  ;;  %v298_v15 = vld [vmem:[#allocation5 + $0x20] sm:$0xff]  ;;  %vm653_vm2 = vcmask 1040384  }
  0x60   : > { %2026 = vmatpush1.bf16.msra.mxu0 %v4993_v3  ;;  %3873 = vmatpush1.bf16.msra.mxu1 %v4993_v3  ;;  %vm654_vm3 = vcmask 1044484   ;;  %v5008_v16 = vld [vmem:[#allocation7 + $0x10] ss:$8 sps:$4 sm:$0xff]   ;;  %v381_v18 = vshrl.u32 %v295_v13, 16  ;;  %v384_v19 = vshll.u32 %v295_v13, 16  ;;  %v389_v20 = vshrl.u32 %v296_v14, 16  ;;  %vm5472_vm8 = vmor %vm377_vm0, %vm378_vm1 }
  0x61   : > { %2027 = vmatprep.subr.bf16.mxu0 %v4994_v4  ;;  %3874 = vmatprep.subr.bf16.mxu1 %v4994_v4  ;;  %v299_v17 = vld [vmem:[#allocation5 + $0x28] sm:$0xff]  ;;  %v5009_v21 = vld [vmem:[#allocation7 + $0x4] ss:$8 sps:$4 sm:$0xff]   ;;  %v5455_v22 = vld [vmem:[#allocation5 + $0x40] sm:$0xff]  ;;  %v392_v23 = vshll.u32 %v296_v14, 16  ;;  %v5457_v24 = vrot.slane %v298_v15, 7 }
  0x62   : > { %v658_v25 = vrot.slane %v299_v17, 7  ;;  %v5459_v26 = vld [vmem:[#allocation5] sm:$0xff]  ;;  %v5461_v27 = vld [vmem:[#allocation5 + $0x8] sm:$0xff]  ;;  %v383_v28 = vrot.slane %v381_v18, 7  ;;  %v391_v29 = vrot.slane %v389_v20, 7  ;;  %vm5465_vm6 = vmor %vm653_vm2, %vm654_vm3  ;;  %vm712_vm7 = vcmask 1042432  }
  0x63   : > { %vm424_vm4 = vsmask.f32 3328  ;;  %vm425_vm5 = vsmask.f32 7440  ;;  %v864_v31 = vshrl.u32 %v5455_v22, 16  ;;  %v657_v33 = vrot.slane %v5457_v24, 4 }
  0x64   : > { %2028 = vmatpush1.bf16.msra.mxu0 %v4996_v5  ;;  %3875 = vmatpush1.bf16.msra.mxu1 %v4996_v5  ;;  %v5477_v34 = vrot.slane %v658_v25, 4  ;;  %vm713_vm9 = vcmask 1046532   ;;  %v867_v35 = vshll.u32 %v5455_v22, 16  ;;  %v5011_v36 = vld [vmem:[#allocation7] ss:$8 sps:$4 sm:$0xff]   ;;  %v5482_v39 = vor.u32 %v384_v19, %v383_v28  ;;  %v5527_v20 = vld [vmem:[#allocation5 + $0x60] sm:$0xff]  ;;  %vm5536_vm11 = vmor %vm424_vm4, %vm425_vm5 }
  0x65   : > { %2029 = vmatprep.subr.bf16.mxu0 %v4997_v6  ;;  %3876 = vmatprep.subr.bf16.mxu1 %v4997_v6  ;;  %v321_v37 = vld [vmem:[%s5445_s11] sm:$0xff]  ;;  %v322_v38 = vld [vmem:[%s5445_s11 + $0x8] sm:$0xff]  ;;  %v387_v40 = vrot.slane %v383_v28, 4  ;;  %v394_v41 = vor.u32 %v392_v23, %v391_v29  ;;  %v5484_v42 = vrot.slane %v391_v29, 4  ;;  %v323_v44 = vld [vmem:[%s5445_s11 + $0x10] sm:$0xff]  ;;  %v5491_v47 = vsel %vm5465_vm6, %v657_v33, %v658_v25  ;;  %s4540_s24 = sshll.u32 %s5441_s17, 8 }
  0x66   : > { %v5012_v43 = vld [vmem:[#allocation7 + $0xf4] ss:$8 sps:$4 sm:$0xff]   ;;  %v345_v45 = vmul.bf16 %v321_v37, %v5459_v26  ;;  %v346_v46 = vmul.bf16 %v322_v38, %v5461_v27  ;;  %v5493_v48 = vrot.slane %v864_v31, 7  ;;  %v400_v50 = vmul.bf16 %v5482_v39, %v321_v37  ;;  %v5014_v53 = vld [vmem:[#allocation7 + $0xf0] ss:$8 sps:$4 sm:$0xff]   ;;  %vm5511_vm10 = vmor %vm712_vm7, %vm713_vm9  ;;  %s6991_s26 = scalar_lea.vmem [#allocation8], %s4540_s24 }
  0x67   : > { %v5497_v49 = vsel %vm5472_vm8, %v387_v40, %v394_v41  ;;  %v402_v51 = vmul.bf16 %v5484_v42, %v323_v44  ;;  %v664_v52 = vmul.bf16 %v5457_v24, %v321_v37  ;;  %v665_v57 = vmul.bf16 %v5491_v47, %v322_v38  ;;  %v5015_v58 = vld [vmem:[#allocation7 + $0xe4] ss:$8 sps:$4 sm:$0xff]   ;;  %v305_v6 = vld [vmem:[#allocation5 + $0x48] sm:$0xff]  ;;  %v5017_v19 = vld [vmem:[#allocation7 + $0xe0] ss:$8 sps:$4 sm:$0xff]   ;;  %s4898_s9 = sshll.u32 %s5324_s22, 12 }
  0x68   : > { %2030 = vmatpush1.bf16.msra.mxu0 %v4999_v7  ;;  %3877 = vmatpush1.bf16.msra.mxu1 %v4999_v7  ;;  %v5502_v54 = vadd.bf16 0, %v345_v45  ;;  %v5504_v55 = vadd.bf16 0, %v346_v46  ;;  %v401_v56 = vmul.bf16 %v5497_v49, %v322_v38  ;;  %v428_v59 = vshrl.u32 %v400_v50, 16  ;;  %v5515_v0 = vld [vmem:[#allocation5 + $0x30] sm:$0xff]  ;;  %v5517_v1 = vld [vmem:[#allocation5 + $0x38] sm:$0xff]  ;;  %s7229_s14 = scalar_lea.hbm %s7333_s3, %s4898_s9  ;;  %s4344_s16 = sshll.u32 %s6991_s26, 4  ;;  %s7232_s16 = int_to_ptr.vmem [resolvable:$true] %s4344_s16 }
  0x69   : > { %2031 = vmatprep.subr.bf16.mxu0 %v5000_v8  ;;  %3878 = vmatprep.subr.bf16.mxu1 %v5000_v8  ;;  %v431_v60 = vshll.u32 %v400_v50, 16  ;;  %v447_v61 = vshll.u32 %v402_v51, 16  ;;  %v666_v62 = vmul.bf16 %v5477_v34, %v323_v44  ;;  %v4543_v4 = vrot.slane %v664_v52, 9  ;;  %v307_v7 = vld [vmem:[#allocation5 + $0x50] sm:$0xff]  ;;  %v5522_v17 = vld [vmem:[%s5445_s11 + $0x18] sm:$0xff]  ;;  %s4321_s29 = scalar_lea.sflag [#allocation4], %s5441_s17 }
  0x6a   : > { %v437_v2 = vshll.u32 %v401_v56, 16  ;;  %v441_v3 = vshrl.u32 %v401_v56, 16  ;;  %v717_v5 = vrot.slane %v665_v57, 5  ;;  %v430_v8 = vrot.slane %v428_v59, 4  ;;  %v5525_v18 = vld [vmem:[%s5445_s11 + $0x20] sm:$0xff]  ;;  %v5550_v45 = vld [vmem:[%s5445_s11 + $0x30] sm:$0xff] }
  0x6b   : > { %v831_v23 = vmul.bf16 %v5522_v17, %v5515_v0  ;;  %v832_v25 = vmul.bf16 %v5525_v18, %v5517_v1  ;;  %v870_v28 = vrot.slane %v5493_v48, 4  ;;  %v5018_v29 = vld [vmem:[#allocation7 + $0xd4] ss:$8 sps:$4 sm:$0xff]   ;;  %v5545_v37 = vor.u32 %v867_v35, %v5493_v48  ;;  %v5020_v22 = vld [vmem:[#allocation7 + $0xd0] ss:$8 sps:$4 sm:$0xff]   ;;  %s5134_s30 = scalar_lea.vmem %s7232_s16, 4096 }
  0x6c   : > { %2032 = vmatpush1.bf16.msra.mxu0 %v5002_v9  ;;  %3879 = vmatpush1.bf16.msra.mxu1 %v5002_v9  ;;  %v433_v9 = vrot.slane %v431_v60, 5  ;;  %v439_v13 = vrot.slane %v437_v2, 5  ;;  %v443_v14 = vrot.slane %v441_v3, 4  ;;  %v718_v15 = vsel %vm5511_vm10, %v4543_v4, %v717_v5  ;;  %v5559_v48 = vld [vmem:[%s5445_s11 + $0x28] sm:$0xff]  ;;  %p5135_p5 = scmp.ne.s32.totalorder %s7232_s16, %s5134_s30  ;;  %p7478_p11 = scmp.ne.s32.totalorder %s7400_s27, 0 }
  0x6d   : > { %2033 = vmatprep.subr.bf16.mxu0 %v5003_v10  ;;  %3880 = vmatprep.subr.bf16.mxu1 %v5003_v10  ;;  %v449_v10 = vrot.slane %v447_v61, 5  ;;  %v872_v38 = vshrl.u32 %v305_v6, 16  ;;  %v875_v41 = vshll.u32 %v305_v6, 16  ;;  %v883_v51 = vmul.bf16 %v5522_v17, %v5545_v37  ;;  %v5033_v32 = vld [vmem:[#allocation7 + $0x84] ss:$8 sps:$4 sm:$0xff]   ;;  %s5267_s13 = smov [#allocation8]  }
  0x6e   : > { %v444_v33 = vor.u32 %v443_v14, %v439_v13  ;;  %v1305_v52 = vmul.bf16 %v5550_v45, %v5527_v20  ;;  %v5024_v14 = vld [vmem:[#allocation7 + $0xb4] ss:$8 sps:$4 sm:$0xff]   ;;  %p5136_p7 = pnand %p5135_p5, %p7478_p11  ;;  %s5138_s23 = sshll.u32 %s5267_s13, 4  ;;  %s5139_s23 = int_to_ptr.vmem [resolvable:$false] %s5138_s23 }
  0x6f   : > { %v874_v50 = vrot.slane %v872_v38, 7  ;;  %v908_v3 = vshrl.u32 %v883_v51, 16  ;;  %v911_v4 = vshll.u32 %v883_v51, 16  ;;  %s5140_s8 = scalar_lea.vmem %s5139_s23, 8192  ;;  %p5141_p13 = scmp.lt.s32.totalorder %s7232_s16, %s5139_s23 }
  0x70   : > { %2034 = vmatpush1.bf16.msra.mxu0 %v5005_v11  ;;  %3881 = vmatpush1.bf16.msra.mxu1 %v5005_v11  ;;  %v720_v11 = vrot.slane %v666_v62, 5  ;;  %v445_v46 = vrot.slane %v444_v33, 4  ;;  %p5137_p12 = pneg %p5136_p7  ;;  %p5142_p0 = scmp.lt.s32.totalorder %s5140_s8, %s5134_s30 }
  0x71   : > { %2035 = vmatprep.subr.bf16.mxu0 %v5006_v12  ;;  %3882 = vmatprep.subr.bf16.mxu1 %v5006_v12  ;;  %v308_v12 = vld [vmem:[#allocation5 + $0x58] sm:$0xff]  ;;  %v877_v61 = vor.u32 %v875_v41, %v874_v50  ;;  %v5569_v62 = vrot.slane %v874_v50, 4 }
  0x72   : > { %v1135_v44 = vrot.slane %v308_v12, 7  ;;  %v450_v59 = vsel %vm5536_vm11, %v445_v46, %v449_v10  ;;  %v910_v12 = vrot.slane %v908_v3, 4  ;;  %v5593_v41 = vld [vmem:[%s5445_s11 + $0x38] sm:$0xff]  ;;  %p5143_p10 = por %p5142_p0, %p5141_p13 }
  0x73   : > { %v636_v2 = vadd.bf16 %v450_v59, %v5504_v55  ;;  %v5023_v55 = vld [vmem:[#allocation7 + $0xc0] ss:$8 sps:$4 sm:$0xff]   ;;  %v317_v59 = vld [vmem:[#allocation5 + $0x88] sm:$0xff] }
  0x74   : > { %2036 = vmatpush1.bf16.msra.mxu0 %v5008_v16  ;;  %3883 = vmatpush1.bf16.msra.mxu1 %v5008_v16  ;;  %v719_v16 = vrot.slane %v717_v5, 4  ;;  %v5562_v56 = vrot.slane %v1135_v44, 4  ;;  %p5144_p3 = pnand %p5143_p10, %p5137_p12 }
  0x75   : > { %2037 = vmatprep.subr.bf16.mxu0 %v5009_v21  ;;  %3884 = vmatprep.subr.bf16.mxu1 %v5009_v21  ;;  %v434_v21 = vor.u32 %v433_v9, %v430_v8  ;;  %v885_v8 = vmul.bf16 %v5559_v48, %v5569_v62  ;;  %v5584_v9 = vld [vmem:[#allocation5 + $0x68] sm:$0xff] }
  0x77   : > { %v435_v40 = vrot.slane %v434_v21, 4  ;;  %v1143_v21 = vmul.bf16 %v5559_v48, %v5562_v56 }
  0x78   : > { %2038 = vmatpush1.bf16.msra.mxu0 %v5011_v36  ;;  %3885 = vmatpush1.bf16.msra.mxu1 %v5011_v36  ;;  %v721_v36 = vsel %vm5511_vm10, %v719_v16, %v720_v11 }
  0x79   : > { %2039 = vmatprep.subr.bf16.mxu0 %v5012_v43  ;;  %3886 = vmatprep.subr.bf16.mxu1 %v5012_v43  ;;  %v5547_v43 = vrot.slane %v307_v7, 7  ;;  %v440_v35 = vsel %vm5536_vm11, %v435_v40, %v439_v13  ;;  %v5578_v7 = vsel %vm5472_vm8, %v870_v28, %v877_v61  ;;  %v788_v10 = vadd.bf16 %v721_v36, %v636_v2 }
  0x7a   : > { %v635_v60 = vadd.bf16 %v440_v35, %v5502_v54  ;;  %v884_v11 = vmul.bf16 %v5525_v18, %v5578_v7  ;;  %v913_v13 = vrot.slane %v911_v4, 5  ;;  %v1194_v51 = vrot.slane %v1143_v21, 5 }
  0x7b   : > { %v1141_v57 = vmul.bf16 %v5522_v17, %v5547_v43  ;;  %v5590_v33 = vadd.bf16 %v832_v25, %v788_v10 }
  0x7c   : > { %2040 = vmatpush2.bf16.msra.mxu0 %v5014_v53  ;;  %3887 = vmatpush2.bf16.msra.mxu1 %v5014_v53  ;;  %v1134_v53 = vrot.slane %v5547_v43, 4  ;;  %v787_v6 = vadd.bf16 %v718_v15, %v635_v60  ;;  %v313_v15 = vld [vmem:[#allocation5 + $0x70] sm:$0xff]  ;;  %v914_v36 = vor.u32 %v913_v13, %v910_v12  ;;  %v917_v38 = vshll.u32 %v884_v11, 16 }
  0x7d   : > { %2041 = vmatprep.subr.bf16.mxu0 %v5015_v58  ;;  %3888 = vmatprep.subr.bf16.mxu1 %v5015_v58  ;;  %v5021_v58 = vld [vmem:[#allocation7 + $0xc4] ss:$8 sps:$4 sm:$0xff]   ;;  %v4575_v28 = vrot.slane %v1141_v57, 9  ;;  %v921_v40 = vshrl.u32 %v884_v11, 16  ;;  %v1338_v25 = vshrl.u32 %v313_v15, 16  ;;  %v1341_v2 = vshll.u32 %v313_v15, 16 }
  0x7e   : > { %v5574_v5 = vsel %vm5465_vm6, %v1134_v53, %v1135_v44  ;;  %v847_v16 = vadd.bf16 %v831_v23, %v787_v6  ;;  %v5026_v44 = vld [vmem:[#allocation7 + $0xb0] ss:$8 sps:$4 sm:$0xff]   ;;  %v1306_v23 = vmul.bf16 %v5593_v41, %v5584_v9  ;;  %v915_v35 = vrot.slane %v914_v36, 4  ;;  %v5029_v13 = vld [vmem:[#allocation7 + $0xa0] ss:$8 sps:$4 sm:$0xff]  }
  0x7f   : > { %v1142_v54 = vmul.bf16 %v5525_v18, %v5574_v5  ;;  %v919_v53 = vrot.slane %v917_v38, 5  ;;  %v923_v57 = vrot.slane %v921_v40, 4 }
  0x80   : > { %2042 = vmatpush2.bf16.msra.mxu0 %v5017_v19  ;;  %3889 = vmatpush2.bf16.msra.mxu1 %v5017_v19  ;;  %v927_v19 = vshll.u32 %v885_v8, 16  ;;  %v1340_v8 = vrot.slane %v1338_v25, 7  ;;  %v5032_v25 = vld [vmem:[#allocation7 + $0x90] ss:$8 sps:$4 sm:$0xff]  }
  0x81   : > { %2043 = vmatprep.subr.bf16.mxu0 %v5018_v29  ;;  %3890 = vmatprep.subr.bf16.mxu1 %v5018_v29  ;;  %v314_v29 = vld [vmem:[#allocation5 + $0x78] sm:$0xff]  ;;  %v1191_v50 = vrot.slane %v1142_v54, 5  ;;  %v920_v4 = vsel %vm5536_vm11, %v915_v35, %v919_v53  ;;  %v924_v6 = vor.u32 %v923_v57, %v919_v53 }
  0x82   : > { %v929_v46 = vrot.slane %v927_v19, 5  ;;  %v1346_v3 = vshrl.u32 %v314_v29, 16  ;;  %v1349_v54 = vshll.u32 %v314_v29, 16  ;;  %v5606_v19 = vld [vmem:[%s5445_s11 + $0x40] sm:$0xff]  ;;  %v5608_v15 = vor.u32 %v1341_v2, %v1340_v8 }
  0x83   : > { %v1192_v60 = vsel %vm5511_vm10, %v4575_v28, %v1191_v50  ;;  %v1193_v61 = vrot.slane %v1191_v50, 4  ;;  %7415 = vst [vmem:[#allocation16_spill] sm:$0xff] %v5606_v19  ;;  %v1344_v21 = vrot.slane %v1340_v8, 4  ;;  %v1609_v28 = vrot.slane %v317_v59, 7  ;;  %v5030_v29 = vld [vmem:[#allocation7 + $0x94] ss:$8 sps:$4 sm:$0xff]  }
  0x84   : > { %2044 = vmatpush2.bf16.msra.mxu0 %v5020_v22  ;;  %3891 = vmatpush2.bf16.msra.mxu1 %v5020_v22  ;;  %v316_v22 = vld [vmem:[#allocation5 + $0x80] sm:$0xff]  ;;  %v1348_v11 = vrot.slane %v1346_v3, 7  ;;  %v1357_v50 = vmul.bf16 %v5550_v45, %v5608_v15 }
  0x85   : > { %2045 = vmatprep.subr.bf16.mxu0 %v5021_v58  ;;  %3892 = vmatprep.subr.bf16.mxu1 %v5021_v58  ;;  %v5027_v58 = vld [vmem:[#allocation7 + $0xa4] ss:$8 sps:$4 sm:$0xff]   ;;  %v1195_v10 = vsel %vm5511_vm10, %v1193_v61, %v1194_v51  ;;  %v5603_v12 = vrot.slane %v316_v22, 7  ;;  %v5617_v51 = vrot.slane %v1609_v28, 4 }
  0x86   : > { %v1351_v36 = vor.u32 %v1349_v54, %v1348_v11  ;;  %v5610_v38 = vrot.slane %v1348_v11, 4  ;;  %v1382_v59 = vshrl.u32 %v1357_v50, 16 }
  0x87   : > { %v1608_v40 = vrot.slane %v5603_v12, 4  ;;  %v1615_v22 = vmul.bf16 %v5550_v45, %v5603_v12  ;;  %v1617_v3 = vmul.bf16 %v5606_v19, %v5617_v51 }
  0x88   : > { %2046 = vmatpush2.bf16.msra.mxu0 %v5023_v55  ;;  %3893 = vmatpush2.bf16.msra.mxu1 %v5023_v55  ;;  %v1115_v55 = vadd.bf16 %v920_v4, %v847_v16  ;;  %7416 = vst [vmem:[#allocation17_spill] sm:$0xff] %v5610_v38  ;;  %v5627_v57 = vsel %vm5472_vm8, %v1344_v21, %v1351_v36  ;;  %v1384_v4 = vrot.slane %v1382_v59, 4  ;;  %v5035_v21 = vld [vmem:[#allocation7 + $0x80] ss:$8 sps:$4 sm:$0xff]  }
  0x89   : > { %2047 = vmatprep.subr.bf16.mxu0 %v5024_v14  ;;  %3894 = vmatprep.subr.bf16.mxu1 %v5024_v14  ;;  %v925_v14 = vrot.slane %v924_v6, 4  ;;  %v4607_v11 = vrot.slane %v1615_v22, 9  ;;  %v1668_v36 = vrot.slane %v1617_v3, 5 }
  0x8a   : > { %v1261_v16 = vadd.bf16 %v1192_v60, %v1115_v55  ;;  %v1385_v60 = vshll.u32 %v1357_v50, 16 }
  0x8c   : > { %2048 = vmatpush2.bf16.msra.mxu0 %v5026_v44  ;;  %3895 = vmatpush2.bf16.msra.mxu1 %v5026_v44  ;;  %v930_v44 = vsel %vm5536_vm11, %v925_v14, %v929_v46  ;;  %v1321_v53 = vadd.bf16 %v1305_v52, %v1261_v16  ;;  %v1359_v46 = vmul.bf16 %v5606_v19, %v5610_v38  ;;  %v1387_v6 = vrot.slane %v1385_v60, 5  ;;  %v4680_v14 = vld [vmem:[%s5445_s11 + $0xc8] sm:$0xff] }
  0x8d   : > { %2049 = vmatprep.subr.bf16.mxu0 %v5027_v58  ;;  %3896 = vmatprep.subr.bf16.mxu1 %v5027_v58  ;;  %v1116_v35 = vadd.bf16 %v930_v44, %v5590_v33  ;;  %v1358_v58 = vmul.bf16 %v5593_v41, %v5627_v57  ;;  %v5635_v33 = vsel %vm5465_vm6, %v1608_v40, %v1609_v28  ;;  %v4681_v40 = vld [vmem:[%s5445_s11 + $0xd0] sm:$0xff] }
  0x8e   : > { %v1401_v61 = vshll.u32 %v1359_v46, 16  ;;  %v1616_v2 = vmul.bf16 %v5593_v41, %v5635_v33  ;;  %v1388_v28 = vor.u32 %v1387_v6, %v1384_v4  ;;  %v2295_v22 = vmul.bf16 %v4680_v14, %v5461_v27 }
  0x8f   : > { %v1262_v52 = vadd.bf16 %v1195_v10, %v1116_v35  ;;  %v1391_v8 = vshll.u32 %v1358_v58, 16  ;;  %v1395_v30 = vshrl.u32 %v1358_v58, 16  ;;  %v4679_v10 = vld [vmem:[%s5445_s11 + $0xc0] sm:$0xff]  ;;  %v2327_v58 = vmul.bf16 %v4680_v14, %v5497_v49 }
  0x90   : > { %2050 = vmatpush2.bf16.msra.mxu0 %v5029_v13  ;;  %3897 = vmatpush2.bf16.msra.mxu1 %v5029_v13  ;;  %v1403_v55 = vrot.slane %v1401_v61, 5  ;;  %v1665_v13 = vrot.slane %v1616_v2, 5  ;;  %v1389_v35 = vrot.slane %v1388_v28, 4 }
  0x91   : > { %2051 = vmatprep.subr.bf16.mxu0 %v5030_v29  ;;  %3898 = vmatprep.subr.bf16.mxu1 %v5030_v29  ;;  %v1322_v54 = vadd.bf16 %v1306_v23, %v1262_v52  ;;  %v1393_v29 = vrot.slane %v1391_v8, 5  ;;  %v1397_v16 = vrot.slane %v1395_v30, 4  ;;  %v2294_v23 = vmul.bf16 %v4679_v10, %v5459_v26 }
  0x92   : > { %v1666_v44 = vsel %vm5511_vm10, %v4607_v11, %v1665_v13  ;;  %v1667_v50 = vrot.slane %v1665_v13, 4  ;;  %v2311_v52 = vadd.bf16 0, %v2295_v22  ;;  %v2360_v8 = vshll.u32 %v2327_v58, 16 }
  0x93   : > { %v1398_v46 = vor.u32 %v1397_v16, %v1393_v29  ;;  %v2310_v60 = vadd.bf16 0, %v2294_v23  ;;  %v1394_v61 = vsel %vm5536_vm11, %v1389_v35, %v1393_v29  ;;  %v2364_v30 = vshrl.u32 %v2327_v58, 16  ;;  %v5669_v58 = vld [vmem:[%s5445_s11 + $0xe0] sm:$0xff] }
  0x94   : > { %2052 = vmatpush2.bf16.msra.mxu0 %v5032_v25  ;;  %3899 = vmatpush2.bf16.msra.mxu1 %v5032_v25  ;;  %v2326_v25 = vmul.bf16 %v4679_v10, %v5482_v39  ;;  %v1669_v59 = vsel %vm5511_vm10, %v1667_v50, %v1668_v36  ;;  %v1589_v6 = vadd.bf16 %v1394_v61, %v1321_v53  ;;  %v2362_v29 = vrot.slane %v2360_v8, 5 }
  0x95   : > { %2053 = vmatprep.subr.bf16.mxu0 %v5033_v32  ;;  %3900 = vmatprep.subr.bf16.mxu1 %v5033_v32  ;;  %v2328_v32 = vmul.bf16 %v4681_v40, %v5484_v42  ;;  %v1399_v2 = vrot.slane %v1398_v46, 4  ;;  %v2366_v23 = vrot.slane %v2364_v30, 4  ;;  %v2575_v35 = vmul.bf16 %v4680_v14, %v5491_v47  ;;  %7418 = vst [vmem:[#allocation19_spill] sm:$0xff] %v5669_v58 }
  0x96   : > { %v2351_v3 = vshrl.u32 %v2326_v25, 16  ;;  %v2354_v4 = vshll.u32 %v2326_v25, 16  ;;  %v5661_v50 = vadd.bf16 %v1666_v44, %v1589_v6  ;;  %v2576_v46 = vmul.bf16 %v4681_v40, %v5477_v34  ;;  %v5666_v25 = vld [vmem:[%s5445_s11 + $0xd8] sm:$0xff] }
  0x97   : > { %v2370_v11 = vshll.u32 %v2328_v32, 16  ;;  %v1404_v13 = vsel %vm5536_vm11, %v1399_v2, %v1403_v55  ;;  %7417 = vst [vmem:[#allocation18_spill] sm:$0xff] %v5666_v25  ;;  %v2367_v32 = vor.u32 %v2366_v23, %v2362_v29  ;;  %v2624_v2 = vrot.slane %v2575_v35, 5 }
  0x98   : > { %2054 = vmatpush2.bf16.msra.mxu0 %v5035_v21  ;;  %3901 = vmatpush2.bf16.msra.mxu1 %v5035_v21  ;;  %v2353_v28 = vrot.slane %v2351_v3, 4  ;;  %v2356_v16 = vrot.slane %v2354_v4, 5  ;;  %v2574_v21 = vmul.bf16 %v4679_v10, %v5457_v24  ;;  %v1590_v36 = vadd.bf16 %v1404_v13, %v1322_v54  ;;  %v5674_v10 = vld [vmem:[%s5445_s11 + $0xe8] sm:$0xff] }
  0x99   : > { %v2372_v53 = vrot.slane %v2370_v11, 5  ;;  %7419 = vst [vmem:[#allocation20_spill] sm:$0xff] %v5674_v10  ;;  %v2738_v54 = vmul.bf16 %v5666_v25, %v5515_v0  ;;  %v2627_v3 = vrot.slane %v2576_v46, 5  ;;  %v2739_v14 = vmul.bf16 %v5669_v58, %v5517_v1 }
  0x9a   : > { %v2357_v22 = vor.u32 %v2356_v16, %v2353_v28  ;;  %v5671_v55 = vadd.bf16 %v1669_v59, %v1590_v36  ;;  %v4703_v61 = vrot.slane %v2574_v21, 9  ;;  %v2368_v4 = vrot.slane %v2367_v32, 4 }
  0x9b   : > { %v2770_v59 = vmul.bf16 %v5666_v25, %v5545_v37  ;;  %v2771_v6 = vmul.bf16 %v5669_v58, %v5578_v7  ;;  %v2626_v11 = vrot.slane %v2624_v2, 4  ;;  %v2772_v13 = vmul.bf16 %v5674_v10, %v5569_v62 }
  0x9c   : > { %v2358_v44 = vrot.slane %v2357_v22, 4  ;;  %v4616_v40 = vcombine.high %v5661_v50, %v5671_v55  ;;  %v2625_v30 = vsel %vm5511_vm10, %v4703_v61, %v2624_v2  ;;  %v2373_v28 = vsel %vm5536_vm11, %v2368_v4, %v2372_v53 }
  0x9d   : > { %v2795_v21 = vshrl.u32 %v2770_v59, 16  ;;  %v2798_v36 = vshll.u32 %v2770_v59, 16  ;;  %v2559_v23 = vadd.bf16 %v2373_v28, %v2311_v52  ;;  %v2628_v22 = vsel %vm5511_vm10, %v2626_v11, %v2627_v3  ;;  %v5701_v59 = vld [vmem:[%s5445_s11 + $0xf0] sm:$0xff]  ;;  %v5709_v28 = vld [vmem:[%s5445_s11 + $0x100] sm:$0xff] }
  0x9e   : > { %v2363_v8 = vsel %vm5536_vm11, %v2358_v44, %v2362_v29  ;;  %2055 = vmatprep.mubr.bf16.mxu0 %v4616_v40  ;;  %v2804_v29 = vshll.u32 %v2771_v6, 16  ;;  %v2808_v35 = vshrl.u32 %v2771_v6, 16  ;;  %v2814_v44 = vshll.u32 %v2772_v13, 16  ;;  %v5704_v6 = vld [vmem:[%s5445_s11 + $0xf8] sm:$0xff] }
  0x9f   : > { %v2558_v16 = vadd.bf16 %v2363_v8, %v2310_v60  ;;  %v2797_v32 = vrot.slane %v2795_v21, 4  ;;  %v2800_v61 = vrot.slane %v2798_v36, 5  ;;  %v2695_v2 = vadd.bf16 %v2628_v22, %v2559_v23 }
  0xa0   : > { %v2806_v40 = vrot.slane %v2804_v29, 5  ;;  %v2810_v19 = vrot.slane %v2808_v35, 4  ;;  %v3018_v60 = vmul.bf16 %v5666_v25, %v5547_v43  ;;  %v2816_v4 = vrot.slane %v2814_v44, 5 }
  0xa1   : > { %v2694_v46 = vadd.bf16 %v2625_v30, %v2558_v16  ;;  %v2801_v52 = vor.u32 %v2800_v61, %v2797_v32  ;;  %v3019_v3 = vmul.bf16 %v5669_v58, %v5574_v5  ;;  %v2755_v8 = vadd.bf16 %v2739_v14, %v2695_v2 }
  0xa2   : > { %v2811_v30 = vor.u32 %v2810_v19, %v2806_v40  ;;  %v3020_v11 = vmul.bf16 %v5674_v10, %v5562_v56  ;;  %v4735_v13 = vrot.slane %v3018_v60, 9  ;;  %v3183_v36 = vmul.bf16 %v5704_v6, %v5584_v9 }
  0xa3   : > { %v2754_v53 = vadd.bf16 %v2738_v54, %v2694_v46  ;;  %v2802_v16 = vrot.slane %v2801_v52, 4  ;;  %v3068_v21 = vrot.slane %v3019_v3, 5  ;;  %v3182_v54 = vmul.bf16 %v5701_v59, %v5527_v20 }
  0xa4   : > { %v2812_v23 = vrot.slane %v2811_v30, 4  ;;  %v3071_v22 = vrot.slane %v3020_v11, 5  ;;  %v3214_v14 = vmul.bf16 %v5701_v59, %v5608_v15  ;;  %v3215_v19 = vmul.bf16 %v5704_v6, %v5627_v57 }
  0xa5   : > { %v2807_v29 = vsel %vm5536_vm11, %v2802_v16, %v2806_v40  ;;  %v3069_v35 = vsel %vm5511_vm10, %v4735_v13, %v3068_v21  ;;  %v3070_v46 = vrot.slane %v3068_v21, 4  ;;  %v3216_v32 = vmul.bf16 %v5709_v28, %v5610_v38 }
  0xa6   : > { %v2817_v61 = vsel %vm5536_vm11, %v2812_v23, %v2816_v4  ;;  %v3002_v44 = vadd.bf16 %v2807_v29, %v2754_v53  ;;  %v3239_v2 = vshrl.u32 %v3214_v14, 16  ;;  %v3242_v60 = vshll.u32 %v3214_v14, 16 }
  0xa7   : > { %v3003_v52 = vadd.bf16 %v2817_v61, %v2755_v8  ;;  %v3072_v3 = vsel %vm5511_vm10, %v3070_v46, %v3071_v22  ;;  %v3248_v30 = vshll.u32 %v3215_v19, 16  ;;  %v3252_v11 = vshrl.u32 %v3215_v19, 16 }
  0xa8   : > { %v3138_v40 = vadd.bf16 %v3069_v35, %v3002_v44  ;;  %v3241_v16 = vrot.slane %v3239_v2, 4  ;;  %v3244_v10 = vrot.slane %v3242_v60, 5  ;;  %v3258_v13 = vshll.u32 %v3216_v32, 16 }
  0xa9   : > { %v3139_v21 = vadd.bf16 %v3072_v3, %v3003_v52  ;;  %v3250_v58 = vrot.slane %v3248_v30, 5  ;;  %v3254_v25 = vrot.slane %v3252_v11, 4  ;;  %v3462_v38 = vmul.bf16 %v5701_v59, %v5603_v12 }
  0xaa   : > { %v3198_v4 = vadd.bf16 %v3182_v54, %v3138_v40  ;;  %v3245_v53 = vor.u32 %v3244_v10, %v3241_v16  ;;  %v3260_v23 = vrot.slane %v3258_v13, 5  ;;  %v3463_v8 = vmul.bf16 %v5704_v6, %v5635_v33 }
  0xab   : > { %v3199_v14 = vadd.bf16 %v3183_v36, %v3139_v21  ;;  %v3255_v22 = vor.u32 %v3254_v25, %v3250_v58  ;;  %v3464_v19 = vmul.bf16 %v5709_v28, %v5617_v51  ;;  %v4767_v29 = vrot.slane %v3462_v38, 9 }
  0xac   : > { %v3246_v35 = vrot.slane %v3245_v53, 4  ;;  %v3512_v46 = vrot.slane %v3463_v8, 5  ;;  %v4615_v32 = vcombine.low %v5661_v50, %v5671_v55  ;;  %v347_v61 = vmul.bf16 %v5522_v17, %v5459_v26 }
  0xad   : > { %v3256_v54 = vrot.slane %v3255_v22, 4  ;;  %v3515_v10 = vrot.slane %v3464_v19, 5  ;;  %v348_v44 = vmul.bf16 %v5525_v18, %v5461_v27  ;;  %v403_v25 = vmul.bf16 %v5522_v17, %v5482_v39 }
  0xae   : > { %v3251_v36 = vsel %vm5536_vm11, %v3246_v35, %v3250_v58  ;;  %v3513_v38 = vsel %vm5511_vm10, %v4767_v29, %v3512_v46  ;;  %v3514_v2 = vrot.slane %v3512_v46, 4  ;;  %2056 = vmatmul.mubr.bf16.vlgmr.msra.gmra.mxu0 %v4615_v32  ;;  %v363_v50 = vadd.bf16 0, %v347_v61 }
  0xaf   : > { %v3261_v55 = vsel %vm5536_vm11, %v3256_v54, %v3260_v23  ;;  %v3446_v60 = vadd.bf16 %v3251_v36, %v3198_v4  ;;  %v364_v52 = vadd.bf16 0, %v348_v44  ;;  %v404_v3 = vmul.bf16 %v5525_v18, %v5497_v49 }
  0xb0   : > { %v3447_v30 = vadd.bf16 %v3261_v55, %v3199_v14  ;;  %v3516_v11 = vsel %vm5511_vm10, %v3514_v2, %v3515_v10  ;;  %v405_v58 = vmul.bf16 %v5559_v48, %v5484_v42  ;;  %v452_v40 = vshrl.u32 %v403_v25, 16 }
  0xb1   : > { %v3582_v16 = vadd.bf16 %v3513_v38, %v3446_v60  ;;  %v455_v13 = vshll.u32 %v403_v25, 16  ;;  %v461_v21 = vshll.u32 %v404_v3, 16  ;;  %v465_v53 = vshrl.u32 %v404_v3, 16 }
  0xb2   : > { %v3583_v8 = vadd.bf16 %v3516_v11, %v3447_v30  ;;  %v454_v22 = vrot.slane %v452_v40, 4  ;;  %v471_v23 = vshll.u32 %v405_v58, 16  ;;  %v667_v4 = vmul.bf16 %v5522_v17, %v5457_v24  ;;  %v7420_v11 = vld [vmem:[#allocation16_spill] sm:$0xff] }
  0xb3   : > { %v457_v19 = vrot.slane %v455_v13, 5  ;;  %v463_v29 = vrot.slane %v461_v21, 5  ;;  %v467_v14 = vrot.slane %v465_v53, 4  ;;  %v668_v35 = vmul.bf16 %v5525_v18, %v5491_v47 }
  0xb4   : > { %v4776_v46 = vcombine.high %v3582_v16, %v3583_v8  ;;  %v4775_v32 = vcombine.low %v3582_v16, %v3583_v8  ;;  %v473_v61 = vrot.slane %v471_v23, 5  ;;  %v669_v54 = vmul.bf16 %v5559_v48, %v5477_v34 }
  0xb5   : > { %v458_v10 = vor.u32 %v457_v19, %v454_v22  ;;  %v468_v44 = vor.u32 %v467_v14, %v463_v29  ;;  %v4544_v25 = vrot.slane %v667_v4, 9  ;;  %v724_v36 = vrot.slane %v668_v35, 5 }
  0xb6   : > { %3902 = vmatprep.mubr.bf16.mxu1 %v4776_v46  ;;  %v727_v38 = vrot.slane %v669_v54, 5  ;;  %v833_v17 = vmul.bf16 %v5550_v45, %v5515_v0  ;;  %v834_v2 = vmul.bf16 %v5593_v41, %v5517_v1  ;;  %v886_v18 = vmul.bf16 %v5550_v45, %v5545_v37 }
  0xb7   : > { %3903 = vmatmul.mubr.bf16.vlgmr.msra.gmra.mxu1 %v4775_v32  ;;  %v459_v55 = vrot.slane %v458_v10, 4  ;;  %v469_v60 = vrot.slane %v468_v44, 4  ;;  %v725_v48 = vsel %vm5511_vm10, %v4544_v25, %v724_v36  ;;  %v726_v3 = vrot.slane %v724_v36, 4  ;;  %v5786_v36 = vld [vmem:[%s5445_s11 + $0x48] sm:$0xff] }
  0xb8   : > { %v887_v30 = vmul.bf16 %v5593_v41, %v5578_v7  ;;  %v888_v58 = vmul.bf16 %v7420_v11, %v5569_v62  ;;  %v932_v40 = vshrl.u32 %v886_v18, 16  ;;  %v935_v16 = vshll.u32 %v886_v18, 16  ;;  %7421 = vst [vmem:[#allocation16_spill] sm:$0xff] %v5786_v36 }
  0xb9   : > { %v464_v13 = vsel %vm5536_vm11, %v459_v55, %v463_v29  ;;  %v474_v21 = vsel %vm5536_vm11, %v469_v60, %v473_v61  ;;  %v728_v53 = vsel %vm5511_vm10, %v726_v3, %v727_v38  ;;  %v1144_v8 = vmul.bf16 %v5550_v45, %v5547_v43  ;;  %v5789_v3 = vld [vmem:[%s5445_s11 + $0x50] sm:$0xff] }
  0xba   : > { %v637_v22 = vadd.bf16 %v464_v13, %v363_v50  ;;  %v638_v23 = vadd.bf16 %v474_v21, %v364_v52  ;;  %v934_v4 = vrot.slane %v932_v40, 4  ;;  %v937_v19 = vrot.slane %v935_v16, 5  ;;  %7422 = vst [vmem:[#allocation21_spill] sm:$0xff] %v5789_v3 }
  0xbb   : > { %v941_v14 = vshll.u32 %v887_v30, 16  ;;  %v945_v35 = vshrl.u32 %v887_v30, 16  ;;  %v951_v46 = vshll.u32 %v888_v58, 16  ;;  %v1145_v29 = vmul.bf16 %v5593_v41, %v5574_v5  ;;  %v5792_v30 = vld [vmem:[%s5445_s11 + $0x58] sm:$0xff] }
  0xbc   : > { %v789_v32 = vadd.bf16 %v725_v48, %v637_v22  ;;  %v790_v61 = vadd.bf16 %v728_v53, %v638_v23  ;;  %v938_v54 = vor.u32 %v937_v19, %v934_v4  ;;  %v1146_v10 = vmul.bf16 %v7420_v11, %v5562_v56  ;;  %7423 = vst [vmem:[#allocation22_spill] sm:$0xff] %v5792_v30  ;;  %v7424_v23 = vld [vmem:[#allocation17_spill] sm:$0xff] }
  0xbd   : > { %v943_v44 = vrot.slane %v941_v14, 5  ;;  %v947_v50 = vrot.slane %v945_v35, 4  ;;  %v953_v25 = vrot.slane %v951_v46, 5  ;;  %v4576_v52 = vrot.slane %v1144_v8, 9 }
  0xbe   : > { %v849_v38 = vadd.bf16 %v833_v17, %v789_v32  ;;  %v850_v18 = vadd.bf16 %v834_v2, %v790_v61  ;;  %v939_v55 = vrot.slane %v938_v54, 4  ;;  %v1198_v60 = vrot.slane %v1145_v29, 5 }
  0xbf   : > { %v948_v48 = vor.u32 %v947_v50, %v943_v44  ;;  %v1201_v58 = vrot.slane %v1146_v10, 5  ;;  %v1307_v40 = vmul.bf16 %v5786_v36, %v5527_v20  ;;  %v1308_v16 = vmul.bf16 %v5789_v3, %v5584_v9 }
  0xc0   : > { %v944_v13 = vsel %vm5536_vm11, %v939_v55, %v943_v44  ;;  %v1199_v17 = vsel %vm5511_vm10, %v4576_v52, %v1198_v60  ;;  %v1200_v2 = vrot.slane %v1198_v60, 4  ;;  %v1360_v21 = vmul.bf16 %v5786_v36, %v5608_v15 }
  0xc1   : > { %v949_v53 = vrot.slane %v948_v48, 4  ;;  %v1117_v8 = vadd.bf16 %v944_v13, %v849_v38  ;;  %v1361_v22 = vmul.bf16 %v5789_v3, %v5627_v57  ;;  %v1362_v4 = vmul.bf16 %v5792_v30, %v7424_v23 }
  0xc2   : > { %v1202_v19 = vsel %vm5511_vm10, %v1200_v2, %v1201_v58  ;;  %v1406_v14 = vshrl.u32 %v1360_v21, 16  ;;  %v1409_v35 = vshll.u32 %v1360_v21, 16  ;;  %v1618_v46 = vmul.bf16 %v5786_v36, %v5603_v12 }
  0xc3   : > { %v954_v29 = vsel %vm5536_vm11, %v949_v53, %v953_v25  ;;  %v1263_v32 = vadd.bf16 %v1199_v17, %v1117_v8  ;;  %v1415_v61 = vshll.u32 %v1361_v22, 16  ;;  %v1419_v54 = vshrl.u32 %v1361_v22, 16 }
  0xc4   : > { %v1118_v10 = vadd.bf16 %v954_v29, %v850_v18  ;;  %v1408_v44 = vrot.slane %v1406_v14, 4  ;;  %v1411_v50 = vrot.slane %v1409_v35, 5  ;;  %v1425_v52 = vshll.u32 %v1362_v4, 16  ;;  %v7425_v18 = vld [vmem:[#allocation18_spill] sm:$0xff]  ;;  %v7426_v14 = vld [vmem:[#allocation19_spill] sm:$0xff] }
  0xc5   : > { %v1323_v38 = vadd.bf16 %v1307_v40, %v1263_v32  ;;  %v1417_v55 = vrot.slane %v1415_v61, 5  ;;  %v1421_v60 = vrot.slane %v1419_v54, 4  ;;  %v1619_v48 = vmul.bf16 %v5789_v3, %v5635_v33 }
  0xc6   : > { %v1264_v58 = vadd.bf16 %v1202_v19, %v1118_v10  ;;  %v1412_v13 = vor.u32 %v1411_v50, %v1408_v44  ;;  %v1427_v2 = vrot.slane %v1425_v52, 5  ;;  %v1620_v21 = vmul.bf16 %v5792_v30, %v5617_v51  ;;  %v7427_v50 = vld [vmem:[#allocation20_spill] sm:$0xff] }
  0xc7   : > { %v1422_v25 = vor.u32 %v1421_v60, %v1417_v55  ;;  %v4608_v17 = vrot.slane %v1618_v46, 9  ;;  %v1672_v53 = vrot.slane %v1619_v48, 5  ;;  %v2296_v8 = vmul.bf16 %v7425_v18, %v5459_v26 }
  0xc8   : > { %v1324_v22 = vadd.bf16 %v1308_v16, %v1264_v58  ;;  %v1413_v4 = vrot.slane %v1412_v13, 4  ;;  %v1675_v40 = vrot.slane %v1620_v21, 5  ;;  %v2297_v35 = vmul.bf16 %v7426_v14, %v5461_v27 }
  0xc9   : > { %v1423_v29 = vrot.slane %v1422_v25, 4  ;;  %v1673_v19 = vsel %vm5511_vm10, %v4608_v17, %v1672_v53  ;;  %v1674_v32 = vrot.slane %v1672_v53, 4  ;;  %v2312_v61 = vadd.bf16 0, %v2296_v8 }
  0xca   : > { %v1418_v54 = vsel %vm5536_vm11, %v1413_v4, %v1417_v55  ;;  %v2313_v46 = vadd.bf16 0, %v2297_v35  ;;  %v2329_v10 = vmul.bf16 %v7425_v18, %v5482_v39  ;;  %v2330_v26 = vmul.bf16 %v7426_v14, %v5497_v49 }
  0xcb   : > { %v1428_v16 = vsel %vm5536_vm11, %v1423_v29, %v1427_v2  ;;  %v1591_v27 = vadd.bf16 %v1418_v54, %v1323_v38  ;;  %v1676_v44 = vsel %vm5511_vm10, %v1674_v32, %v1675_v40  ;;  %v2331_v52 = vmul.bf16 %v7427_v50, %v5484_v42 }
  0xcc   : > { %v1592_v60 = vadd.bf16 %v1428_v16, %v1324_v22  ;;  %v2375_v48 = vshrl.u32 %v2329_v10, 16  ;;  %v2378_v55 = vshll.u32 %v2329_v10, 16  ;;  %v2384_v58 = vshll.u32 %v2330_v26, 16 }
  0xcd   : > { %v5836_v13 = vadd.bf16 %v1673_v19, %v1591_v27  ;;  %v2388_v21 = vshrl.u32 %v2330_v26, 16  ;;  %v2394_v25 = vshll.u32 %v2331_v52, 16  ;;  %v2577_v17 = vmul.bf16 %v7425_v18, %v5457_v24 }
  0xce   : > { %v5840_v53 = vadd.bf16 %v1676_v44, %v1592_v60  ;;  %v2377_v38 = vrot.slane %v2375_v48, 4  ;;  %v2380_v2 = vrot.slane %v2378_v55, 5  ;;  %v2386_v8 = vrot.slane %v2384_v58, 5 }
  0xcf   : > { %v2390_v4 = vrot.slane %v2388_v21, 4  ;;  %v2396_v40 = vrot.slane %v2394_v25, 5  ;;  %v2578_v22 = vmul.bf16 %v7426_v14, %v5491_v47  ;;  %v2579_v35 = vmul.bf16 %v7427_v50, %v5477_v34 }
  0xd0   : > { %v4618_v29 = vcombine.high %v5836_v13, %v5840_v53  ;;  %v2381_v19 = vor.u32 %v2380_v2, %v2377_v38  ;;  %v4704_v32 = vrot.slane %v2577_v17, 9  ;;  %v2740_v18 = vmul.bf16 %v5701_v59, %v5515_v0 }
  0xd1   : > { %v2391_v54 = vor.u32 %v2390_v4, %v2386_v8  ;;  %v2631_v10 = vrot.slane %v2578_v22, 5  ;;  %v2634_v26 = vrot.slane %v2579_v35, 5  ;;  %v2741_v16 = vmul.bf16 %v5704_v6, %v5517_v1 }
  0xd2   : > { %2065 = vmatprep.mubr.bf16.mxu0 %v4618_v29  ;;  %v2382_v27 = vrot.slane %v2381_v19, 4  ;;  %v2773_v14 = vmul.bf16 %v5701_v59, %v5545_v37  ;;  %v2774_v44 = vmul.bf16 %v5704_v6, %v5578_v7  ;;  %v2775_v50 = vmul.bf16 %v5709_v28, %v5569_v62 }
  0xd3   : > { %v2392_v52 = vrot.slane %v2391_v54, 4  ;;  %v2632_v0 = vsel %vm5511_vm10, %v4704_v32, %v2631_v10  ;;  %v2633_v60 = vrot.slane %v2631_v10, 4  ;;  %v3021_v48 = vmul.bf16 %v5701_v59, %v5547_v43 }
  0xd4   : > { %v2387_v1 = vsel %vm5536_vm11, %v2382_v27, %v2386_v8  ;;  %v2819_v55 = vshrl.u32 %v2773_v14, 16  ;;  %v2822_v58 = vshll.u32 %v2773_v14, 16  ;;  %v2828_v21 = vshll.u32 %v2774_v44, 16 }
  0xd5   : > { %v2397_v25 = vsel %vm5536_vm11, %v2392_v52, %v2396_v40  ;;  %v2560_v17 = vadd.bf16 %v2387_v1, %v2312_v61  ;;  %v2635_v38 = vsel %vm5511_vm10, %v2633_v60, %v2634_v26  ;;  %v2832_v2 = vshrl.u32 %v2774_v44, 16  ;;  %v5873_v52 = vld [vmem:[%s5445_s11 + $0x108] sm:$0xff]  ;;  %v5876_v60 = vld [vmem:[%s5445_s11 + $0x110] sm:$0xff] }
  0xd6   : > { %v2561_v4 = vadd.bf16 %v2397_v25, %v2313_v46  ;;  %v2821_v22 = vrot.slane %v2819_v55, 4  ;;  %v2824_v35 = vrot.slane %v2822_v58, 5  ;;  %v2830_v29 = vrot.slane %v2828_v21, 5 }
  0xd7   : > { %v2696_v19 = vadd.bf16 %v2632_v0, %v2560_v17  ;;  %v2834_v8 = vrot.slane %v2832_v2, 4  ;;  %v2838_v32 = vshll.u32 %v2775_v50, 16  ;;  %v3022_v54 = vmul.bf16 %v5704_v6, %v5574_v5  ;;  %v5879_v0 = vld [vmem:[%s5445_s11 + $0x118] sm:$0xff] }
  0xd8   : > { %v2697_v10 = vadd.bf16 %v2635_v38, %v2561_v4  ;;  %v2825_v40 = vor.u32 %v2824_v35, %v2821_v22  ;;  %v3023_v61 = vmul.bf16 %v5709_v28, %v5562_v56  ;;  %v4736_v26 = vrot.slane %v3021_v48, 9 }
  0xd9   : > { %v2756_v27 = vadd.bf16 %v2740_v18, %v2696_v19  ;;  %v2835_v46 = vor.u32 %v2834_v8, %v2830_v29  ;;  %v2840_v14 = vrot.slane %v2838_v32, 5  ;;  %v3075_v44 = vrot.slane %v3022_v54, 5 }
  0xda   : > { %v2757_v50 = vadd.bf16 %v2741_v16, %v2697_v10  ;;  %v2826_v1 = vrot.slane %v2825_v40, 4  ;;  %v3078_v55 = vrot.slane %v3023_v61, 5  ;;  %v3184_v58 = vmul.bf16 %v5873_v52, %v5527_v20 }
  0xdb   : > { %v2836_v21 = vrot.slane %v2835_v46, 4  ;;  %v3076_v48 = vsel %vm5511_vm10, %v4736_v26, %v3075_v44  ;;  %v3077_v18 = vrot.slane %v3075_v44, 4  ;;  %v3185_v25 = vmul.bf16 %v5876_v60, %v5584_v9 }
  0xdc   : > { %v2831_v17 = vsel %vm5536_vm11, %v2826_v1, %v2830_v29  ;;  %v3217_v38 = vmul.bf16 %v5873_v52, %v5608_v15  ;;  %v3218_v16 = vmul.bf16 %v5876_v60, %v5627_v57  ;;  %v3219_v20 = vmul.bf16 %v5879_v0, %v7424_v23 }
  0xdd   : > { %v2841_v2 = vsel %vm5536_vm11, %v2836_v21, %v2840_v14  ;;  %v3004_v4 = vadd.bf16 %v2831_v17, %v2756_v27  ;;  %v3079_v22 = vsel %vm5511_vm10, %v3077_v18, %v3078_v55  ;;  %v3465_v9 = vmul.bf16 %v5873_v52, %v5603_v12 }
  0xde   : > { %v3005_v35 = vadd.bf16 %v2841_v2, %v2757_v50  ;;  %v3263_v29 = vshrl.u32 %v3217_v38, 16  ;;  %v3266_v19 = vshll.u32 %v3217_v38, 16  ;;  %v3272_v8 = vshll.u32 %v3218_v16, 16 }
  0xdf   : > { %v3140_v32 = vadd.bf16 %v3076_v48, %v3004_v4  ;;  %v3276_v54 = vshrl.u32 %v3218_v16, 16  ;;  %v3282_v10 = vshll.u32 %v3219_v20, 16  ;;  %v3466_v40 = vmul.bf16 %v5876_v60, %v5635_v33  ;;  %v5907_v20 = vld [vmem:[#allocation5] sm:$0xff] }
  0xe0   : > { %v3141_v61 = vadd.bf16 %v3079_v22, %v3005_v35  ;;  %v3265_v26 = vrot.slane %v3263_v29, 4  ;;  %v3268_v46 = vrot.slane %v3266_v19, 5  ;;  %v3274_v27 = vrot.slane %v3272_v8, 5  ;;  %v5913_v35 = vld [vmem:[#allocation5 + $0x8] sm:$0xff] }
  0xe1   : > { %v3200_v14 = vadd.bf16 %v3184_v58, %v3140_v32  ;;  %v3278_v44 = vrot.slane %v3276_v54, 4  ;;  %v3284_v1 = vrot.slane %v3282_v10, 5  ;;  %v3467_v55 = vmul.bf16 %v5879_v0, %v5617_v51 }
  0xe2   : > { %v3201_v50 = vadd.bf16 %v3185_v25, %v3141_v61  ;;  %v3269_v21 = vor.u32 %v3268_v46, %v3265_v26  ;;  %v4768_v18 = vrot.slane %v3465_v9, 9  ;;  %v3519_v17 = vrot.slane %v3466_v40, 5 }
  0xe3   : > { %v3279_v48 = vor.u32 %v3278_v44, %v3274_v27  ;;  %v3522_v38 = vrot.slane %v3467_v55, 5  ;;  %v4617_v16 = vcombine.low %v5836_v13, %v5840_v53  ;;  %v349_v2 = vmul.bf16 %v5907_v20, %v5550_v45 }
  0xe4   : > { %v3270_v58 = vrot.slane %v3269_v21, 4  ;;  %v3520_v4 = vsel %vm5511_vm10, %v4768_v18, %v3519_v17  ;;  %v3521_v22 = vrot.slane %v3519_v17, 4  ;;  %v350_v25 = vmul.bf16 %v5913_v35, %v5593_v41 }
  0xe5   : > { %v3280_v9 = vrot.slane %v3279_v48, 4  ;;  %2066 = vmatmul.mubr.bf16.gmra.mxu0 %v4617_v16  ;;  %v365_v29 = vadd.bf16 0, %v349_v2  ;;  %v406_v13 = vmul.bf16 %v5550_v45, %v5482_v39  ;;  %v407_v53 = vmul.bf16 %v5593_v41, %v5497_v49 }
  0xe6   : > { %v3275_v19 = vsel %vm5536_vm11, %v3270_v58, %v3274_v27  ;;  %v3523_v8 = vsel %vm5511_vm10, %v3521_v22, %v3522_v38  ;;  %v366_v32 = vadd.bf16 0, %v350_v25  ;;  %v408_v54 = vmul.bf16 %v7420_v11, %v5484_v42 }
  0xe7   : > { %v3285_v10 = vsel %vm5536_vm11, %v3280_v9, %v3284_v1  ;;  %v3448_v40 = vadd.bf16 %v3275_v19, %v3200_v14  ;;  %v476_v61 = vshrl.u32 %v406_v13, 16  ;;  %v479_v26 = vshll.u32 %v406_v13, 16  ;;  %v5935_v13 = vld [vmem:[#allocation5 + $0x30] sm:$0xff] }
  0xe8   : > { %v3449_v46 = vadd.bf16 %v3285_v10, %v3201_v50  ;;  %v485_v44 = vshll.u32 %v407_v53, 16  ;;  %v489_v55 = vshrl.u32 %v407_v53, 16  ;;  %v495_v21 = vshll.u32 %v408_v54, 16  ;;  %v5939_v54 = vld [vmem:[#allocation5 + $0x38] sm:$0xff] }
  0xe9   : > { %v3584_v18 = vadd.bf16 %v3520_v4, %v3448_v40  ;;  %v478_v17 = vrot.slane %v476_v61, 4  ;;  %v481_v27 = vrot.slane %v479_v26, 5  ;;  %v670_v48 = vmul.bf16 %v5550_v45, %v5457_v24 }
  0xea   : > { %v3585_v38 = vadd.bf16 %v3523_v8, %v3449_v46  ;;  %v487_v16 = vrot.slane %v485_v44, 5  ;;  %v491_v2 = vrot.slane %v489_v55, 4  ;;  %v497_v58 = vrot.slane %v495_v21, 5 }
  0xeb   : > { %v482_v22 = vor.u32 %v481_v27, %v478_v17  ;;  %v671_v14 = vmul.bf16 %v5593_v41, %v5491_v47  ;;  %v672_v1 = vmul.bf16 %v7420_v11, %v5477_v34  ;;  %v4545_v50 = vrot.slane %v670_v48, 9 }
  0xec   : > { %v4778_v25 = vcombine.high %v3584_v18, %v3585_v38  ;;  %v4777_v9 = vcombine.low %v3584_v18, %v3585_v38  ;;  %v492_v4 = vor.u32 %v491_v2, %v487_v16  ;;  %v835_v45 = vmul.bf16 %v5935_v13, %v5786_v36 }
  0xed   : > { %v483_v53 = vrot.slane %v482_v22, 4  ;;  %v731_v19 = vrot.slane %v671_v14, 5  ;;  %v734_v8 = vrot.slane %v672_v1, 5  ;;  %v836_v41 = vmul.bf16 %v5939_v54, %v5789_v3 }
  0xee   : > { %3912 = vmatprep.mubr.bf16.mxu1 %v4778_v25  ;;  %v493_v10 = vrot.slane %v492_v4, 4  ;;  %v889_v11 = vmul.bf16 %v5786_v36, %v5545_v37  ;;  %v890_v40 = vmul.bf16 %v5789_v3, %v5578_v7  ;;  %v891_v61 = vmul.bf16 %v5792_v30, %v5569_v62 }
  0xef   : > { %3913 = vmatmul.mubr.bf16.gmra.mxu1 %v4777_v9  ;;  %v488_v26 = vsel %vm5536_vm11, %v483_v53, %v487_v16  ;;  %v732_v46 = vsel %vm5511_vm10, %v4545_v50, %v731_v19  ;;  %v733_v44 = vrot.slane %v731_v19, 4  ;;  %v1147_v55 = vmul.bf16 %v5786_v36, %v5547_v43 }
  0xf0   : > { %v498_v21 = vsel %vm5536_vm11, %v493_v10, %v497_v58  ;;  %v639_v18 = vadd.bf16 %v488_v26, %v365_v29  ;;  %v956_v17 = vshrl.u32 %v889_v11, 16  ;;  %v959_v27 = vshll.u32 %v889_v11, 16 }
  0xf1   : > { %v640_v48 = vadd.bf16 %v498_v21, %v366_v32  ;;  %v735_v38 = vsel %vm5511_vm10, %v733_v44, %v734_v8  ;;  %v965_v2 = vshll.u32 %v890_v40, 16  ;;  %v969_v16 = vshrl.u32 %v890_v40, 16  ;;  %v5964_v8 = vld [vmem:[%s5445_s11 + $0x60] sm:$0xff] }
  0xf2   : > { %v791_v22 = vadd.bf16 %v732_v46, %v639_v18  ;;  %v958_v14 = vrot.slane %v956_v17, 4  ;;  %v961_v1 = vrot.slane %v959_v27, 5  ;;  %v975_v50 = vshll.u32 %v891_v61, 16  ;;  %7428 = vst [vmem:[#allocation17_spill] sm:$0xff] %v5964_v8  ;;  %v5967_v46 = vld [vmem:[%s5445_s11 + $0x68] sm:$0xff]  ;;  %v5970_v61 = vld [vmem:[%s5445_s11 + $0x70] sm:$0xff] }
  0xf3   : > { %v792_v25 = vadd.bf16 %v735_v38, %v640_v48  ;;  %v967_v9 = vrot.slane %v965_v2, 5  ;;  %v971_v4 = vrot.slane %v969_v16, 4  ;;  %v1148_v29 = vmul.bf16 %v5789_v3, %v5574_v5  ;;  %7429 = vst [vmem:[#allocation18_spill] sm:$0xff] %v5970_v61  ;;  %v5972_v18 = vld [vmem:[#allocation5 + $0x60] sm:$0xff]  ;;  %v5976_v17 = vld [vmem:[#allocation5 + $0x68] sm:$0xff] }
  0xf4   : > { %v851_v58 = vadd.bf16 %v835_v45, %v791_v22  ;;  %v962_v32 = vor.u32 %v961_v1, %v958_v14  ;;  %v977_v53 = vrot.slane %v975_v50, 5  ;;  %v1149_v19 = vmul.bf16 %v5792_v30, %v5562_v56 }
  0xf5   : > { %v852_v10 = vadd.bf16 %v836_v41, %v792_v25  ;;  %v972_v11 = vor.u32 %v971_v4, %v967_v9  ;;  %v4577_v40 = vrot.slane %v1147_v55, 9  ;;  %v1205_v26 = vrot.slane %v1148_v29, 5 }
  0xf6   : > { %v963_v44 = vrot.slane %v962_v32, 4  ;;  %v1208_v21 = vrot.slane %v1149_v19, 5  ;;  %v1309_v45 = vmul.bf16 %v5972_v18, %v5964_v8  ;;  %v1310_v27 = vmul.bf16 %v5976_v17, %v5967_v46 }
  0xf7   : > { %v973_v41 = vrot.slane %v972_v11, 4  ;;  %v1206_v55 = vsel %vm5511_vm10, %v4577_v40, %v1205_v26  ;;  %v1207_v48 = vrot.slane %v1205_v26, 4  ;;  %v1363_v38 = vmul.bf16 %v5964_v8, %v5608_v15 }
  0xf8   : > { %v968_v2 = vsel %vm5536_vm11, %v963_v44, %v967_v9  ;;  %v1364_v16 = vmul.bf16 %v5967_v46, %v5627_v57  ;;  %v1365_v22 = vmul.bf16 %v5970_v61, %v7424_v23  ;;  %v1621_v14 = vmul.bf16 %v5964_v8, %v5603_v12 }
  0xf9   : > { %v978_v1 = vsel %vm5536_vm11, %v973_v41, %v977_v53  ;;  %v1119_v50 = vadd.bf16 %v968_v2, %v851_v58  ;;  %v1209_v25 = vsel %vm5511_vm10, %v1207_v48, %v1208_v21  ;;  %v1430_v4 = vshrl.u32 %v1363_v38, 16 }
  0xfa   : > { %v1120_v29 = vadd.bf16 %v978_v1, %v852_v10  ;;  %v1433_v32 = vshll.u32 %v1363_v38, 16  ;;  %v1439_v9 = vshll.u32 %v1364_v16, 16  ;;  %v1443_v19 = vshrl.u32 %v1364_v16, 16 }
  0xfb   : > { %v1265_v11 = vadd.bf16 %v1206_v55, %v1119_v50  ;;  %v1432_v40 = vrot.slane %v1430_v4, 4  ;;  %v1449_v26 = vshll.u32 %v1365_v22, 16  ;;  %v1622_v44 = vmul.bf16 %v5967_v46, %v5635_v33 }
  0xfc   : > { %v1266_v30 = vadd.bf16 %v1209_v25, %v1120_v29  ;;  %v1435_v8 = vrot.slane %v1433_v32, 5  ;;  %v1441_v3 = vrot.slane %v1439_v9, 5  ;;  %v1445_v36 = vrot.slane %v1443_v19, 4 }
  0xfd   : > { %v1325_v53 = vadd.bf16 %v1309_v45, %v1265_v11  ;;  %v1451_v58 = vrot.slane %v1449_v26, 5  ;;  %v1623_v21 = vmul.bf16 %v5970_v61, %v5617_v51  ;;  %v4609_v41 = vrot.slane %v1621_v14, 9 }
  0xfe   : > { %v1326_v10 = vadd.bf16 %v1310_v27, %v1266_v30  ;;  %v1436_v48 = vor.u32 %v1435_v8, %v1432_v40  ;;  %v1446_v38 = vor.u32 %v1445_v36, %v1441_v3  ;;  %v1679_v2 = vrot.slane %v1622_v44, 5 }
  0xff   : > { %v1682_v55 = vrot.slane %v1623_v21, 5  ;;  %v2298_v16 = vmul.bf16 %v5907_v20, %v5701_v59  ;;  %v2299_v22 = vmul.bf16 %v5913_v35, %v5704_v6  ;;  %v2332_v1 = vmul.bf16 %v5701_v59, %v5482_v39 }
 0x100   : > { %v1437_v45 = vrot.slane %v1436_v48, 4  ;;  %v1447_v50 = vrot.slane %v1446_v38, 4  ;;  %v1680_v25 = vsel %vm5511_vm10, %v4609_v41, %v1679_v2  ;;  %v1681_v14 = vrot.slane %v1679_v2, 4 }
 0x101   : > { %v2314_v30 = vadd.bf16 0, %v2298_v16  ;;  %v2315_v8 = vadd.bf16 0, %v2299_v22  ;;  %v2333_v36 = vmul.bf16 %v5704_v6, %v5497_v49  ;;  %v2334_v27 = vmul.bf16 %v5709_v28, %v5484_v42 }
 0x102   : > { %v1442_v4 = vsel %vm5536_vm11, %v1437_v45, %v1441_v3  ;;  %v1452_v29 = vsel %vm5536_vm11, %v1447_v50, %v1451_v58  ;;  %v1683_v32 = vsel %vm5511_vm10, %v1681_v14, %v1682_v55  ;;  %v2399_v9 = vshrl.u32 %v2332_v1, 16 }
 0x103   : > { %v1593_v19 = vadd.bf16 %v1442_v4, %v1325_v53  ;;  %v1594_v11 = vadd.bf16 %v1452_v29, %v1326_v10  ;;  %v2402_v40 = vshll.u32 %v2332_v1, 16  ;;  %v2408_v26 = vshll.u32 %v2333_v36, 16 }
 0x104   : > { %v2401_v44 = vrot.slane %v2399_v9, 4  ;;  %v2412_v21 = vshrl.u32 %v2333_v36, 16  ;;  %v2418_v41 = vshll.u32 %v2334_v27, 16  ;;  %v2580_v48 = vmul.bf16 %v5701_v59, %v5457_v24 }
 0x105   : > { %v6020_v38 = vadd.bf16 %v1680_v25, %v1593_v19  ;;  %v6022_v3 = vadd.bf16 %v1683_v32, %v1594_v11  ;;  %v2404_v2 = vrot.slane %v2402_v40, 5  ;;  %v2410_v58 = vrot.slane %v2408_v26, 5 }
 0x106   : > { %v2414_v16 = vrot.slane %v2412_v21, 4  ;;  %v2420_v22 = vrot.slane %v2418_v41, 5  ;;  %v2581_v53 = vmul.bf16 %v5704_v6, %v5491_v47  ;;  %v2582_v10 = vmul.bf16 %v5709_v28, %v5477_v34 }
 0x107   : > { %v4620_v55 = vcombine.high %v6020_v38, %v6022_v3  ;;  %v2405_v1 = vor.u32 %v2404_v2, %v2401_v44  ;;  %v4705_v45 = vrot.slane %v2580_v48, 9  ;;  %v2742_v59 = vmul.bf16 %v5935_v13, %v5873_v52 }
 0x108   : > { %v2415_v50 = vor.u32 %v2414_v16, %v2410_v58  ;;  %v2638_v25 = vrot.slane %v2581_v53, 5  ;;  %v2641_v14 = vrot.slane %v2582_v10, 5  ;;  %v2743_v36 = vmul.bf16 %v5939_v54, %v5876_v60 }
 0x109   : > { %2075 = vmatprep.mubr.bf16.mxu0 %v4620_v55  ;;  %v2406_v27 = vrot.slane %v2405_v1, 4  ;;  %v2776_v6 = vmul.bf16 %v5873_v52, %v5545_v37  ;;  %v2777_v28 = vmul.bf16 %v5876_v60, %v5578_v7  ;;  %v2778_v4 = vmul.bf16 %v5879_v0, %v5569_v62 }
 0x10a   : > { %v2416_v29 = vrot.slane %v2415_v50, 4  ;;  %v2639_v32 = vsel %vm5511_vm10, %v4705_v45, %v2638_v25  ;;  %v2640_v9 = vrot.slane %v2638_v25, 4  ;;  %v3024_v19 = vmul.bf16 %v5873_v52, %v5547_v43 }
 0x10b   : > { %v2411_v11 = vsel %vm5536_vm11, %v2406_v27, %v2410_v58  ;;  %v2843_v40 = vshrl.u32 %v2776_v6, 16  ;;  %v2846_v26 = vshll.u32 %v2776_v6, 16  ;;  %v2852_v44 = vshll.u32 %v2777_v28, 16 }
 0x10c   : > { %v2421_v21 = vsel %vm5536_vm11, %v2416_v29, %v2420_v22  ;;  %v2562_v41 = vadd.bf16 %v2411_v11, %v2314_v30  ;;  %v2642_v48 = vsel %vm5511_vm10, %v2640_v9, %v2641_v14  ;;  %v2856_v2 = vshrl.u32 %v2777_v28, 16  ;;  %v6055_v29 = vld [vmem:[%s5445_s11 + $0x120] sm:$0xff]  ;;  %v6058_v9 = vld [vmem:[%s5445_s11 + $0x128] sm:$0xff] }
 0x10d   : > { %v2563_v16 = vadd.bf16 %v2421_v21, %v2315_v8  ;;  %v2845_v53 = vrot.slane %v2843_v40, 4  ;;  %v2848_v10 = vrot.slane %v2846_v26, 5  ;;  %v2854_v55 = vrot.slane %v2852_v44, 5  ;;  %7430 = vst [vmem:[#allocation19_spill] sm:$0xff] %v6058_v9 }
 0x10e   : > { %v2698_v1 = vadd.bf16 %v2639_v32, %v2562_v41  ;;  %v2858_v58 = vrot.slane %v2856_v2, 4  ;;  %v2862_v45 = vshll.u32 %v2778_v4, 16  ;;  %v3025_v50 = vmul.bf16 %v5876_v60, %v5574_v5  ;;  %v6061_v32 = vld [vmem:[%s5445_s11 + $0x130] sm:$0xff] }
 0x10f   : > { %v2699_v25 = vadd.bf16 %v2642_v48, %v2563_v16  ;;  %v2849_v22 = vor.u32 %v2848_v10, %v2845_v53  ;;  %v3026_v30 = vmul.bf16 %v5879_v0, %v5562_v56  ;;  %v4737_v14 = vrot.slane %v3024_v19, 9  ;;  %7431 = vst [vmem:[#allocation20_spill] sm:$0xff] %v6061_v32 }
 0x110   : > { %v2758_v27 = vadd.bf16 %v2742_v59, %v2698_v1  ;;  %v2859_v8 = vor.u32 %v2858_v58, %v2854_v55  ;;  %v2864_v6 = vrot.slane %v2862_v45, 5  ;;  %v3082_v28 = vrot.slane %v3025_v50, 5 }
 0x111   : > { %v2759_v4 = vadd.bf16 %v2743_v36, %v2699_v25  ;;  %v2850_v11 = vrot.slane %v2849_v22, 4  ;;  %v3085_v40 = vrot.slane %v3026_v30, 5  ;;  %v3186_v26 = vmul.bf16 %v5972_v18, %v6055_v29 }
 0x112   : > { %v2860_v44 = vrot.slane %v2859_v8, 4  ;;  %v3083_v19 = vsel %vm5511_vm10, %v4737_v14, %v3082_v28  ;;  %v3084_v59 = vrot.slane %v3082_v28, 4  ;;  %v3187_v21 = vmul.bf16 %v5976_v17, %v6058_v9 }
 0x113   : > { %v2855_v41 = vsel %vm5536_vm11, %v2850_v11, %v2854_v55  ;;  %v3220_v48 = vmul.bf16 %v6055_v29, %v5608_v15  ;;  %v3221_v36 = vmul.bf16 %v6058_v9, %v5627_v57  ;;  %v3222_v2 = vmul.bf16 %v6061_v32, %v7424_v23 }
 0x114   : > { %v2865_v16 = vsel %vm5536_vm11, %v2860_v44, %v2864_v6  ;;  %v3006_v53 = vadd.bf16 %v2855_v41, %v2758_v27  ;;  %v3086_v10 = vsel %vm5511_vm10, %v3084_v59, %v3085_v40  ;;  %v3468_v1 = vmul.bf16 %v6055_v29, %v5603_v12 }
 0x115   : > { %v3007_v55 = vadd.bf16 %v2865_v16, %v2759_v4  ;;  %v3287_v58 = vshrl.u32 %v3220_v48, 16  ;;  %v3290_v45 = vshll.u32 %v3220_v48, 16  ;;  %v3296_v50 = vshll.u32 %v3221_v36, 16 }
 0x116   : > { %v3142_v25 = vadd.bf16 %v3083_v19, %v3006_v53  ;;  %v3300_v22 = vshrl.u32 %v3221_v36, 16  ;;  %v3306_v30 = vshll.u32 %v3222_v2, 16  ;;  %v3469_v14 = vmul.bf16 %v6058_v9, %v5635_v33  ;;  %v7432_v53 = vld [vmem:[#allocation16_spill] sm:$0xff] }
 0x117   : > { %v3143_v8 = vadd.bf16 %v3086_v10, %v3007_v55  ;;  %v3289_v28 = vrot.slane %v3287_v58, 4  ;;  %v3292_v6 = vrot.slane %v3290_v45, 5  ;;  %v3298_v27 = vrot.slane %v3296_v50, 5  ;;  %v7433_v45 = vld [vmem:[#allocation21_spill] sm:$0xff] }
 0x118   : > { %v3202_v11 = vadd.bf16 %v3186_v26, %v3142_v25  ;;  %v3302_v44 = vrot.slane %v3300_v22, 4  ;;  %v3308_v40 = vrot.slane %v3306_v30, 5  ;;  %v3470_v59 = vmul.bf16 %v6061_v32, %v5617_v51 }
 0x119   : > { %v3203_v4 = vadd.bf16 %v3187_v21, %v3143_v8  ;;  %v3293_v41 = vor.u32 %v3292_v6, %v3289_v28  ;;  %v4769_v48 = vrot.slane %v3468_v1, 9  ;;  %v3526_v16 = vrot.slane %v3469_v14, 5  ;;  %v7434_v14 = vld [vmem:[#allocation22_spill] sm:$0xff] }
 0x11a   : > { %v3303_v19 = vor.u32 %v3302_v44, %v3298_v27  ;;  %v3529_v36 = vrot.slane %v3470_v59, 5  ;;  %v4619_v2 = vcombine.low %v6020_v38, %v6022_v3  ;;  %v351_v10 = vmul.bf16 %v5907_v20, %v7432_v53 }
 0x11b   : > { %v3294_v55 = vrot.slane %v3293_v41, 4  ;;  %v3527_v26 = vsel %vm5511_vm10, %v4769_v48, %v3526_v16  ;;  %v3528_v58 = vrot.slane %v3526_v16, 4  ;;  %v352_v50 = vmul.bf16 %v5913_v35, %v7433_v45 }
 0x11c   : > { %v3304_v21 = vrot.slane %v3303_v19, 4  ;;  %2076 = vmatmul.mubr.bf16.gmra.mxu0 %v4619_v2  ;;  %v367_v1 = vadd.bf16 0, %v351_v10  ;;  %v409_v25 = vmul.bf16 %v7432_v53, %v5482_v39  ;;  %v410_v38 = vmul.bf16 %v7433_v45, %v5497_v49 }
 0x11d   : > { %v3299_v3 = vsel %vm5536_vm11, %v3294_v55, %v3298_v27  ;;  %v3530_v22 = vsel %vm5511_vm10, %v3528_v58, %v3529_v36  ;;  %v368_v30 = vadd.bf16 0, %v352_v50  ;;  %v411_v8 = vmul.bf16 %v7434_v14, %v5484_v42 }
 0x11e   : > { %v3309_v28 = vsel %vm5536_vm11, %v3304_v21, %v3308_v40  ;;  %v3450_v6 = vadd.bf16 %v3299_v3, %v3202_v11  ;;  %v500_v44 = vshrl.u32 %v409_v25, 16  ;;  %v503_v59 = vshll.u32 %v409_v25, 16 }
 0x11f   : > { %v3451_v41 = vadd.bf16 %v3309_v28, %v3203_v4  ;;  %v509_v48 = vshll.u32 %v410_v38, 16  ;;  %v513_v16 = vshrl.u32 %v410_v38, 16  ;;  %v519_v19 = vshll.u32 %v411_v8, 16  ;;  %v7435_v38 = vld [vmem:[#allocation17_spill] sm:$0xff] }
 0x120   : > { %v3586_v2 = vadd.bf16 %v3527_v26, %v3450_v6  ;;  %v502_v10 = vrot.slane %v500_v44, 4  ;;  %v505_v27 = vrot.slane %v503_v59, 5  ;;  %v673_v36 = vmul.bf16 %v7432_v53, %v5457_v24 }
 0x121   : > { %v3587_v55 = vadd.bf16 %v3530_v22, %v3451_v41  ;;  %v511_v58 = vrot.slane %v509_v48, 5  ;;  %v515_v50 = vrot.slane %v513_v16, 4  ;;  %v521_v32 = vrot.slane %v519_v19, 5 }
 0x122   : > { %v506_v9 = vor.u32 %v505_v27, %v502_v10  ;;  %v674_v11 = vmul.bf16 %v7433_v45, %v5491_v47  ;;  %v675_v40 = vmul.bf16 %v7434_v14, %v5477_v34  ;;  %v4546_v4 = vrot.slane %v673_v36, 9 }
 0x123   : > { %v4780_v21 = vcombine.high %v3586_v2, %v3587_v55  ;;  %v4779_v25 = vcombine.low %v3586_v2, %v3587_v55  ;;  %v516_v26 = vor.u32 %v515_v50, %v511_v58  ;;  %v837_v3 = vmul.bf16 %v5935_v13, %v7435_v38 }
 0x124   : > { %v507_v8 = vrot.slane %v506_v9, 4  ;;  %v738_v53 = vrot.slane %v674_v11, 5  ;;  %v741_v22 = vrot.slane %v675_v40, 5  ;;  %v838_v28 = vmul.bf16 %v5939_v54, %v5967_v46 }
 0x125   : > { %3922 = vmatprep.mubr.bf16.mxu1 %v4780_v21  ;;  %v517_v6 = vrot.slane %v516_v26, 4  ;;  %v892_v45 = vmul.bf16 %v7435_v38, %v5545_v37  ;;  %v893_v14 = vmul.bf16 %v5967_v46, %v5578_v7  ;;  %v894_v44 = vmul.bf16 %v5970_v61, %v5569_v62 }
 0x126   : > { %3923 = vmatmul.mubr.bf16.gmra.mxu1 %v4779_v25  ;;  %v512_v9 = vsel %vm5536_vm11, %v507_v8, %v511_v58  ;;  %v739_v59 = vsel %vm5511_vm10, %v4546_v4, %v738_v53  ;;  %v740_v41 = vrot.slane %v738_v53, 4  ;;  %v1150_v48 = vmul.bf16 %v7435_v38, %v5547_v43 }
 0x127   : > { %v522_v16 = vsel %vm5536_vm11, %v517_v6, %v521_v32  ;;  %v641_v19 = vadd.bf16 %v512_v9, %v367_v1  ;;  %v980_v2 = vshrl.u32 %v892_v45, 16  ;;  %v983_v10 = vshll.u32 %v892_v45, 16 }
 0x128   : > { %v642_v27 = vadd.bf16 %v522_v16, %v368_v30  ;;  %v742_v36 = vsel %vm5511_vm10, %v740_v41, %v741_v22  ;;  %v989_v55 = vshll.u32 %v893_v14, 16  ;;  %v993_v58 = vshrl.u32 %v893_v14, 16  ;;  %v6138_v22 = vld [vmem:[%s5445_s11 + $0x78] sm:$0xff] }
 0x129   : > { %v793_v50 = vadd.bf16 %v739_v59, %v641_v19  ;;  %v982_v11 = vrot.slane %v980_v2, 4  ;;  %v985_v40 = vrot.slane %v983_v10, 5  ;;  %v999_v4 = vshll.u32 %v894_v44, 16  ;;  %7436 = vst [vmem:[#allocation16_spill] sm:$0xff] %v6138_v22  ;;  %v6141_v59 = vld [vmem:[%s5445_s11 + $0x80] sm:$0xff]  ;;  %v6144_v44 = vld [vmem:[%s5445_s11 + $0x88] sm:$0xff] }
 0x12a   : > { %v794_v21 = vadd.bf16 %v742_v36, %v642_v27  ;;  %v991_v25 = vrot.slane %v989_v55, 5  ;;  %v995_v26 = vrot.slane %v993_v58, 4  ;;  %v1151_v32 = vmul.bf16 %v5967_v46, %v5574_v5 }
 0x12b   : > { %v853_v1 = vadd.bf16 %v837_v3, %v793_v50  ;;  %v986_v30 = vor.u32 %v985_v40, %v982_v11  ;;  %v1001_v8 = vrot.slane %v999_v4, 5  ;;  %v1152_v53 = vmul.bf16 %v5970_v61, %v5562_v56 }
 0x12c   : > { %v854_v6 = vadd.bf16 %v838_v28, %v794_v21  ;;  %v996_v45 = vor.u32 %v995_v26, %v991_v25  ;;  %v4578_v14 = vrot.slane %v1150_v48, 9  ;;  %v1212_v9 = vrot.slane %v1151_v32, 5 }
 0x12d   : > { %v987_v41 = vrot.slane %v986_v30, 4  ;;  %v1215_v16 = vrot.slane %v1152_v53, 5  ;;  %v1311_v3 = vmul.bf16 %v5972_v18, %v6138_v22  ;;  %v1312_v19 = vmul.bf16 %v5976_v17, %v6141_v59 }
 0x12e   : > { %v997_v2 = vrot.slane %v996_v45, 4  ;;  %v1213_v10 = vsel %vm5511_vm10, %v4578_v14, %v1212_v9  ;;  %v1214_v28 = vrot.slane %v1212_v9, 4  ;;  %v1366_v48 = vmul.bf16 %v6138_v22, %v5608_v15 }
 0x12f   : > { %v992_v27 = vsel %vm5536_vm11, %v987_v41, %v991_v25  ;;  %v1367_v36 = vmul.bf16 %v6141_v59, %v5627_v57  ;;  %v1368_v55 = vmul.bf16 %v6144_v44, %v7424_v23  ;;  %v1624_v58 = vmul.bf16 %v6138_v22, %v5603_v12 }
 0x130   : > { %v1002_v50 = vsel %vm5536_vm11, %v997_v2, %v1001_v8  ;;  %v1121_v11 = vadd.bf16 %v992_v27, %v853_v1  ;;  %v1216_v40 = vsel %vm5511_vm10, %v1214_v28, %v1215_v16  ;;  %v1454_v4 = vshrl.u32 %v1366_v48, 16 }
 0x131   : > { %v1122_v21 = vadd.bf16 %v1002_v50, %v854_v6  ;;  %v1457_v26 = vshll.u32 %v1366_v48, 16  ;;  %v1463_v25 = vshll.u32 %v1367_v36, 16  ;;  %v1467_v32 = vshrl.u32 %v1367_v36, 16 }
 0x132   : > { %v1267_v30 = vadd.bf16 %v1213_v10, %v1121_v11  ;;  %v1456_v53 = vrot.slane %v1454_v4, 4  ;;  %v1473_v45 = vshll.u32 %v1368_v55, 16  ;;  %v1625_v14 = vmul.bf16 %v6141_v59, %v5635_v33 }
 0x133   : > { %v1268_v9 = vadd.bf16 %v1216_v40, %v1122_v21  ;;  %v1459_v41 = vrot.slane %v1457_v26, 5  ;;  %v1465_v22 = vrot.slane %v1463_v25, 5  ;;  %v1469_v61 = vrot.slane %v1467_v32, 4 }
 0x134   : > { %v1327_v8 = vadd.bf16 %v1311_v3, %v1267_v30  ;;  %v1475_v1 = vrot.slane %v1473_v45, 5  ;;  %v1626_v16 = vmul.bf16 %v6144_v44, %v5617_v51  ;;  %v4610_v2 = vrot.slane %v1624_v58, 9 }
 0x135   : > { %v1328_v6 = vadd.bf16 %v1312_v19, %v1268_v9  ;;  %v1460_v28 = vor.u32 %v1459_v41, %v1456_v53  ;;  %v1470_v48 = vor.u32 %v1469_v61, %v1465_v22  ;;  %v1686_v27 = vrot.slane %v1625_v14, 5 }
 0x136   : > { %v1689_v10 = vrot.slane %v1626_v16, 5  ;;  %v2300_v36 = vmul.bf16 %v5907_v20, %v5873_v52  ;;  %v2301_v55 = vmul.bf16 %v5913_v35, %v5876_v60  ;;  %v2335_v50 = vmul.bf16 %v5873_v52, %v5482_v39 }
 0x137   : > { %v1461_v3 = vrot.slane %v1460_v28, 4  ;;  %v1471_v11 = vrot.slane %v1470_v48, 4  ;;  %v1687_v40 = vsel %vm5511_vm10, %v4610_v2, %v1686_v27  ;;  %v1688_v58 = vrot.slane %v1686_v27, 4 }
 0x138   : > { %v2316_v19 = vadd.bf16 0, %v2300_v36  ;;  %v2317_v4 = vadd.bf16 0, %v2301_v55  ;;  %v2336_v61 = vmul.bf16 %v5876_v60, %v5497_v49  ;;  %v2337_v21 = vmul.bf16 %v5879_v0, %v5484_v42 }
 0x139   : > { %v1466_v26 = vsel %vm5536_vm11, %v1461_v3, %v1465_v22  ;;  %v1476_v25 = vsel %vm5536_vm11, %v1471_v11, %v1475_v1  ;;  %v1690_v32 = vsel %vm5511_vm10, %v1688_v58, %v1689_v10  ;;  %v2423_v30 = vshrl.u32 %v2335_v50, 16 }
 0x13a   : > { %v1595_v53 = vadd.bf16 %v1466_v26, %v1327_v8  ;;  %v1596_v45 = vadd.bf16 %v1476_v25, %v1328_v6  ;;  %v2426_v14 = vshll.u32 %v2335_v50, 16  ;;  %v2432_v9 = vshll.u32 %v2336_v61, 16  ;;  %v7438_v25 = vld [vmem:[#allocation20_spill] sm:$0xff] }
 0x13b   : > { %v2425_v41 = vrot.slane %v2423_v30, 4  ;;  %v2436_v16 = vshrl.u32 %v2336_v61, 16  ;;  %v2442_v2 = vshll.u32 %v2337_v21, 16  ;;  %v2583_v28 = vmul.bf16 %v5873_v52, %v5457_v24  ;;  %v7437_v61 = vld [vmem:[#allocation19_spill] sm:$0xff] }
 0x13c   : > { %v6190_v48 = vadd.bf16 %v1687_v40, %v1595_v53  ;;  %v6192_v22 = vadd.bf16 %v1690_v32, %v1596_v45  ;;  %v2428_v27 = vrot.slane %v2426_v14, 5  ;;  %v2434_v1 = vrot.slane %v2432_v9, 5 }
 0x13d   : > { %v2438_v36 = vrot.slane %v2436_v16, 4  ;;  %v2444_v55 = vrot.slane %v2442_v2, 5  ;;  %v2584_v8 = vmul.bf16 %v5876_v60, %v5491_v47  ;;  %v2585_v6 = vmul.bf16 %v5879_v0, %v5477_v34 }
 0x13e   : > { %v4622_v10 = vcombine.high %v6190_v48, %v6192_v22  ;;  %v2429_v50 = vor.u32 %v2428_v27, %v2425_v41  ;;  %v4706_v3 = vrot.slane %v2583_v28, 9  ;;  %v2744_v52 = vmul.bf16 %v5935_v13, %v6055_v29 }
 0x13f   : > { %v2439_v11 = vor.u32 %v2438_v36, %v2434_v1  ;;  %v2645_v40 = vrot.slane %v2584_v8, 5  ;;  %v2648_v58 = vrot.slane %v2585_v6, 5  ;;  %v2745_v21 = vmul.bf16 %v5939_v54, %v7437_v61 }
 0x140   : > { %2085 = vmatprep.mubr.bf16.mxu0 %v4622_v10  ;;  %v2430_v26 = vrot.slane %v2429_v50, 4  ;;  %v2779_v60 = vmul.bf16 %v6055_v29, %v5545_v37  ;;  %v2780_v0 = vmul.bf16 %v7437_v61, %v5578_v7  ;;  %v2781_v32 = vmul.bf16 %v7438_v25, %v5569_v62 }
 0x141   : > { %v2440_v30 = vrot.slane %v2439_v11, 4  ;;  %v2646_v53 = vsel %vm5511_vm10, %v4706_v3, %v2645_v40  ;;  %v2647_v45 = vrot.slane %v2645_v40, 4  ;;  %v3027_v14 = vmul.bf16 %v6055_v29, %v5547_v43 }
 0x142   : > { %v2435_v9 = vsel %vm5536_vm11, %v2430_v26, %v2434_v1  ;;  %v2867_v41 = vshrl.u32 %v2779_v60, 16  ;;  %v2870_v16 = vshll.u32 %v2779_v60, 16  ;;  %v2876_v2 = vshll.u32 %v2780_v0, 16 }
 0x143   : > { %v2445_v28 = vsel %vm5536_vm11, %v2440_v30, %v2444_v55  ;;  %v2564_v27 = vadd.bf16 %v2435_v9, %v2316_v19  ;;  %v2649_v36 = vsel %vm5511_vm10, %v2647_v45, %v2648_v58  ;;  %v2880_v8 = vshrl.u32 %v2780_v0, 16  ;;  %v6225_v9 = vld [vmem:[%s5445_s11 + $0x138] sm:$0xff] }
 0x144   : > { %v2565_v6 = vadd.bf16 %v2445_v28, %v2317_v4  ;;  %v2869_v10 = vrot.slane %v2867_v41, 4  ;;  %v2872_v50 = vrot.slane %v2870_v16, 5  ;;  %v2878_v3 = vrot.slane %v2876_v2, 5  ;;  %7439 = vst [vmem:[#allocation21_spill] sm:$0xff] %v6225_v9  ;;  %v6228_v41 = vld [vmem:[%s5445_s11 + $0x140] sm:$0xff] }
 0x145   : > { %v2700_v11 = vadd.bf16 %v2646_v53, %v2564_v27  ;;  %v2882_v1 = vrot.slane %v2880_v8, 4  ;;  %v2886_v40 = vshll.u32 %v2781_v32, 16  ;;  %v3028_v26 = vmul.bf16 %v7437_v61, %v5574_v5  ;;  %7440 = vst [vmem:[#allocation22_spill] sm:$0xff] %v6228_v41  ;;  %v6231_v53 = vld [vmem:[%s5445_s11 + $0x148] sm:$0xff] }
 0x146   : > { %v2701_v60 = vadd.bf16 %v2649_v36, %v2565_v6  ;;  %v2873_v55 = vor.u32 %v2872_v50, %v2869_v10  ;;  %v3029_v19 = vmul.bf16 %v7438_v25, %v5562_v56  ;;  %v4738_v58 = vrot.slane %v3027_v14, 9  ;;  %7441 = vst [vmem:[#allocation17_spill] sm:$0xff] %v6231_v53 }
 0x147   : > { %v2760_v0 = vadd.bf16 %v2744_v52, %v2700_v11  ;;  %v2883_v4 = vor.u32 %v2882_v1, %v2878_v3  ;;  %v2888_v30 = vrot.slane %v2886_v40, 5  ;;  %v3089_v45 = vrot.slane %v3028_v26, 5 }
 0x148   : > { %v2761_v32 = vadd.bf16 %v2745_v21, %v2701_v60  ;;  %v2874_v16 = vrot.slane %v2873_v55, 4  ;;  %v3092_v2 = vrot.slane %v3029_v19, 5  ;;  %v3188_v28 = vmul.bf16 %v5972_v18, %v6225_v9 }
 0x149   : > { %v2884_v27 = vrot.slane %v2883_v4, 4  ;;  %v3090_v14 = vsel %vm5511_vm10, %v4738_v58, %v3089_v45  ;;  %v3091_v52 = vrot.slane %v3089_v45, 4  ;;  %v3189_v36 = vmul.bf16 %v5976_v17, %v6228_v41 }
 0x14a   : > { %v2879_v8 = vsel %vm5536_vm11, %v2874_v16, %v2878_v3  ;;  %v3223_v6 = vmul.bf16 %v6225_v9, %v5608_v15  ;;  %v3224_v21 = vmul.bf16 %v6228_v41, %v5627_v57  ;;  %v3225_v10 = vmul.bf16 %v6231_v53, %v7424_v23 }
 0x14b   : > { %v2889_v50 = vsel %vm5536_vm11, %v2884_v27, %v2888_v30  ;;  %v3008_v11 = vadd.bf16 %v2879_v8, %v2760_v0  ;;  %v3093_v1 = vsel %vm5511_vm10, %v3091_v52, %v3092_v2  ;;  %v3471_v40 = vmul.bf16 %v6225_v9, %v5603_v12 }
 0x14c   : > { %v3009_v3 = vadd.bf16 %v2889_v50, %v2761_v32  ;;  %v3311_v26 = vshrl.u32 %v3223_v6, 16  ;;  %v3314_v60 = vshll.u32 %v3223_v6, 16  ;;  %v3320_v55 = vshll.u32 %v3224_v21, 16 }
 0x14d   : > { %v3144_v19 = vadd.bf16 %v3090_v14, %v3008_v11  ;;  %v3324_v58 = vshrl.u32 %v3224_v21, 16  ;;  %v3330_v4 = vshll.u32 %v3225_v10, 16  ;;  %v3472_v45 = vmul.bf16 %v6228_v41, %v5635_v33 }
 0x14e   : > { %v3145_v16 = vadd.bf16 %v3093_v1, %v3009_v3  ;;  %v3313_v25 = vrot.slane %v3311_v26, 4  ;;  %v3316_v30 = vrot.slane %v3314_v60, 5  ;;  %v3322_v0 = vrot.slane %v3320_v55, 5 }
 0x14f   : > { %v3204_v27 = vadd.bf16 %v3188_v28, %v3144_v19  ;;  %v3326_v8 = vrot.slane %v3324_v58, 4  ;;  %v3332_v2 = vrot.slane %v3330_v4, 5  ;;  %v3473_v52 = vmul.bf16 %v6231_v53, %v5617_v51 }
 0x150   : > { %v3205_v32 = vadd.bf16 %v3189_v36, %v3145_v16  ;;  %v3317_v50 = vor.u32 %v3316_v30, %v3313_v25  ;;  %v4770_v6 = vrot.slane %v3471_v40, 9  ;;  %v3533_v9 = vrot.slane %v3472_v45, 5 }
 0x151   : > { %v3327_v14 = vor.u32 %v3326_v8, %v3322_v0  ;;  %v3536_v21 = vrot.slane %v3473_v52, 5  ;;  %v4621_v10 = vcombine.low %v6190_v48, %v6192_v22  ;;  %v353_v11 = vmul.bf16 %v5907_v20, %v7435_v38 }
 0x152   : > { %v3318_v1 = vrot.slane %v3317_v50, 4  ;;  %v3534_v28 = vsel %vm5511_vm10, %v4770_v6, %v3533_v9  ;;  %v3535_v3 = vrot.slane %v3533_v9, 4  ;;  %v354_v26 = vmul.bf16 %v5913_v35, %v5967_v46  ;;  %v7442_v9 = vld [vmem:[#allocation18_spill] sm:$0xff] }
 0x153   : > { %v3328_v36 = vrot.slane %v3327_v14, 4  ;;  %2086 = vmatmul.mubr.bf16.gmra.mxu0 %v4621_v10  ;;  %v369_v25 = vadd.bf16 0, %v353_v11  ;;  %v412_v40 = vmul.bf16 %v7435_v38, %v5482_v39  ;;  %v413_v48 = vmul.bf16 %v5967_v46, %v5497_v49 }
 0x154   : > { %v3323_v20 = vsel %vm5536_vm11, %v3318_v1, %v3322_v0  ;;  %v3537_v22 = vsel %vm5511_vm10, %v3535_v3, %v3536_v21  ;;  %v370_v60 = vadd.bf16 0, %v354_v26  ;;  %v414_v55 = vmul.bf16 %v7442_v9, %v5484_v42 }
 0x155   : > { %v3333_v35 = vsel %vm5536_vm11, %v3328_v36, %v3332_v2  ;;  %v3452_v19 = vadd.bf16 %v3323_v20, %v3204_v27  ;;  %v524_v58 = vshrl.u32 %v412_v40, 16  ;;  %v527_v4 = vshll.u32 %v412_v40, 16  ;;  %v7443_v36 = vld [vmem:[#allocation16_spill] sm:$0xff] }
 0x156   : > { %v3453_v45 = vadd.bf16 %v3333_v35, %v3205_v32  ;;  %v533_v16 = vshll.u32 %v413_v48, 16  ;;  %v537_v30 = vshrl.u32 %v413_v48, 16  ;;  %v543_v8 = vshll.u32 %v414_v55, 16 }
 0x157   : > { %v3588_v52 = vadd.bf16 %v3534_v28, %v3452_v19  ;;  %v526_v50 = vrot.slane %v524_v58, 4  ;;  %v529_v0 = vrot.slane %v527_v4, 5  ;;  %v676_v6 = vmul.bf16 %v7435_v38, %v5457_v24 }
 0x158   : > { %v3589_v14 = vadd.bf16 %v3537_v22, %v3453_v45  ;;  %v535_v21 = vrot.slane %v533_v16, 5  ;;  %v539_v10 = vrot.slane %v537_v30, 4  ;;  %v545_v11 = vrot.slane %v543_v8, 5 }
 0x159   : > { %v530_v1 = vor.u32 %v529_v0, %v526_v50  ;;  %v677_v27 = vmul.bf16 %v5967_v46, %v5491_v47  ;;  %v678_v2 = vmul.bf16 %v7442_v9, %v5477_v34  ;;  %v4547_v32 = vrot.slane %v676_v6, 9 }
 0x15a   : > { %v4782_v3 = vcombine.high %v3588_v52, %v3589_v14  ;;  %v4781_v26 = vcombine.low %v3588_v52, %v3589_v14  ;;  %v540_v28 = vor.u32 %v539_v10, %v535_v21  ;;  %v839_v40 = vmul.bf16 %v5935_v13, %v7443_v36 }
 0x15b   : > { %v531_v48 = vrot.slane %v530_v1, 4  ;;  %v745_v38 = vrot.slane %v677_v27, 5  ;;  %v748_v20 = vrot.slane %v678_v2, 5  ;;  %v840_v22 = vmul.bf16 %v5939_v54, %v6141_v59 }
 0x15c   : > { %3932 = vmatprep.mubr.bf16.mxu1 %v4782_v3  ;;  %v541_v55 = vrot.slane %v540_v28, 4  ;;  %v895_v46 = vmul.bf16 %v7443_v36, %v5545_v37  ;;  %v896_v9 = vmul.bf16 %v6141_v59, %v5578_v7  ;;  %v897_v35 = vmul.bf16 %v6144_v44, %v5569_v62 }
 0x15d   : > { %3933 = vmatmul.mubr.bf16.gmra.mxu1 %v4781_v26  ;;  %v536_v13 = vsel %vm5536_vm11, %v531_v48, %v535_v21  ;;  %v746_v19 = vsel %vm5511_vm10, %v4547_v32, %v745_v38  ;;  %v747_v58 = vrot.slane %v745_v38, 4  ;;  %v1153_v54 = vmul.bf16 %v7443_v36, %v5547_v43  ;;  %v6308_v26 = vld [vmem:[%s5445_s11 + $0x90] sm:$0xff] }
 0x15e   : > { %v546_v4 = vsel %vm5536_vm11, %v541_v55, %v545_v11  ;;  %v643_v45 = vadd.bf16 %v536_v13, %v369_v25  ;;  %v1004_v16 = vshrl.u32 %v895_v46, 16  ;;  %v1007_v30 = vshll.u32 %v895_v46, 16  ;;  %v6311_v55 = vld [vmem:[%s5445_s11 + $0x98] sm:$0xff]  ;;  %v6314_v46 = vld [vmem:[%s5445_s11 + $0xa0] sm:$0xff] }
 0x15f   : > { %v644_v8 = vadd.bf16 %v546_v4, %v370_v60  ;;  %v749_v52 = vsel %vm5511_vm10, %v747_v58, %v748_v20  ;;  %v1013_v50 = vshll.u32 %v896_v9, 16  ;;  %v1017_v0 = vshrl.u32 %v896_v9, 16 }
 0x160   : > { %v795_v6 = vadd.bf16 %v746_v19, %v643_v45  ;;  %v1006_v14 = vrot.slane %v1004_v16, 4  ;;  %v1009_v21 = vrot.slane %v1007_v30, 5  ;;  %v1023_v10 = vshll.u32 %v897_v35, 16 }
 0x161   : > { %v796_v1 = vadd.bf16 %v749_v52, %v644_v8  ;;  %v1015_v27 = vrot.slane %v1013_v50, 5  ;;  %v1019_v2 = vrot.slane %v1017_v0, 4  ;;  %v1154_v25 = vmul.bf16 %v6141_v59, %v5574_v5 }
 0x162   : > { %v855_v11 = vadd.bf16 %v839_v40, %v795_v6  ;;  %v1010_v60 = vor.u32 %v1009_v21, %v1006_v14  ;;  %v1025_v32 = vrot.slane %v1023_v10, 5  ;;  %v1155_v3 = vmul.bf16 %v6144_v44, %v5562_v56 }
 0x163   : > { %v856_v28 = vadd.bf16 %v840_v22, %v796_v1  ;;  %v1020_v48 = vor.u32 %v1019_v2, %v1015_v27  ;;  %v4579_v38 = vrot.slane %v1153_v54, 9  ;;  %v1219_v20 = vrot.slane %v1154_v25, 5 }
 0x164   : > { %v1011_v9 = vrot.slane %v1010_v60, 4  ;;  %v1222_v35 = vrot.slane %v1155_v3, 5  ;;  %v1313_v40 = vmul.bf16 %v5972_v18, %v6308_v26  ;;  %v1314_v13 = vmul.bf16 %v5976_v17, %v6311_v55 }
 0x165   : > { %v1021_v19 = vrot.slane %v1020_v48, 4  ;;  %v1220_v58 = vsel %vm5511_vm10, %v4579_v38, %v1219_v20  ;;  %v1221_v22 = vrot.slane %v1219_v20, 4  ;;  %v1369_v54 = vmul.bf16 %v6308_v26, %v5608_v15 }
 0x166   : > { %v1016_v4 = vsel %vm5536_vm11, %v1011_v9, %v1015_v27  ;;  %v1370_v45 = vmul.bf16 %v6311_v55, %v5627_v57  ;;  %v1371_v18 = vmul.bf16 %v6314_v46, %v7424_v23  ;;  %v1627_v17 = vmul.bf16 %v6308_v26, %v5603_v12 }
 0x167   : > { %v1026_v16 = vsel %vm5536_vm11, %v1021_v19, %v1025_v32  ;;  %v1123_v30 = vadd.bf16 %v1016_v4, %v855_v11  ;;  %v1223_v8 = vsel %vm5511_vm10, %v1221_v22, %v1222_v35  ;;  %v1478_v52 = vshrl.u32 %v1369_v54, 16 }
 0x168   : > { %v1124_v50 = vadd.bf16 %v1026_v16, %v856_v28  ;;  %v1481_v0 = vshll.u32 %v1369_v54, 16  ;;  %v1487_v6 = vshll.u32 %v1370_v45, 16  ;;  %v1491_v14 = vshrl.u32 %v1370_v45, 16  ;;  %v6344_v54 = vld [vmem:[#allocation5 + $0x8] sm:$0xff] }
 0x169   : > { %v1269_v21 = vadd.bf16 %v1220_v58, %v1123_v30  ;;  %v1480_v10 = vrot.slane %v1478_v52, 4  ;;  %v1497_v1 = vshll.u32 %v1371_v18, 16  ;;  %v1628_v27 = vmul.bf16 %v6311_v55, %v5635_v33  ;;  %v6340_v58 = vld [vmem:[#allocation5] sm:$0xff]  ;;  %v7444_v52 = vld [vmem:[#allocation20_spill] sm:$0xff] }
 0x16a   : > { %v1270_v2 = vadd.bf16 %v1223_v8, %v1124_v50  ;;  %v1483_v25 = vrot.slane %v1481_v0, 5  ;;  %v1489_v60 = vrot.slane %v1487_v6, 5  ;;  %v1493_v3 = vrot.slane %v1491_v14, 4 }
 0x16b   : > { %v1329_v32 = vadd.bf16 %v1313_v40, %v1269_v21  ;;  %v1499_v11 = vrot.slane %v1497_v1, 5  ;;  %v1629_v48 = vmul.bf16 %v6314_v46, %v5617_v51  ;;  %v4611_v38 = vrot.slane %v1627_v17, 9 }
 0x16c   : > { %v1330_v28 = vadd.bf16 %v1314_v13, %v1270_v2  ;;  %v1484_v20 = vor.u32 %v1483_v25, %v1480_v10  ;;  %v1494_v9 = vor.u32 %v1493_v3, %v1489_v60  ;;  %v1693_v35 = vrot.slane %v1628_v27, 5 }
 0x16d   : > { %v1696_v19 = vrot.slane %v1629_v48, 5  ;;  %v2302_v22 = vmul.bf16 %v6340_v58, %v6055_v29  ;;  %v2303_v40 = vmul.bf16 %v6344_v54, %v7437_v61  ;;  %v2338_v4 = vmul.bf16 %v6055_v29, %v5482_v39 }
 0x16e   : > { %v1485_v45 = vrot.slane %v1484_v20, 4  ;;  %v1495_v18 = vrot.slane %v1494_v9, 4  ;;  %v1694_v13 = vsel %vm5511_vm10, %v4611_v38, %v1693_v35  ;;  %v1695_v17 = vrot.slane %v1693_v35, 4 }
 0x16f   : > { %v2318_v16 = vadd.bf16 0, %v2302_v22  ;;  %v2319_v30 = vadd.bf16 0, %v2303_v40  ;;  %v2339_v8 = vmul.bf16 %v7437_v61, %v5497_v49  ;;  %v2340_v50 = vmul.bf16 %v7444_v52, %v5484_v42 }
 0x170   : > { %v1490_v0 = vsel %vm5536_vm11, %v1485_v45, %v1489_v60  ;;  %v1500_v6 = vsel %vm5536_vm11, %v1495_v18, %v1499_v11  ;;  %v1697_v14 = vsel %vm5511_vm10, %v1695_v17, %v1696_v19  ;;  %v2447_v21 = vshrl.u32 %v2338_v4, 16  ;;  %v7445_v45 = vld [vmem:[#allocation21_spill] sm:$0xff] }
 0x171   : > { %v1597_v10 = vadd.bf16 %v1490_v0, %v1329_v32  ;;  %v1598_v1 = vadd.bf16 %v1500_v6, %v1330_v28  ;;  %v2450_v27 = vshll.u32 %v2338_v4, 16  ;;  %v2456_v2 = vshll.u32 %v2339_v8, 16 }
 0x172   : > { %v2449_v25 = vrot.slane %v2447_v21, 4  ;;  %v2460_v3 = vshrl.u32 %v2339_v8, 16  ;;  %v2466_v48 = vshll.u32 %v2340_v50, 16  ;;  %v2586_v38 = vmul.bf16 %v6055_v29, %v5457_v24  ;;  %v6374_v29 = vld [vmem:[#allocation5 + $0x30] sm:$0xff]  ;;  %v6378_v50 = vld [vmem:[#allocation5 + $0x38] sm:$0xff] }
 0x173   : > { %v6364_v20 = vadd.bf16 %v1694_v13, %v1597_v10  ;;  %v6366_v60 = vadd.bf16 %v1697_v14, %v1598_v1  ;;  %v2452_v9 = vrot.slane %v2450_v27, 5  ;;  %v2458_v11 = vrot.slane %v2456_v2, 5 }
 0x174   : > { %v2462_v35 = vrot.slane %v2460_v3, 4  ;;  %v2468_v22 = vrot.slane %v2466_v48, 5  ;;  %v2587_v32 = vmul.bf16 %v7437_v61, %v5491_v47  ;;  %v2588_v28 = vmul.bf16 %v7444_v52, %v5477_v34 }
 0x175   : > { %v4624_v19 = vcombine.high %v6364_v20, %v6366_v60  ;;  %v2453_v40 = vor.u32 %v2452_v9, %v2449_v25  ;;  %v4707_v4 = vrot.slane %v2586_v38, 9  ;;  %v2746_v18 = vmul.bf16 %v6374_v29, %v7445_v45 }
 0x176   : > { %v2463_v13 = vor.u32 %v2462_v35, %v2458_v11  ;;  %v2652_v17 = vrot.slane %v2587_v32, 5  ;;  %v2655_v8 = vrot.slane %v2588_v28, 5  ;;  %v2747_v61 = vmul.bf16 %v6378_v50, %v6228_v41 }
 0x177   : > { %2095 = vmatprep.mubr.bf16.mxu0 %v4624_v19  ;;  %v2454_v52 = vrot.slane %v2453_v40, 4  ;;  %v2782_v0 = vmul.bf16 %v7445_v45, %v5545_v37  ;;  %v2783_v6 = vmul.bf16 %v6228_v41, %v5578_v7  ;;  %v2784_v14 = vmul.bf16 %v6231_v53, %v5569_v62 }
 0x178   : > { %v2464_v21 = vrot.slane %v2463_v13, 4  ;;  %v2653_v10 = vsel %vm5511_vm10, %v4707_v4, %v2652_v17  ;;  %v2654_v1 = vrot.slane %v2652_v17, 4  ;;  %v3030_v27 = vmul.bf16 %v7445_v45, %v5547_v43 }
 0x179   : > { %v2459_v2 = vsel %vm5536_vm11, %v2454_v52, %v2458_v11  ;;  %v2891_v25 = vshrl.u32 %v2782_v0, 16  ;;  %v2894_v3 = vshll.u32 %v2782_v0, 16  ;;  %v2900_v48 = vshll.u32 %v2783_v6, 16 }
 0x17a   : > { %v2469_v38 = vsel %vm5536_vm11, %v2464_v21, %v2468_v22  ;;  %v2566_v9 = vadd.bf16 %v2459_v2, %v2318_v16  ;;  %v2656_v35 = vsel %vm5511_vm10, %v2654_v1, %v2655_v8  ;;  %v2904_v32 = vshrl.u32 %v2783_v6, 16  ;;  %v6403_v2 = vld [vmem:[%s5445_s11 + $0x150] sm:$0xff] }
 0x17b   : > { %v2567_v28 = vadd.bf16 %v2469_v38, %v2319_v30  ;;  %v2893_v19 = vrot.slane %v2891_v25, 4  ;;  %v2896_v40 = vrot.slane %v2894_v3, 5  ;;  %v2902_v4 = vrot.slane %v2900_v48, 5  ;;  %7446 = vst [vmem:[#allocation19_spill] sm:$0xff] %v6403_v2  ;;  %v6406_v25 = vld [vmem:[%s5445_s11 + $0x158] sm:$0xff]  ;;  %v6411_v38 = vld [vmem:[#allocation5 + $0x60] sm:$0xff] }
 0x17c   : > { %v2702_v13 = vadd.bf16 %v2653_v10, %v2566_v9  ;;  %v2906_v11 = vrot.slane %v2904_v32, 4  ;;  %v2910_v17 = vshll.u32 %v2784_v14, 16  ;;  %v3031_v52 = vmul.bf16 %v6228_v41, %v5574_v5  ;;  %v6409_v10 = vld [vmem:[%s5445_s11 + $0x160] sm:$0xff]  ;;  %v6417_v32 = vld [vmem:[#allocation5 + $0x68] sm:$0xff] }
 0x17d   : > { %v2703_v0 = vadd.bf16 %v2656_v35, %v2567_v28  ;;  %v2897_v22 = vor.u32 %v2896_v40, %v2893_v19  ;;  %v3032_v16 = vmul.bf16 %v6231_v53, %v5562_v56  ;;  %v4739_v8 = vrot.slane %v3030_v27, 9  ;;  %7447 = vst [vmem:[#allocation18_spill] sm:$0xff] %v6409_v10 }
 0x17e   : > { %v2762_v6 = vadd.bf16 %v2746_v18, %v2702_v13  ;;  %v2907_v30 = vor.u32 %v2906_v11, %v2902_v4  ;;  %v2912_v21 = vrot.slane %v2910_v17, 5  ;;  %v3096_v1 = vrot.slane %v3031_v52, 5 }
 0x17f   : > { %v2763_v14 = vadd.bf16 %v2747_v61, %v2703_v0  ;;  %v2898_v3 = vrot.slane %v2897_v22, 4  ;;  %v3099_v48 = vrot.slane %v3032_v16, 5  ;;  %v3190_v9 = vmul.bf16 %v6411_v38, %v6403_v2 }
 0x180   : > { %v2908_v35 = vrot.slane %v2907_v30, 4  ;;  %v3097_v18 = vsel %vm5511_vm10, %v4739_v8, %v3096_v1  ;;  %v3098_v27 = vrot.slane %v3096_v1, 4  ;;  %v3191_v28 = vmul.bf16 %v6417_v32, %v6406_v25 }
 0x181   : > { %v2903_v61 = vsel %vm5536_vm11, %v2898_v3, %v2902_v4  ;;  %v3226_v19 = vmul.bf16 %v6403_v2, %v5608_v15  ;;  %v3227_v40 = vmul.bf16 %v6406_v25, %v5627_v57  ;;  %v3228_v13 = vmul.bf16 %v6409_v10, %v7424_v23 }
 0x182   : > { %v2913_v11 = vsel %vm5536_vm11, %v2908_v35, %v2912_v21  ;;  %v3010_v17 = vadd.bf16 %v2903_v61, %v2762_v6  ;;  %v3100_v52 = vsel %vm5511_vm10, %v3098_v27, %v3099_v48  ;;  %v3474_v0 = vmul.bf16 %v6403_v2, %v5603_v12 }
 0x183   : > { %v3011_v4 = vadd.bf16 %v2913_v11, %v2763_v14  ;;  %v3335_v22 = vshrl.u32 %v3226_v19, 16  ;;  %v3338_v16 = vshll.u32 %v3226_v19, 16  ;;  %v3344_v8 = vshll.u32 %v3227_v40, 16 }
 0x184   : > { %v3146_v30 = vadd.bf16 %v3097_v18, %v3010_v17  ;;  %v3348_v1 = vshrl.u32 %v3227_v40, 16  ;;  %v3354_v3 = vshll.u32 %v3228_v13, 16  ;;  %v3475_v53 = vmul.bf16 %v6406_v25, %v5635_v33 }
 0x185   : > { %v3147_v41 = vadd.bf16 %v3100_v52, %v3011_v4  ;;  %v3337_v45 = vrot.slane %v3335_v22, 4  ;;  %v3340_v21 = vrot.slane %v3338_v16, 5  ;;  %v3346_v6 = vrot.slane %v3344_v8, 5 }
 0x186   : > { %v3206_v35 = vadd.bf16 %v3190_v9, %v3146_v30  ;;  %v3350_v61 = vrot.slane %v3348_v1, 4  ;;  %v3356_v48 = vrot.slane %v3354_v3, 5  ;;  %v3476_v27 = vmul.bf16 %v6409_v10, %v5617_v51 }
 0x187   : > { %v3207_v14 = vadd.bf16 %v3191_v28, %v3147_v41  ;;  %v3341_v11 = vor.u32 %v3340_v21, %v3337_v45  ;;  %v4771_v19 = vrot.slane %v3474_v0, 9  ;;  %v3540_v2 = vrot.slane %v3475_v53, 5 }
 0x188   : > { %v3351_v18 = vor.u32 %v3350_v61, %v3346_v6  ;;  %v3543_v40 = vrot.slane %v3476_v27, 5  ;;  %v4623_v13 = vcombine.low %v6364_v20, %v6366_v60  ;;  %v355_v17 = vmul.bf16 %v6340_v58, %v7443_v36 }
 0x189   : > { %v3342_v52 = vrot.slane %v3341_v11, 4  ;;  %v3541_v9 = vsel %vm5511_vm10, %v4771_v19, %v3540_v2  ;;  %v3542_v4 = vrot.slane %v3540_v2, 4  ;;  %v356_v22 = vmul.bf16 %v6344_v54, %v6141_v59 }
 0x18a   : > { %v3352_v41 = vrot.slane %v3351_v18, 4  ;;  %2096 = vmatmul.mubr.bf16.gmra.mxu0 %v4623_v13  ;;  %v371_v45 = vadd.bf16 0, %v355_v17  ;;  %v415_v53 = vmul.bf16 %v7443_v36, %v5482_v39  ;;  %v416_v20 = vmul.bf16 %v6141_v59, %v5497_v49 }
 0x18b   : > { %v3347_v60 = vsel %vm5536_vm11, %v3342_v52, %v3346_v6  ;;  %v3544_v28 = vsel %vm5511_vm10, %v3542_v4, %v3543_v40  ;;  %v372_v0 = vadd.bf16 0, %v356_v22  ;;  %v417_v2 = vmul.bf16 %v6144_v44, %v5484_v42 }
 0x18c   : > { %v3357_v16 = vsel %vm5536_vm11, %v3352_v41, %v3356_v48  ;;  %v3454_v8 = vadd.bf16 %v3347_v60, %v3206_v35  ;;  %v548_v30 = vshrl.u32 %v415_v53, 16  ;;  %v551_v1 = vshll.u32 %v415_v53, 16 }
 0x18d   : > { %v3455_v3 = vadd.bf16 %v3357_v16, %v3207_v14  ;;  %v557_v21 = vshll.u32 %v416_v20, 16  ;;  %v561_v61 = vshrl.u32 %v416_v20, 16  ;;  %v567_v27 = vshll.u32 %v417_v2, 16 }
 0x18e   : > { %v3590_v11 = vadd.bf16 %v3541_v9, %v3454_v8  ;;  %v550_v19 = vrot.slane %v548_v30, 4  ;;  %v553_v6 = vrot.slane %v551_v1, 5  ;;  %v679_v18 = vmul.bf16 %v7443_v36, %v5457_v24 }
 0x18f   : > { %v3591_v40 = vadd.bf16 %v3544_v28, %v3455_v3  ;;  %v559_v13 = vrot.slane %v557_v21, 5  ;;  %v563_v17 = vrot.slane %v561_v61, 4  ;;  %v569_v52 = vrot.slane %v567_v27, 5 }
 0x190   : > { %v554_v4 = vor.u32 %v553_v6, %v550_v19  ;;  %v680_v35 = vmul.bf16 %v6141_v59, %v5491_v47  ;;  %v681_v48 = vmul.bf16 %v6144_v44, %v5477_v34  ;;  %v4548_v14 = vrot.slane %v679_v18, 9 }
 0x191   : > { %v4784_v22 = vcombine.high %v3590_v11, %v3591_v40  ;;  %v4783_v41 = vcombine.low %v3590_v11, %v3591_v40  ;;  %v564_v9 = vor.u32 %v563_v17, %v559_v13  ;;  %v841_v53 = vmul.bf16 %v6374_v29, %v6308_v26 }
 0x192   : > { %v555_v20 = vrot.slane %v554_v4, 4  ;;  %v752_v36 = vrot.slane %v680_v35, 5  ;;  %v755_v60 = vrot.slane %v681_v48, 5  ;;  %v842_v28 = vmul.bf16 %v6378_v50, %v6311_v55 }
 0x193   : > { %3942 = vmatprep.mubr.bf16.mxu1 %v4784_v22  ;;  %v565_v2 = vrot.slane %v564_v9, 4  ;;  %v898_v59 = vmul.bf16 %v6308_v26, %v5545_v37  ;;  %v899_v44 = vmul.bf16 %v6311_v55, %v5578_v7  ;;  %v900_v16 = vmul.bf16 %v6314_v46, %v5569_v62 }
 0x194   : > { %3943 = vmatmul.mubr.bf16.gmra.mxu1 %v4783_v41  ;;  %v560_v8 = vsel %vm5536_vm11, %v555_v20, %v559_v13  ;;  %v753_v30 = vsel %vm5511_vm10, %v4548_v14, %v752_v36  ;;  %v754_v1 = vrot.slane %v752_v36, 4  ;;  %v1156_v3 = vmul.bf16 %v6308_v26, %v5547_v43  ;;  %v6490_v20 = vld [vmem:[%s5445_s11 + $0xa8] sm:$0xff] }
 0x195   : > { %v570_v21 = vsel %vm5536_vm11, %v565_v2, %v569_v52  ;;  %v645_v61 = vadd.bf16 %v560_v8, %v371_v45  ;;  %v1028_v27 = vshrl.u32 %v898_v59, 16  ;;  %v1031_v11 = vshll.u32 %v898_v59, 16 }
 0x196   : > { %v646_v19 = vadd.bf16 %v570_v21, %v372_v0  ;;  %v756_v6 = vsel %vm5511_vm10, %v754_v1, %v755_v60  ;;  %v1037_v18 = vshll.u32 %v899_v44, 16  ;;  %v1041_v40 = vshrl.u32 %v899_v44, 16  ;;  %v6493_v44 = vld [vmem:[%s5445_s11 + $0xb0] sm:$0xff] }
 0x197   : > { %v797_v13 = vadd.bf16 %v753_v30, %v645_v61  ;;  %v1030_v17 = vrot.slane %v1028_v27, 4  ;;  %v1033_v4 = vrot.slane %v1031_v11, 5  ;;  %v1047_v35 = vshll.u32 %v900_v16, 16  ;;  %v6496_v16 = vld [vmem:[%s5445_s11 + $0xb8] sm:$0xff] }
 0x198   : > { %v798_v48 = vadd.bf16 %v756_v6, %v646_v19  ;;  %v1039_v14 = vrot.slane %v1037_v18, 5  ;;  %v1043_v22 = vrot.slane %v1041_v40, 4  ;;  %v1157_v45 = vmul.bf16 %v6311_v55, %v5574_v5  ;;  %7448 = vst [vmem:[#allocation16_spill] sm:$0xff] %v6496_v16 }
 0x199   : > { %v857_v52 = vadd.bf16 %v841_v53, %v797_v13  ;;  %v1034_v0 = vor.u32 %v1033_v4, %v1030_v17  ;;  %v1049_v41 = vrot.slane %v1047_v35, 5  ;;  %v1158_v9 = vmul.bf16 %v6314_v46, %v5562_v56 }
 0x19a   : > { %v858_v36 = vadd.bf16 %v842_v28, %v798_v48  ;;  %v1044_v60 = vor.u32 %v1043_v22, %v1039_v14  ;;  %v4580_v2 = vrot.slane %v1156_v3, 9  ;;  %v1226_v59 = vrot.slane %v1157_v45, 5 }
 0x19b   : > { %v1035_v8 = vrot.slane %v1034_v0, 4  ;;  %v1229_v30 = vrot.slane %v1158_v9, 5  ;;  %v1315_v53 = vmul.bf16 %v6411_v38, %v6490_v20  ;;  %v1316_v1 = vmul.bf16 %v6417_v32, %v6493_v44 }
 0x19c   : > { %v1045_v21 = vrot.slane %v1044_v60, 4  ;;  %v1227_v61 = vsel %vm5511_vm10, %v4580_v2, %v1226_v59  ;;  %v1228_v28 = vrot.slane %v1226_v59, 4  ;;  %v1372_v3 = vmul.bf16 %v6490_v20, %v5608_v15 }
 0x19d   : > { %v1040_v27 = vsel %vm5536_vm11, %v1035_v8, %v1039_v14  ;;  %v1373_v11 = vmul.bf16 %v6493_v44, %v5627_v57  ;;  %v1374_v19 = vmul.bf16 %v6496_v16, %v7424_v23  ;;  %v1630_v6 = vmul.bf16 %v6490_v20, %v5603_v12 }
 0x19e   : > { %v1050_v18 = vsel %vm5536_vm11, %v1045_v21, %v1049_v41  ;;  %v1125_v40 = vadd.bf16 %v1040_v27, %v857_v52  ;;  %v1230_v13 = vsel %vm5511_vm10, %v1228_v28, %v1229_v30  ;;  %v1502_v17 = vshrl.u32 %v1372_v3, 16 }
 0x19f   : > { %v1126_v4 = vadd.bf16 %v1050_v18, %v858_v36  ;;  %v1505_v35 = vshll.u32 %v1372_v3, 16  ;;  %v1511_v48 = vshll.u32 %v1373_v11, 16  ;;  %v1515_v14 = vshrl.u32 %v1373_v11, 16  ;;  %v7449_v11 = vld [vmem:[#allocation21_spill] sm:$0xff]  ;;  %v7450_v18 = vld [vmem:[#allocation22_spill] sm:$0xff] }
 0x1a0   : > { %v1271_v22 = vadd.bf16 %v1227_v61, %v1125_v40  ;;  %v1504_v45 = vrot.slane %v1502_v17, 4  ;;  %v1521_v0 = vshll.u32 %v1374_v19, 16  ;;  %v1631_v9 = vmul.bf16 %v6493_v44, %v5635_v33 }
 0x1a1   : > { %v1272_v60 = vadd.bf16 %v1230_v13, %v1126_v4  ;;  %v1507_v2 = vrot.slane %v1505_v35, 5  ;;  %v1513_v59 = vrot.slane %v1511_v48, 5  ;;  %v1517_v8 = vrot.slane %v1515_v14, 4  ;;  %v7451_v14 = vld [vmem:[#allocation17_spill] sm:$0xff] }
 0x1a2   : > { %v1331_v41 = vadd.bf16 %v1315_v53, %v1271_v22  ;;  %v1523_v52 = vrot.slane %v1521_v0, 5  ;;  %v1632_v30 = vmul.bf16 %v6496_v16, %v5617_v51  ;;  %v4612_v21 = vrot.slane %v1630_v6, 9 }
 0x1a3   : > { %v1332_v36 = vadd.bf16 %v1316_v1, %v1272_v60  ;;  %v1508_v28 = vor.u32 %v1507_v2, %v1504_v45  ;;  %v1518_v3 = vor.u32 %v1517_v8, %v1513_v59  ;;  %v1700_v27 = vrot.slane %v1631_v9, 5 }
 0x1a4   : > { %v1703_v61 = vrot.slane %v1632_v30, 5  ;;  %v2304_v19 = vmul.bf16 %v6340_v58, %v7449_v11  ;;  %v2305_v40 = vmul.bf16 %v6344_v54, %v7450_v18  ;;  %v2341_v13 = vmul.bf16 %v7449_v11, %v5482_v39 }
 0x1a5   : > { %v1509_v53 = vrot.slane %v1508_v28, 4  ;;  %v1519_v17 = vrot.slane %v1518_v3, 4  ;;  %v1701_v4 = vsel %vm5511_vm10, %v4612_v21, %v1700_v27  ;;  %v1702_v6 = vrot.slane %v1700_v27, 4 }
 0x1a6   : > { %v2320_v1 = vadd.bf16 0, %v2304_v19  ;;  %v2321_v35 = vadd.bf16 0, %v2305_v40  ;;  %v2342_v48 = vmul.bf16 %v7450_v18, %v5497_v49  ;;  %v2343_v22 = vmul.bf16 %v7451_v14, %v5484_v42 }
 0x1a7   : > { %v1514_v45 = vsel %vm5536_vm11, %v1509_v53, %v1513_v59  ;;  %v1524_v0 = vsel %vm5536_vm11, %v1519_v17, %v1523_v52  ;;  %v1704_v9 = vsel %vm5511_vm10, %v1702_v6, %v1703_v61  ;;  %v2471_v60 = vshrl.u32 %v2341_v13, 16 }
 0x1a8   : > { %v1599_v2 = vadd.bf16 %v1514_v45, %v1331_v41  ;;  %v1600_v8 = vadd.bf16 %v1524_v0, %v1332_v36  ;;  %v2474_v30 = vshll.u32 %v2341_v13, 16  ;;  %v2480_v21 = vshll.u32 %v2342_v48, 16 }
 0x1a9   : > { %v2473_v28 = vrot.slane %v2471_v60, 4  ;;  %v2484_v3 = vshrl.u32 %v2342_v48, 16  ;;  %v2490_v27 = vshll.u32 %v2343_v22, 16  ;;  %v2589_v19 = vmul.bf16 %v7449_v11, %v5457_v24  ;;  %v7452_v11 = vld [vmem:[#allocation19_spill] sm:$0xff] }
 0x1aa   : > { %v6542_v40 = vadd.bf16 %v1701_v4, %v1599_v2  ;;  %v6544_v59 = vadd.bf16 %v1704_v9, %v1600_v8  ;;  %v2476_v53 = vrot.slane %v2474_v30, 5  ;;  %v2482_v52 = vrot.slane %v2480_v21, 5 }
 0x1ab   : > { %v2486_v17 = vrot.slane %v2484_v3, 4  ;;  %v2492_v16 = vrot.slane %v2490_v27, 5  ;;  %v2590_v41 = vmul.bf16 %v7450_v18, %v5491_v47  ;;  %v2591_v36 = vmul.bf16 %v7451_v14, %v5477_v34 }
 0x1ac   : > { %v4626_v61 = vcombine.high %v6542_v40, %v6544_v59  ;;  %v2477_v13 = vor.u32 %v2476_v53, %v2473_v28  ;;  %v4708_v6 = vrot.slane %v2589_v19, 9  ;;  %v2748_v4 = vmul.bf16 %v6374_v29, %v7452_v11 }
 0x1ad   : > { %v2487_v48 = vor.u32 %v2486_v17, %v2482_v52  ;;  %v2659_v22 = vrot.slane %v2590_v41, 5  ;;  %v2662_v45 = vrot.slane %v2591_v36, 5  ;;  %v2749_v0 = vmul.bf16 %v6378_v50, %v6406_v25 }
 0x1ae   : > { %2105 = vmatprep.mubr.bf16.mxu0 %v4626_v61  ;;  %v2478_v9 = vrot.slane %v2477_v13, 4  ;;  %v2785_v18 = vmul.bf16 %v7452_v11, %v5545_v37  ;;  %v2786_v14 = vmul.bf16 %v6406_v25, %v5578_v7  ;;  %v2787_v60 = vmul.bf16 %v6409_v10, %v5569_v62 }
 0x1af   : > { %v2488_v2 = vrot.slane %v2487_v48, 4  ;;  %v2660_v8 = vsel %vm5511_vm10, %v4708_v6, %v2659_v22  ;;  %v2661_v30 = vrot.slane %v2659_v22, 4  ;;  %v3033_v21 = vmul.bf16 %v7452_v11, %v5547_v43 }
 0x1b0   : > { %v2483_v28 = vsel %vm5536_vm11, %v2478_v9, %v2482_v52  ;;  %v2915_v3 = vshrl.u32 %v2785_v18, 16  ;;  %v2918_v27 = vshll.u32 %v2785_v18, 16  ;;  %v2924_v19 = vshll.u32 %v2786_v14, 16 }
 0x1b1   : > { %v2493_v53 = vsel %vm5536_vm11, %v2488_v2, %v2492_v16  ;;  %v2568_v17 = vadd.bf16 %v2483_v28, %v2320_v1  ;;  %v2663_v41 = vsel %vm5511_vm10, %v2661_v30, %v2662_v45  ;;  %v2928_v36 = vshrl.u32 %v2786_v14, 16  ;;  %v6577_v28 = vld [vmem:[%s5445_s11 + $0x168] sm:$0xff] }
 0x1b2   : > { %v2569_v61 = vadd.bf16 %v2493_v53, %v2321_v35  ;;  %v2917_v13 = vrot.slane %v2915_v3, 4  ;;  %v2920_v6 = vrot.slane %v2918_v27, 5  ;;  %v2926_v48 = vrot.slane %v2924_v19, 5  ;;  %7453 = vst [vmem:[#allocation20_spill] sm:$0xff] %v6577_v28  ;;  %v6580_v3 = vld [vmem:[%s5445_s11 + $0x170] sm:$0xff] }
 0x1b3   : > { %v2704_v22 = vadd.bf16 %v2660_v8, %v2568_v17  ;;  %v2930_v52 = vrot.slane %v2928_v36, 4  ;;  %v2934_v9 = vshll.u32 %v2787_v60, 16  ;;  %v3034_v18 = vmul.bf16 %v6406_v25, %v5574_v5  ;;  %v6583_v8 = vld [vmem:[%s5445_s11 + $0x178] sm:$0xff] }
 0x1b4   : > { %v2705_v11 = vadd.bf16 %v2663_v41, %v2569_v61  ;;  %v2921_v16 = vor.u32 %v2920_v6, %v2917_v13  ;;  %v3035_v1 = vmul.bf16 %v6409_v10, %v5562_v56  ;;  %v4740_v45 = vrot.slane %v3033_v21, 9 }
 0x1b5   : > { %v2764_v14 = vadd.bf16 %v2748_v4, %v2704_v22  ;;  %v2931_v35 = vor.u32 %v2930_v52, %v2926_v48  ;;  %v2936_v2 = vrot.slane %v2934_v9, 5  ;;  %v3103_v30 = vrot.slane %v3034_v18, 5 }
 0x1b6   : > { %v2765_v60 = vadd.bf16 %v2749_v0, %v2705_v11  ;;  %v2922_v27 = vrot.slane %v2921_v16, 4  ;;  %v3106_v19 = vrot.slane %v3035_v1, 5  ;;  %v3192_v53 = vmul.bf16 %v6411_v38, %v6577_v28 }
 0x1b7   : > { %v2932_v17 = vrot.slane %v2931_v35, 4  ;;  %v3104_v21 = vsel %vm5511_vm10, %v4740_v45, %v3103_v30  ;;  %v3105_v4 = vrot.slane %v3103_v30, 4  ;;  %v3193_v41 = vmul.bf16 %v6417_v32, %v6580_v3 }
 0x1b8   : > { %v2927_v36 = vsel %vm5536_vm11, %v2922_v27, %v2926_v48  ;;  %v3229_v61 = vmul.bf16 %v6577_v28, %v5608_v15  ;;  %v3230_v11 = vmul.bf16 %v6580_v3, %v5627_v57  ;;  %v3231_v0 = vmul.bf16 %v6583_v8, %v7424_v23 }
 0x1b9   : > { %v2937_v13 = vsel %vm5536_vm11, %v2932_v17, %v2936_v2  ;;  %v3012_v6 = vadd.bf16 %v2927_v36, %v2764_v14  ;;  %v3107_v22 = vsel %vm5511_vm10, %v3105_v4, %v3106_v19  ;;  %v3477_v52 = vmul.bf16 %v6577_v28, %v5603_v12 }
 0x1ba   : > { %v3013_v48 = vadd.bf16 %v2937_v13, %v2765_v60  ;;  %v3359_v9 = vshrl.u32 %v3229_v61, 16  ;;  %v3362_v18 = vshll.u32 %v3229_v61, 16  ;;  %v3368_v16 = vshll.u32 %v3230_v11, 16 }
 0x1bb   : > { %v3148_v1 = vadd.bf16 %v3104_v21, %v3012_v6  ;;  %v3372_v45 = vshrl.u32 %v3230_v11, 16  ;;  %v3378_v35 = vshll.u32 %v3231_v0, 16  ;;  %v3478_v30 = vmul.bf16 %v6580_v3, %v5635_v33 }
 0x1bc   : > { %v3149_v27 = vadd.bf16 %v3107_v22, %v3013_v48  ;;  %v3361_v10 = vrot.slane %v3359_v9, 4  ;;  %v3364_v2 = vrot.slane %v3362_v18, 5  ;;  %v3370_v14 = vrot.slane %v3368_v16, 5 }
 0x1bd   : > { %v3208_v17 = vadd.bf16 %v3192_v53, %v3148_v1  ;;  %v3374_v36 = vrot.slane %v3372_v45, 4  ;;  %v3380_v19 = vrot.slane %v3378_v35, 5  ;;  %v3479_v4 = vmul.bf16 %v6583_v8, %v5617_v51 }
 0x1be   : > { %v3209_v60 = vadd.bf16 %v3193_v41, %v3149_v27  ;;  %v3365_v13 = vor.u32 %v3364_v2, %v3361_v10  ;;  %v4772_v61 = vrot.slane %v3477_v52, 9  ;;  %v3547_v28 = vrot.slane %v3478_v30, 5 }
 0x1bf   : > { %v3375_v21 = vor.u32 %v3374_v36, %v3370_v14  ;;  %v3550_v11 = vrot.slane %v3479_v4, 5  ;;  %v4625_v0 = vcombine.low %v6542_v40, %v6544_v59  ;;  %v357_v6 = vmul.bf16 %v6340_v58, %v6308_v26 }
 0x1c0   : > { %v3366_v22 = vrot.slane %v3365_v13, 4  ;;  %v3548_v53 = vsel %vm5511_vm10, %v4772_v61, %v3547_v28  ;;  %v3549_v48 = vrot.slane %v3547_v28, 4  ;;  %v358_v9 = vmul.bf16 %v6344_v54, %v6311_v55 }
 0x1c1   : > { %v3376_v41 = vrot.slane %v3375_v21, 4  ;;  %2106 = vmatmul.mubr.bf16.gmra.mxu0 %v4625_v0  ;;  %v373_v10 = vadd.bf16 0, %v357_v6  ;;  %v418_v52 = vmul.bf16 %v6308_v26, %v5482_v39  ;;  %v419_v40 = vmul.bf16 %v6311_v55, %v5497_v49 }
 0x1c2   : > { %v3371_v59 = vsel %vm5536_vm11, %v3366_v22, %v3370_v14  ;;  %v3551_v18 = vsel %vm5511_vm10, %v3549_v48, %v3550_v11  ;;  %v374_v16 = vadd.bf16 0, %v358_v9  ;;  %v420_v28 = vmul.bf16 %v6314_v46, %v5484_v42 }
 0x1c3   : > { %v3381_v1 = vsel %vm5536_vm11, %v3376_v41, %v3380_v19  ;;  %v3456_v45 = vadd.bf16 %v3371_v59, %v3208_v17  ;;  %v572_v35 = vshrl.u32 %v418_v52, 16  ;;  %v575_v30 = vshll.u32 %v418_v52, 16 }
 0x1c4   : > { %v3457_v27 = vadd.bf16 %v3381_v1, %v3209_v60  ;;  %v581_v2 = vshll.u32 %v419_v40, 16  ;;  %v585_v36 = vshrl.u32 %v419_v40, 16  ;;  %v591_v4 = vshll.u32 %v420_v28, 16  ;;  %v7454_v1 = vld [vmem:[#allocation16_spill] sm:$0xff] }
 0x1c5   : > { %v3592_v13 = vadd.bf16 %v3548_v53, %v3456_v45  ;;  %v574_v61 = vrot.slane %v572_v35, 4  ;;  %v577_v14 = vrot.slane %v575_v30, 5  ;;  %v682_v21 = vmul.bf16 %v6308_v26, %v5457_v24 }
 0x1c6   : > { %v3593_v11 = vadd.bf16 %v3551_v18, %v3457_v27  ;;  %v583_v0 = vrot.slane %v581_v2, 5  ;;  %v587_v6 = vrot.slane %v585_v36, 4  ;;  %v593_v22 = vrot.slane %v591_v4, 5 }
 0x1c7   : > { %v578_v48 = vor.u32 %v577_v14, %v574_v61  ;;  %v683_v17 = vmul.bf16 %v6311_v55, %v5491_v47  ;;  %v684_v19 = vmul.bf16 %v6314_v46, %v5477_v34  ;;  %v4549_v60 = vrot.slane %v682_v21, 9 }
 0x1c8   : > { %v4786_v9 = vcombine.high %v3592_v13, %v3593_v11  ;;  %v4785_v41 = vcombine.low %v3592_v13, %v3593_v11  ;;  %v588_v53 = vor.u32 %v587_v6, %v583_v0  ;;  %v843_v52 = vmul.bf16 %v6374_v29, %v6490_v20 }
 0x1c9   : > { %v579_v40 = vrot.slane %v578_v48, 4  ;;  %v759_v26 = vrot.slane %v683_v17, 5  ;;  %v762_v59 = vrot.slane %v684_v19, 5  ;;  %v844_v18 = vmul.bf16 %v6378_v50, %v6493_v44 }
 0x1ca   : > { %3952 = vmatprep.mubr.bf16.mxu1 %v4786_v9  ;;  %v589_v28 = vrot.slane %v588_v53, 4  ;;  %v901_v55 = vmul.bf16 %v6490_v20, %v5545_v37  ;;  %v902_v46 = vmul.bf16 %v6493_v44, %v5578_v7  ;;  %v903_v45 = vmul.bf16 %v7454_v1, %v5569_v62 }
 0x1cb   : > { %3953 = vmatmul.mubr.bf16.gmra.mxu1 %v4785_v41  ;;  %v584_v35 = vsel %vm5536_vm11, %v579_v40, %v583_v0  ;;  %v760_v30 = vsel %vm5511_vm10, %v4549_v60, %v759_v26  ;;  %v761_v27 = vrot.slane %v759_v26, 4  ;;  %v1159_v2 = vmul.bf16 %v6490_v20, %v5547_v43  ;;  %v6660_v26 = vld [vmem:[%s5445_s11 + $0xc0] sm:$0xff] }
 0x1cc   : > { %v594_v36 = vsel %vm5536_vm11, %v589_v28, %v593_v22  ;;  %v647_v4 = vadd.bf16 %v584_v35, %v373_v10  ;;  %v1052_v13 = vshrl.u32 %v901_v55, 16  ;;  %v1055_v61 = vshll.u32 %v901_v55, 16  ;;  %7455 = vst [vmem:[#allocation21_spill] sm:$0xff] %v6660_v26  ;;  %v6663_v35 = vld [vmem:[%s5445_s11 + $0xc8] sm:$0xff] }
 0x1cd   : > { %v648_v14 = vadd.bf16 %v594_v36, %v374_v16  ;;  %v763_v21 = vsel %vm5511_vm10, %v761_v27, %v762_v59  ;;  %v1061_v11 = vshll.u32 %v902_v46, 16  ;;  %v1065_v0 = vshrl.u32 %v902_v46, 16 }
 0x1ce   : > { %v799_v6 = vadd.bf16 %v760_v30, %v647_v4  ;;  %v1054_v48 = vrot.slane %v1052_v13, 4  ;;  %v1057_v17 = vrot.slane %v1055_v61, 5  ;;  %v1071_v19 = vshll.u32 %v903_v45, 16  ;;  %v6666_v45 = vld [vmem:[%s5445_s11 + $0xd0] sm:$0xff] }
 0x1cf   : > { %v800_v60 = vadd.bf16 %v763_v21, %v648_v14  ;;  %v1063_v9 = vrot.slane %v1061_v11, 5  ;;  %v1067_v41 = vrot.slane %v1065_v0, 4  ;;  %v1160_v10 = vmul.bf16 %v6493_v44, %v5574_v5 }
 0x1d0   : > { %v859_v22 = vadd.bf16 %v843_v52, %v799_v6  ;;  %v1058_v16 = vor.u32 %v1057_v17, %v1054_v48  ;;  %v1073_v53 = vrot.slane %v1071_v19, 5  ;;  %v1161_v40 = vmul.bf16 %v7454_v1, %v5562_v56 }
 0x1d1   : > { %v860_v59 = vadd.bf16 %v844_v18, %v800_v60  ;;  %v1068_v28 = vor.u32 %v1067_v41, %v1063_v9  ;;  %v4581_v55 = vrot.slane %v1159_v2, 9  ;;  %v1233_v46 = vrot.slane %v1160_v10, 5 }
 0x1d2   : > { %v1059_v30 = vrot.slane %v1058_v16, 4  ;;  %v1236_v27 = vrot.slane %v1161_v40, 5  ;;  %v1317_v52 = vmul.bf16 %v6411_v38, %v6660_v26  ;;  %v1318_v36 = vmul.bf16 %v6417_v32, %v6663_v35 }
 0x1d3   : > { %v1069_v4 = vrot.slane %v1068_v28, 4  ;;  %v1234_v13 = vsel %vm5511_vm10, %v4581_v55, %v1233_v46  ;;  %v1235_v18 = vrot.slane %v1233_v46, 4  ;;  %v1375_v2 = vmul.bf16 %v6660_v26, %v5608_v15 }
 0x1d4   : > { %v1064_v61 = vsel %vm5536_vm11, %v1059_v30, %v1063_v9  ;;  %v1376_v14 = vmul.bf16 %v6663_v35, %v5627_v57  ;;  %v1377_v21 = vmul.bf16 %v6666_v45, %v7424_v23  ;;  %v1633_v11 = vmul.bf16 %v6660_v26, %v5603_v12 }
 0x1d5   : > { %v1074_v0 = vsel %vm5536_vm11, %v1069_v4, %v1073_v53  ;;  %v1127_v6 = vadd.bf16 %v1064_v61, %v859_v22  ;;  %v1237_v48 = vsel %vm5511_vm10, %v1235_v18, %v1236_v27  ;;  %v1526_v17 = vshrl.u32 %v1375_v2, 16 }
 0x1d6   : > { %v1128_v19 = vadd.bf16 %v1074_v0, %v860_v59  ;;  %v1529_v60 = vshll.u32 %v1375_v2, 16  ;;  %v1535_v9 = vshll.u32 %v1376_v14, 16  ;;  %v1539_v41 = vshrl.u32 %v1376_v14, 16  ;;  %v7456_v14 = vld [vmem:[#allocation19_spill] sm:$0xff] }
 0x1d7   : > { %v1273_v10 = vadd.bf16 %v1234_v13, %v1127_v6  ;;  %v1528_v16 = vrot.slane %v1526_v17, 4  ;;  %v1545_v40 = vshll.u32 %v1377_v21, 16  ;;  %v1634_v28 = vmul.bf16 %v6663_v35, %v5635_v33 }
 0x1d8   : > { %v1274_v55 = vadd.bf16 %v1237_v48, %v1128_v19  ;;  %v1531_v46 = vrot.slane %v1529_v60, 5  ;;  %v1537_v30 = vrot.slane %v1535_v9, 5  ;;  %v1541_v26 = vrot.slane %v1539_v41, 4  ;;  %v7457_v60 = vld [vmem:[#allocation18_spill] sm:$0xff] }
 0x1d9   : > { %v1333_v53 = vadd.bf16 %v1317_v52, %v1273_v10  ;;  %v1547_v22 = vrot.slane %v1545_v40, 5  ;;  %v1635_v27 = vmul.bf16 %v6666_v45, %v5617_v51  ;;  %v4613_v4 = vrot.slane %v1633_v11, 9 }
 0x1da   : > { %v1334_v59 = vadd.bf16 %v1318_v36, %v1274_v55  ;;  %v1532_v18 = vor.u32 %v1531_v46, %v1528_v16  ;;  %v1542_v2 = vor.u32 %v1541_v26, %v1537_v30  ;;  %v1707_v61 = vrot.slane %v1634_v28, 5 }
 0x1db   : > { %v1710_v13 = vrot.slane %v1635_v27, 5  ;;  %v2306_v21 = vmul.bf16 %v6340_v58, %v7456_v14  ;;  %v2307_v0 = vmul.bf16 %v6344_v54, %v6406_v25  ;;  %v2344_v6 = vmul.bf16 %v7456_v14, %v5482_v39 }
 0x1dc   : > { %v1533_v52 = vrot.slane %v1532_v18, 4  ;;  %v1543_v48 = vrot.slane %v1542_v2, 4  ;;  %v1708_v17 = vsel %vm5511_vm10, %v4613_v4, %v1707_v61  ;;  %v1709_v11 = vrot.slane %v1707_v61, 4 }
 0x1dd   : > { %v2322_v36 = vadd.bf16 0, %v2306_v21  ;;  %v2323_v19 = vadd.bf16 0, %v2307_v0  ;;  %v2345_v26 = vmul.bf16 %v6406_v25, %v5497_v49  ;;  %v2346_v58 = vmul.bf16 %v7457_v60, %v5484_v42 }
 0x1de   : > { %v1538_v54 = vsel %vm5536_vm11, %v1533_v52, %v1537_v30  ;;  %v1548_v9 = vsel %vm5536_vm11, %v1543_v48, %v1547_v22  ;;  %v1711_v41 = vsel %vm5511_vm10, %v1709_v11, %v1710_v13  ;;  %v2495_v10 = vshrl.u32 %v2344_v6, 16 }
 0x1df   : > { %v1601_v16 = vadd.bf16 %v1538_v54, %v1333_v53  ;;  %v1602_v40 = vadd.bf16 %v1548_v9, %v1334_v59  ;;  %v2498_v28 = vshll.u32 %v2344_v6, 16  ;;  %v2504_v55 = vshll.u32 %v2345_v26, 16 }
 0x1e0   : > { %v2497_v46 = vrot.slane %v2495_v10, 4  ;;  %v2508_v27 = vshrl.u32 %v2345_v26, 16  ;;  %v2514_v4 = vshll.u32 %v2346_v58, 16  ;;  %v2592_v18 = vmul.bf16 %v7456_v14, %v5457_v24  ;;  %v7458_v14 = vld [vmem:[#allocation20_spill] sm:$0xff] }
 0x1e1   : > { %v6712_v2 = vadd.bf16 %v1708_v17, %v1601_v16  ;;  %v6714_v30 = vadd.bf16 %v1711_v41, %v1602_v40  ;;  %v2500_v61 = vrot.slane %v2498_v28, 5  ;;  %v2506_v22 = vrot.slane %v2504_v55, 5 }
 0x1e2   : > { %v2510_v21 = vrot.slane %v2508_v27, 4  ;;  %v2516_v0 = vrot.slane %v2514_v4, 5  ;;  %v2593_v53 = vmul.bf16 %v6406_v25, %v5491_v47  ;;  %v2594_v59 = vmul.bf16 %v7457_v60, %v5477_v34 }
 0x1e3   : > { %v4628_v13 = vcombine.high %v6712_v2, %v6714_v30  ;;  %v2501_v6 = vor.u32 %v2500_v61, %v2497_v46  ;;  %v4709_v52 = vrot.slane %v2592_v18, 9  ;;  %v2750_v48 = vmul.bf16 %v6374_v29, %v7458_v14 }
 0x1e4   : > { %v2511_v17 = vor.u32 %v2510_v21, %v2506_v22  ;;  %v2666_v11 = vrot.slane %v2593_v53, 5  ;;  %v2669_v26 = vrot.slane %v2594_v59, 5  ;;  %v2751_v58 = vmul.bf16 %v6378_v50, %v6580_v3 }
 0x1e5   : > { %2115 = vmatprep.mubr.bf16.mxu0 %v4628_v13  ;;  %v2502_v54 = vrot.slane %v2501_v6, 4  ;;  %v2788_v25 = vmul.bf16 %v7458_v14, %v5545_v37  ;;  %v2789_v60 = vmul.bf16 %v6580_v3, %v5578_v7  ;;  %v2790_v9 = vmul.bf16 %v6583_v8, %v5569_v62 }
 0x1e6   : > { %v2512_v41 = vrot.slane %v2511_v17, 4  ;;  %v2667_v29 = vsel %vm5511_vm10, %v4709_v52, %v2666_v11  ;;  %v2668_v10 = vrot.slane %v2666_v11, 4  ;;  %v3036_v16 = vmul.bf16 %v7458_v14, %v5547_v43 }
 0x1e7   : > { %v2507_v50 = vsel %vm5536_vm11, %v2502_v54, %v2506_v22  ;;  %v2939_v40 = vshrl.u32 %v2788_v25, 16  ;;  %v2942_v28 = vshll.u32 %v2788_v25, 16  ;;  %v2948_v55 = vshll.u32 %v2789_v60, 16 }
 0x1e8   : > { %v2517_v46 = vsel %vm5536_vm11, %v2512_v41, %v2516_v0  ;;  %v2570_v27 = vadd.bf16 %v2507_v50, %v2322_v36  ;;  %v2670_v4 = vsel %vm5511_vm10, %v2668_v10, %v2669_v26  ;;  %v2952_v18 = vshrl.u32 %v2789_v60, 16  ;;  %v6747_v60 = vld [vmem:[%s5445_s11 + $0x180] sm:$0xff]  ;;  %v6750_v41 = vld [vmem:[%s5445_s11 + $0x188] sm:$0xff] }
 0x1e9   : > { %v2571_v61 = vadd.bf16 %v2517_v46, %v2323_v19  ;;  %v2941_v21 = vrot.slane %v2939_v40, 4  ;;  %v2944_v53 = vrot.slane %v2942_v28, 5  ;;  %v2950_v59 = vrot.slane %v2948_v55, 5 }
 0x1ea   : > { %v2706_v13 = vadd.bf16 %v2667_v29, %v2570_v27  ;;  %v2954_v22 = vrot.slane %v2952_v18, 4  ;;  %v2958_v6 = vshll.u32 %v2790_v9, 16  ;;  %v3037_v52 = vmul.bf16 %v6580_v3, %v5574_v5  ;;  %v6753_v29 = vld [vmem:[%s5445_s11 + $0x190] sm:$0xff] }
 0x1eb   : > { %v2707_v17 = vadd.bf16 %v2670_v4, %v2571_v61  ;;  %v2945_v0 = vor.u32 %v2944_v53, %v2941_v21  ;;  %v3038_v36 = vmul.bf16 %v6583_v8, %v5562_v56  ;;  %v4741_v11 = vrot.slane %v3036_v16, 9 }
 0x1ec   : > { %v2766_v26 = vadd.bf16 %v2750_v48, %v2706_v13  ;;  %v2955_v19 = vor.u32 %v2954_v22, %v2950_v59  ;;  %v2960_v54 = vrot.slane %v2958_v6, 5  ;;  %v3110_v25 = vrot.slane %v3037_v52, 5 }
 0x1ed   : > { %v2767_v9 = vadd.bf16 %v2751_v58, %v2707_v17  ;;  %v2946_v10 = vrot.slane %v2945_v0, 4  ;;  %v3113_v50 = vrot.slane %v3038_v36, 5  ;;  %v3194_v40 = vmul.bf16 %v6411_v38, %v6747_v60 }
 0x1ee   : > { %v2956_v28 = vrot.slane %v2955_v19, 4  ;;  %v3111_v16 = vsel %vm5511_vm10, %v4741_v11, %v3110_v25  ;;  %v3112_v48 = vrot.slane %v3110_v25, 4  ;;  %v3195_v55 = vmul.bf16 %v6417_v32, %v6750_v41 }
 0x1ef   : > { %v2951_v46 = vsel %vm5536_vm11, %v2946_v10, %v2950_v59  ;;  %v3232_v27 = vmul.bf16 %v6747_v60, %v5608_v15  ;;  %v3233_v58 = vmul.bf16 %v6750_v41, %v5627_v57  ;;  %v3234_v38 = vmul.bf16 %v6753_v29, %v7424_v23 }
 0x1f0   : > { %v2961_v4 = vsel %vm5536_vm11, %v2956_v28, %v2960_v54  ;;  %v3014_v18 = vadd.bf16 %v2951_v46, %v2766_v26  ;;  %v3114_v61 = vsel %vm5511_vm10, %v3112_v48, %v3113_v50  ;;  %v3480_v32 = vmul.bf16 %v6747_v60, %v5603_v12 }
 0x1f1   : > { %v3015_v21 = vadd.bf16 %v2961_v4, %v2767_v9  ;;  %v3383_v53 = vshrl.u32 %v3232_v27, 16  ;;  %v3386_v59 = vshll.u32 %v3232_v27, 16  ;;  %v3392_v13 = vshll.u32 %v3233_v58, 16 }
 0x1f2   : > { %v3150_v22 = vadd.bf16 %v3111_v16, %v3014_v18  ;;  %v3396_v6 = vshrl.u32 %v3233_v58, 16  ;;  %v3402_v52 = vshll.u32 %v3234_v38, 16  ;;  %v3481_v17 = vmul.bf16 %v6750_v41, %v5635_v33  ;;  %v6781_v58 = vld [vmem:[#allocation5] sm:$0xff] }
 0x1f3   : > { %v3151_v0 = vadd.bf16 %v3114_v61, %v3015_v21  ;;  %v3385_v36 = vrot.slane %v3383_v53, 4  ;;  %v3388_v11 = vrot.slane %v3386_v59, 5  ;;  %v3394_v26 = vrot.slane %v3392_v13, 5  ;;  %v6787_v61 = vld [vmem:[#allocation5 + $0x8] sm:$0xff] }
 0x1f4   : > { %v3210_v19 = vadd.bf16 %v3194_v40, %v3150_v22  ;;  %v3398_v54 = vrot.slane %v3396_v6, 4  ;;  %v3404_v25 = vrot.slane %v3402_v52, 5  ;;  %v3482_v10 = vmul.bf16 %v6753_v29, %v5617_v51 }
 0x1f5   : > { %v3211_v9 = vadd.bf16 %v3195_v55, %v3151_v0  ;;  %v3389_v50 = vor.u32 %v3388_v11, %v3385_v36  ;;  %v4773_v28 = vrot.slane %v3480_v32, 9  ;;  %v3554_v48 = vrot.slane %v3481_v17, 5 }
 0x1f6   : > { %v3399_v16 = vor.u32 %v3398_v54, %v3394_v26  ;;  %v3557_v46 = vrot.slane %v3482_v10, 5  ;;  %v4627_v27 = vcombine.low %v6712_v2, %v6714_v30  ;;  %v359_v38 = vmul.bf16 %v6781_v58, %v6490_v20 }
 0x1f7   : > { %v3390_v40 = vrot.slane %v3389_v50, 4  ;;  %v3555_v4 = vsel %vm5511_vm10, %v4773_v28, %v3554_v48  ;;  %v3556_v18 = vrot.slane %v3554_v48, 4  ;;  %v360_v55 = vmul.bf16 %v6787_v61, %v6493_v44 }
 0x1f8   : > { %v3400_v32 = vrot.slane %v3399_v16, 4  ;;  %2116 = vmatmul.mubr.bf16.gmra.mxu0 %v4627_v27  ;;  %v375_v21 = vadd.bf16 0, %v359_v38  ;;  %v421_v2 = vmul.bf16 %v6490_v20, %v5482_v39  ;;  %v422_v30 = vmul.bf16 %v6493_v44, %v5497_v49  ;;  %v6805_v16 = vpop.f32.mrf.mxu0 }
 0x1f9   : > { %v3395_v53 = vsel %vm5536_vm11, %v3390_v40, %v3394_v26  ;;  %v3558_v59 = vsel %vm5511_vm10, %v3556_v18, %v3557_v46  ;;  %v376_v13 = vadd.bf16 0, %v360_v55  ;;  %v423_v22 = vmul.bf16 %v7454_v1, %v5484_v42  ;;  %7459 = vst [vmem:[#allocation22_spill] sm:$0xff] %v6805_v16  ;;  %v6807_v46 = vpop.f32.mrf.mxu1 }
 0x1fa   : > { %v3405_v6 = vsel %vm5536_vm11, %v3400_v32, %v3404_v25  ;;  %v3458_v52 = vadd.bf16 %v3395_v53, %v3210_v19  ;;  %v596_v17 = vshrl.u32 %v421_v2, 16  ;;  %v599_v0 = vshll.u32 %v421_v2, 16  ;;  %7460 = vst [vmem:[#allocation17_spill] sm:$0xff] %v6807_v46 }
 0x1fb   : > { %v3459_v36 = vadd.bf16 %v3405_v6, %v3211_v9  ;;  %v605_v11 = vshll.u32 %v422_v30, 16  ;;  %v609_v54 = vshrl.u32 %v422_v30, 16  ;;  %v615_v10 = vshll.u32 %v423_v22, 16  ;;  %v7461_v30 = vld [vmem:[#allocation21_spill] sm:$0xff] }
 0x1fc   : > { %v3594_v50 = vadd.bf16 %v3555_v4, %v3458_v52  ;;  %v598_v28 = vrot.slane %v596_v17, 4  ;;  %v601_v26 = vrot.slane %v599_v0, 5  ;;  %v685_v48 = vmul.bf16 %v6490_v20, %v5457_v24  ;;  %v6813_v20 = vld [vmem:[#allocation5 + $0x30] sm:$0xff]  ;;  %v6817_v52 = vld [vmem:[#allocation5 + $0x38] sm:$0xff]  ;;  %v6821_v17 = vpop.f32.mrf.mxu0 }
 0x1fd   : > { %v3595_v27 = vadd.bf16 %v3558_v59, %v3459_v36  ;;  %v607_v38 = vrot.slane %v605_v11, 5  ;;  %v611_v25 = vrot.slane %v609_v54, 4  ;;  %v617_v19 = vrot.slane %v615_v10, 5  ;;  %7462 = vst [vmem:[#allocation16_spill] sm:$0xff] %v6821_v17 }
 0x1fe   : > { %v602_v40 = vor.u32 %v601_v26, %v598_v28  ;;  %v686_v9 = vmul.bf16 %v6493_v44, %v5491_v47  ;;  %v687_v4 = vmul.bf16 %v7454_v1, %v5477_v34  ;;  %v4550_v18 = vrot.slane %v685_v48, 9  ;;  %v6823_v1 = vpop.f32.mrf.mxu1 }
 0x1ff   : > { %v4788_v55 = vcombine.high %v3594_v50, %v3595_v27  ;;  %v4787_v32 = vcombine.low %v3594_v50, %v3595_v27  ;;  %v612_v2 = vor.u32 %v611_v25, %v607_v38  ;;  %v845_v53 = vmul.bf16 %v6813_v20, %v7461_v30  ;;  %7463 = vst [vmem:[#allocation19_spill] sm:$0xff] %v6823_v1 }
 0x200   : > { %v603_v59 = vrot.slane %v602_v40, 4  ;;  %v766_v22 = vrot.slane %v686_v9, 5  ;;  %v769_v6 = vrot.slane %v687_v4, 5  ;;  %v846_v44 = vmul.bf16 %v6817_v52, %v6663_v35 }
 0x201   : > { %3962 = vmatprep.mubr.bf16.mxu1 %v4788_v55  ;;  %v613_v0 = vrot.slane %v612_v2, 4  ;;  %v904_v36 = vmul.bf16 %v7461_v30, %v5545_v37  ;;  %v905_v11 = vmul.bf16 %v6663_v35, %v5578_v7  ;;  %v906_v54 = vmul.bf16 %v6666_v45, %v5569_v62 }
 0x202   : > { %3963 = vmatmul.mubr.bf16.gmra.mxu1 %v4787_v32  ;;  %v608_v10 = vsel %vm5536_vm11, %v603_v59, %v607_v38  ;;  %v767_v50 = vsel %vm5511_vm10, %v4550_v18, %v766_v22  ;;  %v768_v28 = vrot.slane %v766_v22, 4  ;;  %v1162_v26 = vmul.bf16 %v7461_v30, %v5547_v43  ;;  %v6841_v32 = vpop.f32.mrf.mxu0  ;;  %v6843_v18 = vpop.f32.mrf.mxu1 }
 0x203   : > { %v618_v48 = vsel %vm5536_vm11, %v613_v0, %v617_v19  ;;  %v649_v27 = vadd.bf16 %v608_v10, %v375_v21  ;;  %v1076_v25 = vshrl.u32 %v904_v36, 16  ;;  %v1079_v40 = vshll.u32 %v904_v36, 16  ;;  %7464 = vst [vmem:[#allocation18_spill] sm:$0xff] %v6841_v32  ;;  %7465 = vst [vmem:[#allocation20_spill] sm:$0xff] %v6843_v18  ;;  %v4606_v18 = vld [vmem:[%s5445_s11 + $0xe8] sm:$0xff] }
 0x204   : > { %v650_v9 = vadd.bf16 %v618_v48, %v376_v13  ;;  %v770_v4 = vsel %vm5511_vm10, %v768_v28, %v769_v6  ;;  %v1085_v55 = vshll.u32 %v905_v11, 16  ;;  %v1089_v38 = vshrl.u32 %v905_v11, 16  ;;  %v4604_v28 = vld [vmem:[%s5445_s11 + $0xd8] sm:$0xff] }
 0x205   : > { %v801_v2 = vadd.bf16 %v767_v50, %v649_v27  ;;  %v1078_v59 = vrot.slane %v1076_v25, 4  ;;  %v1081_v30 = vrot.slane %v1079_v40, 5  ;;  %v1095_v19 = vshll.u32 %v906_v54, 16  ;;  %v4605_v40 = vld [vmem:[%s5445_s11 + $0xe0] sm:$0xff]  ;;  %v6852_v54 = vpop.f32.mrf.mxu0 }
 0x206   : > { %v802_v21 = vadd.bf16 %v770_v4, %v650_v9  ;;  %v1087_v22 = vrot.slane %v1085_v55, 5  ;;  %v1091_v0 = vrot.slane %v1089_v38, 4  ;;  %v1163_v13 = vmul.bf16 %v6663_v35, %v5574_v5  ;;  %7466 = vst [vmem:[#allocation21_spill] sm:$0xff] %v6852_v54  ;;  %v6854_v9 = vpop.f32.mrf.mxu1  ;;  %v6856_v35 = vld [vmem:[#allocation5 + $0x60] sm:$0xff]  ;;  %v6859_v38 = vld [vmem:[#allocation5 + $0x68] sm:$0xff] }
 0x207   : > { %v861_v6 = vadd.bf16 %v845_v53, %v801_v2  ;;  %v1082_v36 = vor.u32 %v1081_v30, %v1078_v59  ;;  %v1097_v10 = vrot.slane %v1095_v19, 5  ;;  %v1164_v11 = vmul.bf16 %v6666_v45, %v5562_v56  ;;  %7467 = vst [vmem:[#allocation23_spill] sm:$0xff] %v6854_v9 }
 0x208   : > { %v862_v48 = vadd.bf16 %v846_v44, %v802_v21  ;;  %v1092_v50 = vor.u32 %v1091_v0, %v1087_v22  ;;  %v4582_v27 = vrot.slane %v1162_v26, 9  ;;  %v1240_v25 = vrot.slane %v1163_v13, 5 }
 0x209   : > { %v1083_v4 = vrot.slane %v1082_v36, 4  ;;  %v1243_v55 = vrot.slane %v1164_v11, 5  ;;  %v1319_v53 = vmul.bf16 %v6856_v35, %v4604_v28  ;;  %v1320_v45 = vmul.bf16 %v6859_v38, %v4605_v40 }
 0x20a   : > { %v1093_v44 = vrot.slane %v1092_v50, 4  ;;  %v1241_v26 = vsel %vm5511_vm10, %v4582_v27, %v1240_v25  ;;  %v1242_v2 = vrot.slane %v1240_v25, 4  ;;  %v1378_v59 = vmul.bf16 %v4604_v28, %v5608_v15  ;;  %v6874_v27 = vpop.f32.mrf.mxu0  ;;  %v6876_v25 = vpop.f32.mrf.mxu1 }
 0x20b   : > { %v1088_v30 = vsel %vm5536_vm11, %v1083_v4, %v1087_v22  ;;  %v1379_v19 = vmul.bf16 %v4605_v40, %v5627_v57  ;;  %v1380_v21 = vmul.bf16 %v4606_v18, %v7424_v23  ;;  %v1636_v0 = vmul.bf16 %v4604_v28, %v5603_v12  ;;  %7468 = vst [vmem:[#allocation24_spill] sm:$0xff] %v6874_v27 }
 0x20c   : > { %v1098_v13 = vsel %vm5536_vm11, %v1093_v44, %v1097_v10  ;;  %v1129_v36 = vadd.bf16 %v1088_v30, %v861_v6  ;;  %v1244_v11 = vsel %vm5511_vm10, %v1242_v2, %v1243_v55  ;;  %v1550_v50 = vshrl.u32 %v1378_v59, 16  ;;  %v6880_v16 = vpop.f32.mrf.mxu0 }
 0x20d   : > { %v1130_v9 = vadd.bf16 %v1098_v13, %v862_v48  ;;  %v1553_v22 = vshll.u32 %v1378_v59, 16  ;;  %v1559_v4 = vshll.u32 %v1379_v19, 16  ;;  %v1563_v54 = vshrl.u32 %v1379_v19, 16  ;;  %v6882_v48 = vpop.f32.mrf.mxu1 }
 0x20e   : > { %v1275_v32 = vadd.bf16 %v1241_v26, %v1129_v36  ;;  %v1552_v1 = vrot.slane %v1550_v50, 4  ;;  %v1569_v46 = vshll.u32 %v1380_v21, 16  ;;  %v1637_v28 = vmul.bf16 %v4605_v40, %v5635_v33 }
 0x20f   : > { %v1276_v17 = vadd.bf16 %v1244_v11, %v1130_v9  ;;  %v1555_v10 = vrot.slane %v1553_v22, 5  ;;  %v1561_v6 = vrot.slane %v1559_v4, 5  ;;  %v1565_v44 = vrot.slane %v1563_v54, 4 }
 0x210   : > { %v1335_v30 = vadd.bf16 %v1319_v53, %v1275_v32  ;;  %v1571_v55 = vrot.slane %v1569_v46, 5  ;;  %v1638_v2 = vmul.bf16 %v4606_v18, %v5617_v51  ;;  %v4614_v27 = vrot.slane %v1636_v0, 9  ;;  %v6898_v0 = vpop.f32.mrf.mxu0 }
 0x211   : > { %v1336_v59 = vadd.bf16 %v1320_v45, %v1276_v17  ;;  %v1556_v19 = vor.u32 %v1555_v10, %v1552_v1  ;;  %v1566_v26 = vor.u32 %v1565_v44, %v1561_v6  ;;  %v1714_v13 = vrot.slane %v1637_v28, 5 }
 0x212   : > { %v1717_v21 = vrot.slane %v1638_v2, 5  ;;  %v2308_v40 = vmul.bf16 %v6781_v58, %v7458_v14  ;;  %v2309_v54 = vmul.bf16 %v6787_v61, %v6580_v3  ;;  %v2347_v46 = vmul.bf16 %v7458_v14, %v5482_v39  ;;  %v6900_v61 = vpop.f32.mrf.mxu1 }
 0x213   : > { %v1557_v32 = vrot.slane %v1556_v19, 4  ;;  %v1567_v18 = vrot.slane %v1566_v26, 4  ;;  %v1715_v9 = vsel %vm5511_vm10, %v4614_v27, %v1714_v13  ;;  %v1716_v53 = vrot.slane %v1714_v13, 4  ;;  %v6914_v26 = vpop.f32.mrf.mxu0 }
 0x214   : > { %v2324_v17 = vadd.bf16 0, %v2308_v40  ;;  %v6892_v1 = vadd.bf16 0, %v2309_v54  ;;  %v2348_v45 = vmul.bf16 %v6580_v3, %v5497_v49  ;;  %v2349_v58 = vmul.bf16 %v6583_v8, %v5484_v42  ;;  %v6916_v13 = vpop.f32.mrf.mxu1 }
 0x215   : > { %v1562_v39 = vsel %vm5536_vm11, %v1557_v32, %v1561_v6  ;;  %v1572_v36 = vsel %vm5536_vm11, %v1567_v18, %v1571_v55  ;;  %v1718_v11 = vsel %vm5511_vm10, %v1716_v53, %v1717_v21  ;;  %v2519_v50 = vshrl.u32 %v2347_v46, 16 }
 0x216   : > { %v1603_v27 = vadd.bf16 %v1562_v39, %v1335_v30  ;;  %v1604_v22 = vadd.bf16 %v1572_v36, %v1336_v59  ;;  %v2522_v49 = vshll.u32 %v2347_v46, 16  ;;  %v2528_v4 = vshll.u32 %v2348_v45, 16 }
 0x217   : > { %v2521_v28 = vrot.slane %v2519_v50, 4  ;;  %v2532_v42 = vshrl.u32 %v2348_v45, 16  ;;  %v2538_v10 = vshll.u32 %v2349_v58, 16  ;;  %v2595_v44 = vmul.bf16 %v7458_v14, %v5457_v24 }
 0x218   : > { %v6910_v2 = vadd.bf16 %v1715_v9, %v1603_v27  ;;  %v6912_v6 = vadd.bf16 %v1718_v11, %v1604_v22  ;;  %v2524_v19 = vrot.slane %v2522_v49, 5  ;;  %v2530_v55 = vrot.slane %v2528_v4, 5 }
 0x219   : > { %v2534_v30 = vrot.slane %v2532_v42, 4  ;;  %v2540_v59 = vrot.slane %v2538_v10, 5  ;;  %v2596_v21 = vmul.bf16 %v6580_v3, %v5491_v47  ;;  %v2597_v40 = vmul.bf16 %v6583_v8, %v5477_v34  ;;  %v6934_v8 = vpop.f32.mrf.mxu0 }
 0x21a   : > { %v4630_v24 = vcombine.high %v6910_v2, %v6912_v6  ;;  %v2525_v14 = vor.u32 %v2524_v19, %v2521_v28  ;;  %v4710_v54 = vrot.slane %v2595_v44, 9  ;;  %v2752_v46 = vmul.bf16 %v6813_v20, %v6747_v60  ;;  %v6936_v20 = vpop.f32.mrf.mxu1 }
 0x21b   : > { %v2535_v32 = vor.u32 %v2534_v30, %v2530_v55  ;;  %v2673_v18 = vrot.slane %v2596_v21, 5  ;;  %v2676_v9 = vrot.slane %v2597_v40, 5  ;;  %v2753_v53 = vmul.bf16 %v6817_v52, %v6750_v41 }
 0x21c   : > { %2125 = vmatprep.mubr.bf16.mxu0 %v4630_v24  ;;  %v2526_v45 = vrot.slane %v2525_v14, 4  ;;  %v2791_v47 = vmul.bf16 %v6747_v60, %v5545_v37  ;;  %v2792_v34 = vmul.bf16 %v6750_v41, %v5578_v7  ;;  %v2793_v3 = vmul.bf16 %v6753_v29, %v5569_v62  ;;  %v6951_v10 = vpop.f32.mrf.mxu1 }
 0x21d   : > { %v2536_v58 = vrot.slane %v2535_v32, 4  ;;  %v2674_v39 = vsel %vm5511_vm10, %v4710_v54, %v2673_v18  ;;  %v2675_v52 = vrot.slane %v2673_v18, 4  ;;  %v3039_v36 = vmul.bf16 %v6747_v60, %v5547_v43  ;;  %v6949_v60 = vpop.f32.mrf.mxu0  ;;  %v4764_v32 = vld [vmem:[%s5445_s11 + $0x198] sm:$0xff]  ;;  %v4765_v18 = vld [vmem:[%s5445_s11 + $0x1a0] sm:$0xff] }
 0x21e   : > { %v2531_v37 = vsel %vm5536_vm11, %v2526_v45, %v2530_v55  ;;  %v2963_v11 = vshrl.u32 %v2791_v47, 16  ;;  %v2966_v7 = vshll.u32 %v2791_v47, 16  ;;  %v2972_v50 = vshll.u32 %v2792_v34, 16 }
 0x21f   : > { %v2541_v62 = vsel %vm5536_vm11, %v2536_v58, %v2540_v59  ;;  %v2572_v27 = vadd.bf16 %v2531_v37, %v2324_v17  ;;  %v2677_v22 = vsel %vm5511_vm10, %v2675_v52, %v2676_v9  ;;  %v2976_v49 = vshrl.u32 %v2792_v34, 16  ;;  %v4766_v9 = vld [vmem:[%s5445_s11 + $0x1a8] sm:$0xff]  ;;  %v6961_v58 = vpop.f32.mrf.mxu0 }
 0x220   : > { %v2573_v4 = vadd.bf16 %v2541_v62, %v6892_v1  ;;  %v2965_v28 = vrot.slane %v2963_v11, 4  ;;  %v2968_v42 = vrot.slane %v2966_v7, 5  ;;  %v2974_v43 = vrot.slane %v2972_v50, 5 }
 0x221   : > { %v2708_v44 = vadd.bf16 %v2674_v39, %v2572_v27  ;;  %v2978_v19 = vrot.slane %v2976_v49, 4  ;;  %v2982_v55 = vshll.u32 %v2793_v3, 16  ;;  %v3040_v17 = vmul.bf16 %v6750_v41, %v5574_v5  ;;  %v6963_v5 = vpop.f32.mrf.mxu1 }
 0x222   : > { %v2709_v30 = vadd.bf16 %v2677_v22, %v2573_v4  ;;  %v2969_v59 = vor.u32 %v2968_v42, %v2965_v28  ;;  %v3041_v1 = vmul.bf16 %v6753_v29, %v5562_v56  ;;  %v4742_v21 = vrot.slane %v3039_v36, 9  ;;  %v6978_v22 = vpop.f32.mrf.mxu0 }
 0x223   : > { %v2768_v40 = vadd.bf16 %v2752_v46, %v2708_v44  ;;  %v2979_v24 = vor.u32 %v2978_v19, %v2974_v43  ;;  %v2984_v14 = vrot.slane %v2982_v55, 5  ;;  %v3117_v54 = vrot.slane %v3040_v17, 5 }
 0x224   : > { %v2769_v45 = vadd.bf16 %v2753_v53, %v2709_v30  ;;  %v2970_v47 = vrot.slane %v2969_v59, 4  ;;  %v3120_v34 = vrot.slane %v3041_v1, 5  ;;  %v3196_v3 = vmul.bf16 %v6856_v35, %v4764_v32 }
 0x225   : > { %v2980_v41 = vrot.slane %v2979_v24, 4  ;;  %v3118_v56 = vsel %vm5511_vm10, %v4742_v21, %v3117_v54  ;;  %v3119_v29 = vrot.slane %v3117_v54, 4  ;;  %v3197_v46 = vmul.bf16 %v6859_v38, %v4765_v18  ;;  %v2087_v21 = vpop.f32.mrf.mxu0  ;;  %v7469_v54 = vld [vmem:[#allocation22_spill] sm:$0xff] }
 0x226   : > { %v2975_v39 = vsel %vm5536_vm11, %v2970_v47, %v2974_v43  ;;  %v3235_v53 = vmul.bf16 %v4764_v32, %v5608_v15  ;;  %v3236_v52 = vmul.bf16 %v4765_v18, %v5627_v57  ;;  %v3237_v35 = vmul.bf16 %v4766_v9, %v7424_v23  ;;  %v6980_v15 = vpop.f32.mrf.mxu1 }
 0x227   : > { %v2985_v36 = vsel %vm5536_vm11, %v2980_v41, %v2984_v14  ;;  %v3016_v37 = vadd.bf16 %v2975_v39, %v2768_v40  ;;  %v3121_v11 = vsel %vm5511_vm10, %v3119_v29, %v3120_v34  ;;  %v3483_v7 = vmul.bf16 %v4764_v32, %v5603_v12  ;;  %v7470_v32 = vld [vmem:[#allocation16_spill] sm:$0xff]  ;;  %v7472_v41 = vld [vmem:[#allocation19_spill] sm:$0xff]  ;;  %v7474_v29 = vld [vmem:[#allocation21_spill] sm:$0xff]  ;;  %v2089_v39 = vpop.f32.mrf.mxu0 }
 0x228   : > { %v3017_v38 = vadd.bf16 %v2985_v36, %v2769_v45  ;;  %v3407_v50 = vshrl.u32 %v3235_v53, 16  ;;  %v3410_v62 = vshll.u32 %v3235_v53, 16  ;;  %v3416_v27 = vshll.u32 %v3236_v52, 16  ;;  %v3934_v40 = vpop.f32.mrf.mxu1 }
 0x229   : > { %v3152_v57 = vadd.bf16 %v3118_v56, %v3016_v37  ;;  %v3420_v49 = vshrl.u32 %v3236_v52, 16  ;;  %v3426_v23 = vshll.u32 %v3237_v35, 16  ;;  %v3484_v4 = vmul.bf16 %v4765_v18, %v5635_v33  ;;  %v7473_v56 = vld [vmem:[#allocation18_spill] sm:$0xff] }
 0x22a   : > { %v3153_v28 = vadd.bf16 %v3121_v11, %v3017_v38  ;;  %v3409_v42 = vrot.slane %v3407_v50, 4  ;;  %v3412_v43 = vrot.slane %v3410_v62, 5  ;;  %v3418_v44 = vrot.slane %v3416_v27, 5  ;;  %v3936_v53 = vpop.f32.mrf.mxu1  ;;  %v7475_v11 = vld [vmem:[#allocation20_spill] sm:$0xff] }
 0x22b   : > { %v3212_v19 = vadd.bf16 %v3196_v3, %v3152_v57  ;;  %v3422_v12 = vrot.slane %v3420_v49, 4  ;;  %v3485_v55 = vmul.bf16 %v4766_v9, %v5617_v51  ;;  %v3428_v30 = vrot.slane %v3426_v23, 5  ;;  %v7471_v3 = vld [vmem:[#allocation17_spill] sm:$0xff]  ;;  %v7477_v62 = vld [vmem:[#allocation24_spill] sm:$0xff]  ;;  %v2091_v49 = vpop.f32.mrf.mxu0 }
 0x22c   : > { %v3413_v17 = vor.u32 %v3412_v43, %v3409_v42  ;;  %v4774_v59 = vrot.slane %v3483_v7, 9  ;;  %v3561_v1 = vrot.slane %v3484_v4, 5  ;;  %v4629_v33 = vcombine.low %v6910_v2, %v6912_v6  ;;  %v7476_v7 = vld [vmem:[#allocation23_spill] sm:$0xff]  ;;  %v3938_v23 = vpop.f32.mrf.mxu1 }
 0x22d   : > { %v3423_v24 = vor.u32 %v3422_v12, %v3418_v44  ;;  %v3564_v14 = vrot.slane %v3485_v55, 5  ;;  %v4866_v18 = vpack.c.bf16 %v7470_v32, %v7469_v54  ;;  %v3213_v45 = vadd.bf16 %v3197_v46, %v3153_v28  ;;  %v2093_v55 = vpop.f32.mrf.mxu0 }
 0x22e   : > { %v3414_v47 = vrot.slane %v3413_v17, 4  ;;  %v3563_v34 = vrot.slane %v3561_v1, 4  ;;  %v4882_v51 = vpack.c.bf16 %v7472_v41, %v7471_v3  ;;  %2126 = vmatmul.mubr.bf16.gmra.mxu0 %v4629_v33  ;;  %v3562_v6 = vsel %vm5511_vm10, %v4774_v59, %v3561_v1  ;;  %v3940_v17 = vpop.f32.mrf.mxu1 }
 0x22f   : > { %v3424_v9 = vrot.slane %v3423_v24, 4  ;;  %2235 = vst [vmem:[%s6991_s26] sm:$0xff] %v4866_v18  ;;  %v4867_v46 = vpack.c.bf16 %v7474_v29, %v7473_v56  ;;  %v4883_v38 = vpack.c.bf16 %v7476_v7, %v7475_v11  ;;  %v4868_v27 = vpack.c.bf16 %v6880_v16, %v7477_v62 }
 0x230   : > { %v3419_v2 = vsel %vm5536_vm11, %v3414_v47, %v3418_v44  ;;  %4839 = vst [vmem:[%s6991_s26 + $0x80] sm:$0xff] %v4882_v51  ;;  %v3565_v36 = vsel %vm5511_vm10, %v3563_v34, %v3564_v14  ;;  %v4884_v31 = vpack.c.bf16 %v6882_v48, %v6876_v25  ;;  %v4869_v63 = vpack.c.bf16 %v6914_v26, %v6898_v0 }
 0x231   : > { %v3429_v52 = vsel %vm5536_vm11, %v3424_v9, %v3428_v30  ;;  %v3460_v35 = vadd.bf16 %v3419_v2, %v3212_v19  ;;  %2236 = vst [vmem:[%s6991_s26 + $0x8] sm:$0xff] %v4867_v46  ;;  %4840 = vst [vmem:[%s6991_s26 + $0x88] sm:$0xff] %v4883_v38  ;;  %v4885_v4 = vpack.c.bf16 %v6916_v13, %v6900_v61 }
 0x232   : > { %v3461_v37 = vadd.bf16 %v3429_v52, %v3213_v45  ;;  %2237 = vst [vmem:[%s6991_s26 + $0x10] sm:$0xff] %v4868_v27  ;;  %4841 = vst [vmem:[%s6991_s26 + $0x90] sm:$0xff] %v4884_v31  ;;  %v4870_v28 = vpack.c.bf16 %v6949_v60, %v6934_v8  ;;  %v4886_v44 = vpack.c.bf16 %v6951_v10, %v6936_v20 }
 0x233   : > { %v3596_v50 = vadd.bf16 %v3562_v6, %v3460_v35  ;;  %2238 = vst [vmem:[%s6991_s26 + $0x18] sm:$0xff] %v4869_v63  ;;  %4842 = vst [vmem:[%s6991_s26 + $0x98] sm:$0xff] %v4885_v4  ;;  %v4871_v19 = vpack.c.bf16 %v6978_v22, %v6961_v58  ;;  %v4887_v12 = vpack.c.bf16 %v6980_v15, %v6963_v5 }
 0x234   : > { %v3597_v57 = vadd.bf16 %v3565_v36, %v3461_v37  ;;  %2239 = vst [vmem:[%s6991_s26 + $0x20] sm:$0xff] %v4870_v28  ;;  %4843 = vst [vmem:[%s6991_s26 + $0xa0] sm:$0xff] %v4886_v44  ;;  %v4872_v30 = vpack.c.bf16 %v2089_v39, %v2087_v21  ;;  %v4888_v59 = vpack.c.bf16 %v3936_v53, %v3934_v40 }
 0x235   : > { %2240 = vst [vmem:[%s6991_s26 + $0x28] sm:$0xff] %v4871_v19  ;;  %4844 = vst [vmem:[%s6991_s26 + $0xa8] sm:$0xff] %v4887_v12  ;;  %v7033_v1 = vpack.c.bf16 %v2091_v49, %v2087_v21  ;;  %v7035_v24 = vpack.c.bf16 %v3938_v23, %v3934_v40  ;;  %v7039_v14 = vpack.c.bf16 %v2093_v55, %v2089_v39 }
 0x236   : > { %v4790_v42 = vcombine.high %v3596_v50, %v3597_v57  ;;  %v4789_v43 = vcombine.low %v3596_v50, %v3597_v57  ;;  %2241 = vst [vmem:[%s6991_s26 + $0x30] sm:$0xff] %v4872_v30  ;;  %4845 = vst [vmem:[%s6991_s26 + $0xb0] sm:$0xff] %v4888_v59  ;;  %v4873_v33 = vpack.c.bf16 %v2093_v55, %v2091_v49  ;;  %v5265_v30 = vmov 0  }
 0x237   : > { %v7041_v18 = vpack.c.bf16 %v3940_v17, %v3936_v53  ;;  %v4889_v45 = vpack.c.bf16 %v3940_v17, %v3938_v23  ;;  %4130 = vmatprep.mubr.bf16.mxu0 %v5265_v30 }
 0x238   : > { %3972 = vmatprep.mubr.bf16.mxu1 %v4790_v42  ;;  %2242 = vst [vmem:[%s6991_s26 + $0x38] sm:$0xff] %v4873_v33 }
 0x239   : > { %3973 = vmatmul.mubr.bf16.gmra.mxu1 %v4789_v43  ;;  %4846 = vst [vmem:[%s6991_s26 + $0xb8] sm:$0xff] %v4889_v45 }
 0x23a   : > { %4171 = vmatprep.mubr.bf16.mxu1 %v5265_v30 }
 0x24a   : > { %v2097_v47 = vpop.f32.mrf.mxu0 }
 0x24c   : > { %v2099_v34 = vpop.f32.mrf.mxu0 }
 0x24d   : > { %v4874_v51 = vpack.c.bf16 %v2099_v34, %v2097_v47 }
 0x24e   : > { %v2101_v9 = vpop.f32.mrf.mxu0 }
 0x24f   : > { %2243 = vst [vmem:[%s6991_s26 + $0x40] sm:$0xff] %v4874_v51  ;;  %v7046_v21 = vpack.c.bf16 %v2101_v9, %v2097_v47 }
 0x250   : > { %v2103_v40 = vpop.f32.mrf.mxu0 }
 0x251   : > { %v7048_v2 = vpack.c.bf16 %v2103_v40, %v2099_v34  ;;  %v4875_v6 = vpack.c.bf16 %v2103_v40, %v2101_v9 }
 0x253   : > { %2244 = vst [vmem:[%s6991_s26 + $0x48] sm:$0xff] %v4875_v6 }
 0x254   : > { %v3944_v46 = vpop.f32.mrf.mxu1 }
 0x256   : > { %v3946_v39 = vpop.f32.mrf.mxu1 }
 0x257   : > { %v4890_v53 = vpack.c.bf16 %v3946_v39, %v3944_v46 }
 0x258   : > { %v3948_v52 = vpop.f32.mrf.mxu1 }
 0x259   : > { %4847 = vst [vmem:[%s6991_s26 + $0xc0] sm:$0xff] %v4890_v53  ;;  %v7052_v35 = vpack.c.bf16 %v3948_v52, %v3944_v46 }
 0x25a   : > { %v3950_v36 = vpop.f32.mrf.mxu1 }
 0x25b   : > { %v7054_v37 = vpack.c.bf16 %v3950_v36, %v3946_v39  ;;  %v4891_v38 = vpack.c.bf16 %v3950_v36, %v3948_v52 }
 0x25d   : > { %4848 = vst [vmem:[%s6991_s26 + $0xc8] sm:$0xff] %v4891_v38 }
 0x281   : > { %v2107_v50 = vpop.f32.mrf.mxu0 }
 0x283   : > { %v2109_v27 = vpop.f32.mrf.mxu0 }
 0x284   : > { %v4876_v31 = vpack.c.bf16 %v2109_v27, %v2107_v50 }
 0x285   : > { %v2111_v57 = vpop.f32.mrf.mxu0 }
 0x286   : > { %2245 = vst [vmem:[%s6991_s26 + $0x50] sm:$0xff] %v4876_v31  ;;  %v7058_v63 = vpack.c.bf16 %v2111_v57, %v2107_v50 }
 0x287   : > { %v2113_v49 = vpop.f32.mrf.mxu0 }
 0x288   : > { %v7060_v23 = vpack.c.bf16 %v2113_v49, %v2109_v27  ;;  %v4877_v4 = vpack.c.bf16 %v2113_v49, %v2111_v57 }
 0x28a   : > { %2246 = vst [vmem:[%s6991_s26 + $0x58] sm:$0xff] %v4877_v4 }
 0x28b   : > { %v3954_v28 = vpop.f32.mrf.mxu1 }
 0x28d   : > { %v3956_v42 = vpop.f32.mrf.mxu1 }
 0x28e   : > { %v4892_v43 = vpack.c.bf16 %v3956_v42, %v3954_v28 }
 0x28f   : > { %v3958_v44 = vpop.f32.mrf.mxu1 }
 0x290   : > { %4849 = vst [vmem:[%s6991_s26 + $0xd0] sm:$0xff] %v4892_v43  ;;  %v7064_v19 = vpack.c.bf16 %v3958_v44, %v3954_v28 }
 0x291   : > { %v3960_v12 = vpop.f32.mrf.mxu1 }
 0x292   : > { %v7066_v55 = vpack.c.bf16 %v3960_v12, %v3956_v42  ;;  %v4893_v17 = vpack.c.bf16 %v3960_v12, %v3958_v44 }
 0x294   : > { %4850 = vst [vmem:[%s6991_s26 + $0xd8] sm:$0xff] %v4893_v17 }
 0x2b8   : > { %v2117_v59 = vpop.f32.mrf.mxu0 }
 0x2ba   : > { %v2119_v33 = vpop.f32.mrf.mxu0 }
 0x2bb   : > { %v4878_v45 = vpack.c.bf16 %v2119_v33, %v2117_v59 }
 0x2bc   : > { %v2121_v47 = vpop.f32.mrf.mxu0 }
 0x2bd   : > { %2247 = vst [vmem:[%s6991_s26 + $0x60] sm:$0xff] %v4878_v45  ;;  %v7080_v42 = vpack.c.bf16 %v2121_v47, %v2117_v59 }
 0x2be   : > { %v2123_v34 = vpop.f32.mrf.mxu0 }
 0x2bf   : > { %v4879_v51 = vpack.c.bf16 %v2123_v34, %v2121_v47  ;;  %v7076_v4 = vpack.c.bf16 %v2123_v34, %v2119_v33  ;;  %v7101_v47 = vpack.c.bf16 %v6978_v22, %v6949_v60  ;;  %v7120_v60 = vpack.c.bf16 %v6898_v0, %v7477_v62 }
 0x2c0   : > { %v7136_v0 = vpack.c.bf16 %v7473_v56, %v7469_v54  ;;  %v5266_v54 = vmov 1065369472   ;;  %v4191_v62 = vmul.bf16 %v7066_v55, %v7066_v55 }
 0x2c1   : > { %2248 = vst [vmem:[%s6991_s26 + $0x68] sm:$0xff] %v4879_v51 }
 0x2c2   : > { %v3964_v9 = vpop.f32.mrf.mxu1 }
 0x2c4   : > { %v3966_v40 = vpop.f32.mrf.mxu1 }
 0x2c5   : > { %v4894_v6 = vpack.c.bf16 %v3966_v40, %v3964_v9 }
 0x2c6   : > { %v3968_v46 = vpop.f32.mrf.mxu1 }
 0x2c7   : > { %4851 = vst [vmem:[%s6991_s26 + $0xe0] sm:$0xff] %v4894_v6  ;;  %v7094_v59 = vpack.c.bf16 %v3968_v46, %v3964_v9  ;;  %v7108_v9 = vpack.c.bf16 %v6961_v58, %v6934_v8  ;;  %v7125_v8 = vpack.c.bf16 %v7474_v29, %v7470_v32  ;;  %v7142_v58 = vpack.c.bf16 %v6963_v5, %v6936_v20 }
 0x2c8   : > { %v3970_v39 = vpop.f32.mrf.mxu1  ;;  %v7156_v20 = vpack.c.bf16 %v6900_v61, %v6876_v25  ;;  %v2262_v5 = vmul.bf16 %v7060_v23, %v7060_v23  ;;  %v3983_v25 = vpack.c.bf16 %v7475_v11, %v7471_v3  ;;  %v2261_v32 = vmul.bf16 %v7058_v63, %v7058_v63 }
 0x2c9   : > { %v4895_v53 = vpack.c.bf16 %v3970_v39, %v3968_v46  ;;  %v7088_v51 = vpack.c.bf16 %v3970_v39, %v3966_v40  ;;  %v7113_v40 = vpack.c.bf16 %v6914_v26, %v6880_v16  ;;  %v7131_v16 = vpack.c.bf16 %v6980_v15, %v6951_v10 }
 0x2ca   : > { %v7147_v10 = vpack.c.bf16 %v6916_v13, %v6882_v48  ;;  %v2264_v15 = vmul.bf16 %v7076_v4, %v7076_v4  ;;  %v7161_v48 = vpack.c.bf16 %v7476_v7, %v7472_v41  ;;  %v2263_v13 = vmul.bf16 %v7080_v42, %v7080_v42 }
 0x2cb   : > { %4852 = vst [vmem:[%s6991_s26 + $0xe8] sm:$0xff] %v4895_v53  ;;  %v2260_v41 = vmul.bf16 %v7048_v2, %v7048_v2  ;;  %v4193_v29 = vmul.bf16 %v7088_v51, %v7088_v51  ;;  %v2259_v3 = vmul.bf16 %v7046_v21, %v7046_v21  ;;  %v2258_v11 = vmul.bf16 %v7039_v14, %v7039_v14 }
 0x2cc   : > { %v4192_v7 = vmul.bf16 %v7094_v59, %v7094_v59  ;;  %v4186_v6 = vmul.bf16 %v7035_v24, %v7035_v24  ;;  %v4184_v46 = vmul.bf16 %v7142_v58, %v7142_v58  ;;  %v4182_v39 = vmul.bf16 %v7156_v20, %v7156_v20 }
 0x2cd   : > { %v4181_v53 = vmul.bf16 %v7161_v48, %v7161_v48 }
 0x2ee   : > { %v2127_v52 = vpop.f32.mrf.mxu0 }
 0x2f0   : > { %v2129_v36 = vpop.f32.mrf.mxu0 }
 0x2f1   : > { %v4880_v38 = vpack.c.bf16 %v2129_v36, %v2127_v52 }
 0x2f2   : > { %v2131_v50 = vpop.f32.mrf.mxu0 }
 0x2f3   : > { %2249 = vst [vmem:[%s6991_s26 + $0x70] sm:$0xff] %v4880_v38  ;;  %v2150_v49 = vpack.c.bf16 %v2131_v50, %v2127_v52  ;;  %v4180_v52 = vmul.bf16 %v3983_v25, %v3983_v25 }
 0x2f4   : > { %v2133_v27 = vpop.f32.mrf.mxu0 }
 0x2f5   : > { %v2151_v31 = vpack.c.bf16 %v2133_v27, %v2129_v36  ;;  %v4881_v57 = vpack.c.bf16 %v2133_v27, %v2131_v50  ;;  %v2265_v22 = vmul.bf16 %v2150_v49, %v2150_v49 }
 0x2f7   : > { %2250 = vst [vmem:[%s6991_s26 + $0x78] sm:$0xff] %v4881_v57  ;;  %4139 = vmatprep.subr.bf16.mxu1 %v2151_v31  ;;  %v2266_v26 = vmul.bf16 %v2151_v31, %v2151_v31 }
 0x2f8   : > { %4140 = vmatpush1.bf16.msra.mxu1 %v2150_v49 }
 0x2f9   : > { %v3974_v28 = vpop.f32.mrf.mxu1  ;;  %4141 = vmatprep.subr.bf16.mxu1 %v7076_v4 }
 0x2fb   : > { %v3976_v43 = vpop.f32.mrf.mxu1 }
 0x2fc   : > { %v4896_v44 = vpack.c.bf16 %v3976_v43, %v3974_v28  ;;  %4142 = vmatpush1.bf16.msra.mxu1 %v7080_v42 }
 0x2fd   : > { %v3978_v12 = vpop.f32.mrf.mxu1  ;;  %4143 = vmatprep.subr.bf16.mxu1 %v7060_v23  ;;  %v2255_v23 = vmul.bf16 %v7108_v9, %v7108_v9 }
 0x2fe   : > { %4853 = vst [vmem:[%s6991_s26 + $0xf0] sm:$0xff] %v4896_v44  ;;  %v7085_v34 = vpack.c.bf16 %v3978_v12, %v3974_v28 }
 0x2ff   : > { %v3980_v17 = vpop.f32.mrf.mxu1 }
 0x300   : > { %v3998_v33 = vpack.c.bf16 %v3980_v17, %v3976_v43  ;;  %v4897_v45 = vpack.c.bf16 %v3980_v17, %v3978_v12  ;;  %4144 = vmatpush1.bf16.msra.mxu1 %v7058_v63  ;;  %v4194_v56 = vmul.bf16 %v7085_v34, %v7085_v34  ;;  %v4189_v63 = vmul.bf16 %v7054_v37, %v7054_v37 }
 0x301   : > { %4145 = vmatprep.subr.bf16.mxu1 %v7048_v2  ;;  %v2257_v2 = vmul.bf16 %v7033_v1, %v7033_v1 }
 0x302   : > { %4854 = vst [vmem:[%s6991_s26 + $0xf8] sm:$0xff] %v4897_v45  ;;  %4098 = vmatprep.subr.bf16.mxu0 %v3998_v33  ;;  %v4195_v61 = vmul.bf16 %v3998_v33, %v3998_v33 }
 0x303   : > { %4099 = vmatpush1.bf16.msra.mxu0 %v7085_v34 }
 0x304   : > { %4100 = vmatprep.subr.bf16.mxu0 %v7088_v51  ;;  %4146 = vmatpush1.bf16.msra.mxu1 %v7046_v21  ;;  %v2256_v21 = vmul.bf16 %v7101_v47, %v7101_v47 }
 0x305   : > { %4147 = vmatprep.subr.bf16.mxu1 %v7039_v14  ;;  %v4190_v14 = vmul.bf16 %v7064_v19, %v7064_v19 }
 0x307   : > { %4101 = vmatpush1.bf16.msra.mxu0 %v7094_v59 }
 0x308   : > { %4102 = vmatprep.subr.bf16.mxu0 %v7066_v55  ;;  %4148 = vmatpush1.bf16.msra.mxu1 %v7033_v1  ;;  %v2254_v1 = vmul.bf16 %v7113_v40, %v7113_v40  ;;  %v4188_v55 = vmul.bf16 %v7052_v35, %v7052_v35 }
 0x309   : > { %4149 = vmatprep.subr.bf16.mxu1 %v7101_v47 }
 0x30b   : > { %4103 = vmatpush1.bf16.msra.mxu0 %v7064_v19  ;;  %v4187_v19 = vmul.bf16 %v7041_v18, %v7041_v18 }
 0x30c   : > { %4104 = vmatprep.subr.bf16.mxu0 %v7054_v37  ;;  %4150 = vmatpush1.bf16.msra.mxu1 %v7108_v9  ;;  %v2253_v37 = vmul.bf16 %v7120_v60, %v7120_v60 }
 0x30d   : > { %4151 = vmatprep.subr.bf16.mxu1 %v7113_v40 }
 0x30f   : > { %4105 = vmatpush1.bf16.msra.mxu0 %v7052_v35  ;;  %v4185_v35 = vmul.bf16 %v7131_v16, %v7131_v16 }
 0x310   : > { %4106 = vmatprep.subr.bf16.mxu0 %v7041_v18  ;;  %4152 = vmatpush1.bf16.msra.mxu1 %v7120_v60  ;;  %v2251_v18 = vmul.bf16 %v7136_v0, %v7136_v0 }
 0x311   : > { %4153 = vmatprep.subr.bf16.mxu1 %v7125_v8 }
 0x313   : > { %4107 = vmatpush1.bf16.msra.mxu0 %v7035_v24  ;;  %v4183_v24 = vmul.bf16 %v7147_v10, %v7147_v10 }
 0x314   : > { %4108 = vmatprep.subr.bf16.mxu0 %v7131_v16  ;;  %4154 = vmatpush1.bf16.msra.mxu1 %v7136_v0 }
 0x315   : > { %4237 = vmatprep.subr.bf16.mxu1 %v2266_v26 }
 0x317   : > { %4109 = vmatpush1.bf16.msra.mxu0 %v7142_v58  ;;  %4172 = vmatmul.mubr.bf16.vlgmr.msra.gmra.mxu1 %v5266_v54 }
 0x318   : > { %4110 = vmatprep.subr.bf16.mxu0 %v7147_v10  ;;  %4238 = vmatpush1.bf16.msra.mxu1 %v2265_v22 }
 0x319   : > { %4269 = vmatprep.mubr.bf16.mxu1 %v5265_v30  ;;  %4239 = vmatprep.subr.bf16.mxu1 %v2264_v15 }
 0x31b   : > { %4111 = vmatpush1.bf16.msra.mxu0 %v7156_v20 }
 0x31c   : > { %4112 = vmatprep.subr.bf16.mxu0 %v7161_v48  ;;  %4240 = vmatpush1.bf16.msra.mxu1 %v2263_v13 }
 0x31d   : > { %4241 = vmatprep.subr.bf16.mxu1 %v2262_v5 }
 0x31f   : > { %4113 = vmatpush1.bf16.msra.mxu0 %v3983_v25 }
 0x320   : > { %4196 = vmatprep.subr.bf16.mxu0 %v4195_v61  ;;  %4242 = vmatpush1.bf16.msra.mxu1 %v2261_v32 }
 0x321   : > { %4243 = vmatprep.subr.bf16.mxu1 %v2260_v41 }
 0x322   : > { %4131 = vmatmul.mubr.bf16.vlgmr.msra.gmra.mxu0 %v5266_v54 }
 0x323   : > { %4197 = vmatpush1.bf16.msra.mxu0 %v4194_v56  ;;  %4228 = vmatprep.mubr.bf16.mxu0 %v5265_v30  ;;  %v2252_v30 = vmul.bf16 %v7125_v8, %v7125_v8 }
 0x324   : > { %4198 = vmatprep.subr.bf16.mxu0 %v4193_v29  ;;  %4244 = vmatpush1.bf16.msra.mxu1 %v2259_v3 }
 0x325   : > { %4245 = vmatprep.subr.bf16.mxu1 %v2258_v11 }
 0x327   : > { %4199 = vmatpush1.bf16.msra.mxu0 %v4192_v7 }
 0x328   : > { %4200 = vmatprep.subr.bf16.mxu0 %v4191_v62  ;;  %4246 = vmatpush1.bf16.msra.mxu1 %v2257_v2 }
 0x329   : > { %4247 = vmatprep.subr.bf16.mxu1 %v2256_v21 }
 0x32b   : > { %4201 = vmatpush1.bf16.msra.mxu0 %v4190_v14 }
 0x32c   : > { %4202 = vmatprep.subr.bf16.mxu0 %v4189_v63  ;;  %4248 = vmatpush1.bf16.msra.mxu1 %v2255_v23 }
 0x32d   : > { %4249 = vmatprep.subr.bf16.mxu1 %v2254_v1 }
 0x32f   : > { %4203 = vmatpush1.bf16.msra.mxu0 %v4188_v55 }
 0x330   : > { %4204 = vmatprep.subr.bf16.mxu0 %v4187_v19  ;;  %4250 = vmatpush1.bf16.msra.mxu1 %v2253_v37 }
 0x331   : > { %4251 = vmatprep.subr.bf16.mxu1 %v2252_v30 }
 0x333   : > { %4205 = vmatpush1.bf16.msra.mxu0 %v4186_v6 }
 0x334   : > { %4206 = vmatprep.subr.bf16.mxu0 %v4185_v35  ;;  %4252 = vmatpush1.bf16.msra.mxu1 %v2251_v18 }
 0x337   : > { %4207 = vmatpush1.bf16.msra.mxu0 %v4184_v46  ;;  %4270 = vmatmul.mubr.bf16.vlgmr.msra.gmra.mxu1 %v5266_v54 }
 0x338   : > { %4208 = vmatprep.subr.bf16.mxu0 %v4183_v24 }
 0x33b   : > { %4209 = vmatpush1.bf16.msra.mxu0 %v4182_v39 }
 0x33c   : > { %4210 = vmatprep.subr.bf16.mxu0 %v4181_v53 }
 0x33f   : > { %4211 = vmatpush1.bf16.msra.mxu0 %v4180_v52 }
 0x342   : > { %4229 = vmatmul.mubr.bf16.vlgmr.msra.gmra.mxu0 %v5266_v54 }
 0x343   : > { %5147 = shalt.err (!%p5144_p3)
}
 0x344   : > { %s5148_s10 = scalar_lea.hbm %s7229_s14, 4096  ;;  %s5152_s24 = scalar_lea.hbm %s7333_s3, 8192 }
 0x345   : > { %p5149_p2 = scmp.ne.s32.totalorder %s7229_s14, %s5148_s10  ;;  %p5153_p4 = scmp.lt.s32.totalorder %s7229_s14, %s7333_s3 }
 0x346   : > { %p5154_p6 = scmp.lt.s32.totalorder %s5152_s24, %s5148_s10 }
 0x347   : > { %p5150_p9 = pnand %p5149_p2, %p7478_p11 }
 0x348   : > { %p5155_p8 = por %p5154_p6, %p5153_p4 }
 0x349   : > { %p5151_p1 = pneg %p5150_p9 }
 0x34b   : > { %p5156_p5 = pnand %p5155_p8, %p5151_p1 }
 0x34d   : > { %5159 = shalt.err (!%p5156_p5)
}
 0x34e   : > { %s5268_s7 = smov 128   ;;  %s5269_s12 = smov 8   ;;  %v5270_v27 = vmov 1966171168   ;;  %v4284_v57 = vlaneseq }
 0x34f   : > { %4914 = dma.vmem_to_hbm [thread:$0]  (%p7478_p11), %s7232_s16, 4096, %s7229_s14, %s4321_s29, %s5268_s7, %s5268_s7, %s5269_s12   ;;  %v4282_v31 = vunpack.c.l.s4 %v5270_v27 }
 0x350   : > { %v4285_v28 = vshrl.u32 %v4284_v57, 7  ;;  %s4541_s30 = sshll.u32 %s5441_s17, 1  ;;  %s4325_s14 = sand.u32 1, %s5324_s22   ;;  %vm7262_vm12 = vcmp.lt.s32.totalorder %v4284_v57, 256 }
 0x351   : > { %v4283_v4 = vunpack.c.0.s8 %v4282_v31  ;;  %s4899_s16 = sshll.u32 %s5324_s22, 5  ;;  %s282_s29 = scalar_lea.vmem [#allocation9], %s4541_s30 }
 0x352   : > { %s4361_s13 = sshll.u32 %s282_s29, 4  ;;  %s4359_s10 = scalar_lea.hbm %s7334_s4, %s4899_s16  ;;  %s4362_s13 = int_to_ptr.vmem [resolvable:$true] %s4361_s13 }
 0x353   : > { %v4286_v17 = vsub.s32 %v4283_v4, %v4285_v28  ;;  %s7273_s6 = scalar_lea.sflag [#allocation10], %s4325_s14  ;;  %s5160_s11 = scalar_lea.vmem %s4362_s13, 32 }
 0x354   : > { %p5161_p7 = scmp.ne.s32.totalorder %s4362_s13, %s5160_s11  ;;  %s5271_s24 = smov [#allocation9]  }
 0x355   : > { %s5164_s26 = sshll.u32 %s5271_s24, 4  ;;  %s5165_s26 = int_to_ptr.vmem [resolvable:$false] %s5164_s26 }
 0x356   : > { %p5162_p12 = pnand %p5161_p7, %p7478_p11  ;;  %s5166_s9 = scalar_lea.vmem %s5165_s26, 64 }
 0x357   : > { %p5167_p0 = scmp.lt.s32.totalorder %s4362_s13, %s5165_s26  ;;  %p5168_p10 = scmp.lt.s32.totalorder %s5166_s9, %s5160_s11 }
 0x358   : > { %p5163_p13 = pneg %p5162_p12 }
 0x359   : > { %p5169_p3 = por %p5168_p10, %p5167_p0 }
 0x35b   : > { %p5170_p2 = pnand %p5169_p3, %p5163_p13 }
 0x3d7   : > { %v4173_v36 = vpop.f32.mrf.mxu1 }
 0x3d9   : > { %v4175_v38 = vpop.f32.mrf.mxu1 }
 0x3db   : > { %v4177_v50 = vpop.f32.mrf.mxu1 }
 0x3dd   : > { %v4178_v49 = vpop.f32.mrf.mxu1 }
 0x3e2   : > { %v4132_v42 = vpop.f32.mrf.mxu0 }
 0x3e3   : > { %v4174_v43 = vadd.f32 %v4173_v36, %v4132_v42 }
 0x3e4   : > { %v4134_v44 = vpop.f32.mrf.mxu0 }
 0x3e5   : > { %v4176_v12 = vadd.f32 %v4175_v38, %v4134_v44 }
 0x3e6   : > { %v4136_v33 = vpop.f32.mrf.mxu0 }
 0x3e7   : > { %v4280_v45 = vcombine.low %v4174_v43, %v4176_v12 }
 0x3e8   : > { %v4137_v34 = vpop.f32.mrf.mxu0 }
 0x3e9   : > { %v4287_v51 = vrot.slane %v4280_v45, %v4286_v17 }
 0x3eb   : > { %v4294_v47 = vrot.slane %v4287_v51, %v4286_v17 }
 0x3ed   : > { %4300 = vst.msk [vmem:[%s282_s29] sm:$0x3] %vm7262_vm12, %v4294_v47 }
 0x3ee   : > { %5173 = shalt.err (!%p5170_p2)
}
 0x3ef   : > { %s5174_s7 = scalar_lea.hbm %s4359_s10, 32  ;;  %s5178_s29 = scalar_lea.hbm %s7334_s4, 64 }
 0x3f0   : > { %p5175_p9 = scmp.ne.s32.totalorder %s4359_s10, %s5174_s7  ;;  %p5179_p6 = scmp.lt.s32.totalorder %s4359_s10, %s7334_s4 }
 0x3f1   : > { %p5180_p8 = scmp.lt.s32.totalorder %s5178_s29, %s5174_s7 }
 0x3f2   : > { %p5176_p1 = pnand %p5175_p9, %p7478_p11 }
 0x3f3   : > { %p5181_p5 = por %p5180_p8, %p5179_p6 }
 0x3f4   : > { %p5177_p4 = pneg %p5176_p1 }
 0x3f6   : > { %p5182_p7 = pnand %p5181_p5, %p5177_p4 }
 0x3f8   : > { %5185 = shalt.err (!%p5182_p7)
}
 0x3f9   : > { %4915 = dma.vmem_to_hbm [thread:$0]  (%p7478_p11), %s4362_s13, 32, %s4359_s10, %s7273_s6   ;;  %v4271_v9 = vpop.f32.mrf.mxu1 }
 0x3fa   : > { %s289_s11 = scalar_lea.vmem [#allocation11], %s4541_s30  ;;  %s4373_s26 = scalar_lea.hbm %s7335_s5, %s4899_s16 }
 0x3fb   : > { %v4273_v40 = vpop.f32.mrf.mxu1  ;;  %s4375_s24 = sshll.u32 %s289_s11, 4  ;;  %s5272_s7 = smov [#allocation11]   ;;  %s4376_s24 = int_to_ptr.vmem [resolvable:$true] %s4375_s24 }
 0x3fc   : > { %s5186_s9 = scalar_lea.vmem %s4376_s24, 32  ;;  %s5190_s17 = sshll.u32 %s5272_s7, 4  ;;  %s5191_s17 = int_to_ptr.vmem [resolvable:$false] %s5190_s17 }
 0x3fd   : > { %v4275_v60 = vpop.f32.mrf.mxu1  ;;  %p5187_p12 = scmp.ne.s32.totalorder %s4376_s24, %s5186_s9  ;;  %s5192_s30 = scalar_lea.vmem %s5191_s17, 64 }
 0x3fe   : > { %p5193_p10 = scmp.lt.s32.totalorder %s4376_s24, %s5191_s17  ;;  %p5194_p3 = scmp.lt.s32.totalorder %s5192_s30, %s5186_s9 }
 0x3ff   : > { %v4276_v8 = vpop.f32.mrf.mxu1  ;;  %p5188_p13 = pnand %p5187_p12, %p7478_p11 }
 0x400   : > { %p5195_p2 = por %p5194_p3, %p5193_p10 }
 0x401   : > { %p5189_p0 = pneg %p5188_p13 }
 0x402   : > { %v4230_v16 = vpop.f32.mrf.mxu0 }
 0x403   : > { %v4272_v26 = vadd.f32 %v4271_v9, %v4230_v16  ;;  %p5196_p9 = pnand %p5195_p2, %p5189_p0 }
 0x404   : > { %v4232_v0 = vpop.f32.mrf.mxu0 }
 0x405   : > { %v4274_v58 = vadd.f32 %v4273_v40, %v4232_v0 }
 0x406   : > { %v4234_v10 = vpop.f32.mrf.mxu0 }
 0x407   : > { %v4303_v22 = vcombine.low %v4272_v26, %v4274_v58 }
 0x408   : > { %v4235_v15 = vpop.f32.mrf.mxu0 }
 0x409   : > { %v4310_v54 = vrot.slane %v4303_v22, %v4286_v17 }
 0x40b   : > { %v4317_v20 = vrot.slane %v4310_v54, %v4286_v17 }
 0x40d   : > { %4319 = vst.msk [vmem:[%s289_s11] sm:$0x3] %vm7262_vm12, %v4317_v20 }
 0x40e   : > { %5199 = shalt.err (!%p5196_p9)
}
 0x40f   : > { %s5200_s22 = scalar_lea.hbm %s4373_s26, 32  ;;  %s5204_s14 = scalar_lea.hbm %s7335_s5, 64 }
 0x410   : > { %p5201_p1 = scmp.ne.s32.totalorder %s4373_s26, %s5200_s22  ;;  %p5205_p8 = scmp.lt.s32.totalorder %s4373_s26, %s7335_s5 }
 0x411   : > { %p5206_p5 = scmp.lt.s32.totalorder %s5204_s14, %s5200_s22 }
 0x412   : > { %p5202_p4 = pnand %p5201_p1, %p7478_p11 }
 0x413   : > { %p5207_p7 = por %p5206_p5, %p5205_p8 }
 0x414   : > { %p5203_p6 = pneg %p5202_p4 }
 0x416   : > { %p5208_p12 = pnand %p5207_p7, %p5203_p6 }
 0x418   : > { %5211 = shalt.err (!%p5208_p12)
}
 0x419   : > { %4916 = dma.vmem_to_hbm [thread:$0]  (%p7478_p11), %s4376_s24, 32, %s4373_s26, %s7273_s6  }
 0x41a PF: > { %s4387_s8 = sand.u32 1, %s5246_s18   ;;  %p7481_p13 = scmp.ne.s32.totalorder %s7397_s25, 0 }
 0x41b   : > { %p7482_p0 = scmp.ge.s32.totalorder %s5258_s21, 2  ;;  %s4388_s11 = scalar_lea.sflag [#allocation4], %s4387_s8 }
 0x41d   : > { %p4932_p10 = pnand %p7482_p0, %p7481_p13 }
 0x41f   : > { %p4933_p3 = pneg %p4932_p10 }
 0x421   : > { %5237 = dma.done.wait (%p4933_p3), %s4388_s11, 4096  }
 0x422   : > { %5239 = vsyncadd (%p4933_p3), %s4388_s11, 4294963200  ;;  %s7483_s13 = sadd.s32 4294967294, %s5258_s21  }
 0x423   : > { %s4396_s10 = sand.u32 1, %s7483_s13  }
 0x424   : > { %s4397_s9 = scalar_lea.sflag [#allocation10], %s4396_s10 }
 0x425   : > { %5241 = dma.done.wait (%p4933_p3), %s4397_s9, 64  }
 0x426   : > { %5243 = vsyncadd (%p4933_p3), %s4397_s9, 4294967232  ;;  %p23_p11 = scmp.ge.s32.totalorder %s5383_s15, 4   ;;  %s7484_s18 = smov %s5250_s19 }
 0x427   : > { %s7485_s19 = smov %s5254_s20  ;;  %s7486_s20 = smov %s5399_s28 }
 0x428   : > { %s7487_s21 = smov %s5383_s15  ;;  %25 = sbr.rel (!%p23_p11) target bundleno = 8 (0x8), region = 133 }
 0x42d   :  { %4411 = vsyncpa [#allocation3], 1 }
 0x42e   :  { %4413 = vsyncpa [#allocation3 + $0x1], 1 }
 0x42f   :  { %4414 = vsyncpa [#allocation6], 1 }
 0x430   :  { %4415 = vsyncpa [#allocation4], 1 }
 0x431   :  { %4417 = vsyncpa [#allocation4 + $0x1], 1 }
 0x432   :  { %4418 = vsyncpa [#allocation10], 1 }
 0x433   :  { %4420 = vsyncpa [#allocation10 + $0x1], 1 }

</bundles_post_ra>
